<compile_context>
chip_gen: v7x
topology: tpu7x:2x2x1
jax: 0.10.0
libtpu: 0.0.40
codegen_flags: <defaults>
</compile_context>

<pallas_src>
import functools

import jax
import jax.numpy as jnp
import numpy as np
from jax.experimental import pallas as pl
from jax.experimental.pallas import tpu as pltpu


# ----------------------------------------------------------------------------
# Kernel: per-tile elementwise loss terms, masked, folded to (8,128) partials.
# ----------------------------------------------------------------------------
def _yolo_loss_kernel(anc_ref, pred_ref, tgt_ref, out_ref,
                      s_noobj_acc, n_noobj_acc, s_obj_acc, n_obj_acc,
                      s_box_acc, s_ce_acc, *, t2, tr, n_cls, rows_per_anchor):
    c = pl.program_id(0)          # core / parallel axis
    j = pl.program_id(1)          # row-tile / arbitrary axis

    @pl.when(j == 0)
    def _init():
        for r in (s_noobj_acc, n_noobj_acc, s_obj_acc, n_obj_acc,
                  s_box_acc, s_ce_acc):
            r[...] = jnp.zeros_like(r)

    f32 = jnp.float32

    def P(k):                     # pred channel k -> (tr, 128) f32
        return pred_ref[k].astype(f32)

    def T(k):                     # target channel k -> (tr, 128) f32
        return tgt_ref[k].astype(f32)

    def fold8(v):                 # (tr,128) -> (8,128), pure VPU adds
        r = v[0:8]
        for s0 in range(8, tr, 8):
            r = r + v[s0:s0 + 8]
        return r

    t_obj = T(0)
    obj_m = t_obj == 1.0
    noobj_m = t_obj == 0.0        # padded rows carry obj = -1 -> neither mask

    # ---- per-element anchor (w, h): rows are anchor-major, so two compares ---
    base = (c * t2 + j) * (tr * 128)
    rid = (base
           + jax.lax.broadcasted_iota(jnp.int32, (tr, 128), 0) * 128
           + jax.lax.broadcasted_iota(jnp.int32, (tr, 128), 1))
    in_a0 = rid < rows_per_anchor
    in_a1 = rid < 2 * rows_per_anchor
    aw = jnp.where(in_a0, anc_ref[0], jnp.where(in_a1, anc_ref[2], anc_ref[4]))
    ah = jnp.where(in_a0, anc_ref[1], jnp.where(in_a1, anc_ref[3], anc_ref[5]))

    # ---- no_object_loss : BCEWithLogits on objectness ------------------------
    x = P(0)
    bce = jnp.maximum(x, 0.0) - x * t_obj + jnp.log(1.0 + jnp.exp(-jnp.abs(x)))

    # ---- IoU(box_preds, target boxes) in midpoint format ----------------------
    sx = 1.0 / (1.0 + jnp.exp(-P(1)))
    sy = 1.0 / (1.0 + jnp.exp(-P(2)))
    p3 = P(3)
    p4 = P(4)
    pw = jnp.exp(p3) * aw
    ph = jnp.exp(p4) * ah
    tx, ty, tw, th = T(1), T(2), T(3), T(4)

    px1 = sx - pw * 0.5; px2 = sx + pw * 0.5
    py1 = sy - ph * 0.5; py2 = sy + ph * 0.5
    tx1 = tx - tw * 0.5; tx2 = tx + tw * 0.5
    ty1 = ty - th * 0.5; ty2 = ty + th * 0.5
    iw = jnp.maximum(jnp.minimum(px2, tx2) - jnp.maximum(px1, tx1), 0.0)
    ih = jnp.maximum(jnp.minimum(py2, ty2) - jnp.maximum(py1, ty1), 0.0)
    inter = iw * ih
    union = (jnp.abs((px2 - px1) * (py2 - py1))
             + jnp.abs((tx2 - tx1) * (ty2 - ty1)) - inter)
    iou = inter * pl.reciprocal(union + 1e-6, approx=True)

    # ---- object_loss : MSE(sigmoid(obj_logit), iou * target_obj) -------------
    sig_obj = 1.0 / (1.0 + jnp.exp(-x))
    obj_sq = (sig_obj - iou * t_obj) ** 2

    # ---- box_loss : MSE over [sigmoid(xy), raw wh] vs [xy, log(wh/anchor)] ----
    box_sq = ((sx - tx) ** 2 + (sy - ty) ** 2
              + (p3 - jnp.log(1e-6 + tw / aw)) ** 2
              + (p4 - jnp.log(1e-6 + th / ah)) ** 2)

    # ---- class_loss : CrossEntropy over the class channels (streamed) --------
    lbl = T(5)
    m = P(5)
    for k in range(1, n_cls):
        m = jnp.maximum(m, P(5 + k))
    se = jnp.zeros_like(m)
    picked = jnp.zeros_like(m)
    for k in range(n_cls):
        lk = P(5 + k)
        se = se + jnp.exp(lk - m)
        picked = picked + jnp.where(lbl == float(k), lk, 0.0)
    ce = (m + jnp.log(se)) - picked

    # ---- masked partial sums into (8,128) accumulators (VPU only) ------------
    zero = jnp.zeros_like(x)
    one = jnp.ones_like(x)
    s_noobj_acc[...] += fold8(jnp.where(noobj_m, bce, zero))
    n_noobj_acc[...] += fold8(jnp.where(noobj_m, one, zero))
    s_obj_acc[...] += fold8(jnp.where(obj_m, obj_sq, zero))
    n_obj_acc[...] += fold8(jnp.where(obj_m, one, zero))
    s_box_acc[...] += fold8(jnp.where(obj_m, box_sq, zero))
    s_ce_acc[...] += fold8(jnp.where(obj_m, ce, zero))

    # ---- finalize: dump per-core partials (lane-dense 128-wide store) --------
    @pl.when(j == pl.num_programs(1) - 1)
    def _fin():
        out_ref[0, 0:8, :] = s_noobj_acc[...]
        out_ref[0, 8:16, :] = n_noobj_acc[...]
        out_ref[0, 16:24, :] = s_obj_acc[...]
        out_ref[0, 24:32, :] = n_obj_acc[...]
        out_ref[0, 32:40, :] = s_box_acc[...]
        out_ref[0, 40:48, :] = s_ce_acc[...]


# ----------------------------------------------------------------------------
# Wrapper: relayout + pallas_call + tiny scalar combine.
# ----------------------------------------------------------------------------
def yolo_loss_pallas(pred, target, anchors, *, tile_rows=64, n_cores=2):
    """pred: (B, 3, S, S, 5+C); target: (B, 3, S, S, 6); anchors: (3, 2)."""
    B, A, S1, S2, D = pred.shape
    assert A == 3 and anchors.shape == (A, 2)
    assert tile_rows % 8 == 0
    n_cls = D - 5
    N = B * A * S1 * S2
    rows_per_anchor = B * S1 * S2          # rows are reordered anchor-major

    # Channel-major, lane-dense relayout (row axis -> lanes), anchor-major rows.
    pred_cm = jnp.transpose(pred, (4, 1, 0, 2, 3)).reshape(D, N)
    tgt_cm = jnp.transpose(target, (4, 1, 0, 2, 3)).reshape(6, N)

    rows128 = -(-N // 128)
    t_total = -(-rows128 // tile_rows)
    t_total = -(-t_total // n_cores) * n_cores
    n_pad = t_total * tile_rows * 128

    if n_pad != N:                         # ragged tail: obj = -1 -> no mask hit
        pad = n_pad - N
        pred_cm = jnp.pad(pred_cm, ((0, 0), (0, pad)))
        pad_tgt = jnp.concatenate(
            [jnp.full((1, pad), -1.0, tgt_cm.dtype),
             jnp.zeros((5, pad), tgt_cm.dtype)], axis=0)
        tgt_cm = jnp.concatenate([tgt_cm, pad_tgt], axis=1)

    pred3 = pred_cm.reshape(D, n_pad // 128, 128)
    tgt3 = tgt_cm.reshape(6, n_pad // 128, 128)
    anc_flat = anchors.reshape(-1).astype(jnp.float32)   # (6,) -> SMEM prefetch

    t2 = t_total // n_cores
    kernel = functools.partial(_yolo_loss_kernel, t2=t2, tr=tile_rows,
                               n_cls=n_cls, rows_per_anchor=rows_per_anchor)

    parts = pl.pallas_call(
        kernel,
        out_shape=jax.ShapeDtypeStruct((n_cores, 48, 128), jnp.float32),
        grid_spec=pltpu.PrefetchScalarGridSpec(
            num_scalar_prefetch=1,
            grid=(n_cores, t2),
            in_specs=[
                pl.BlockSpec((D, tile_rows, 128),
                             lambda c, j, anc: (0, c * t2 + j, 0)),
                pl.BlockSpec((6, tile_rows, 128),
                             lambda c, j, anc: (0, c * t2 + j, 0)),
            ],
            out_specs=pl.BlockSpec((1, 48, 128), lambda c, j, anc: (c, 0, 0)),
            scratch_shapes=[pltpu.VMEM((8, 128), jnp.float32)] * 6,
        ),
        compiler_params=pltpu.CompilerParams(
            dimension_semantics=("parallel", "arbitrary")),
    )(anc_flat, pred3, tgt3)

    # Tiny final reduction + masked-mean combine in plain JAX.
    sums = jnp.sum(parts, axis=(0, 2)).reshape(6, 8).sum(axis=1)
    s_noobj, n_noobj, s_obj, n_obj, s_box, s_ce = sums
    return (s_box / (4.0 * n_obj)        # box_loss
            + s_obj / n_obj              # object_loss
            + s_noobj / n_noobj          # no_object_loss
            + s_ce / n_obj)              # class_loss


# ----------------------------------------------------------------------------
# Plain-JAX reference (mirrors the PyTorch forward) for verification.
# ----------------------------------------------------------------------------
def _sigmoid(x):
    return 1.0 / (1.0 + jnp.exp(-x))


def yolo_loss_ref(pred, target, anchors):
    obj = target[..., 0] == 1.0
    noobj = target[..., 0] == 0.0
    n_obj = jnp.sum(obj.astype(jnp.float32))
    n_noobj = jnp.sum(noobj.astype(jnp.float32))

    x = pred[..., 0]
    t = target[..., 0]
    bce = jnp.maximum(x, 0.0) - x * t + jnp.log(1.0 + jnp.exp(-jnp.abs(x)))
    no_object_loss = jnp.sum(jnp.where(noobj, bce, 0.0)) / n_noobj

    anc = anchors.reshape(1, 3, 1, 1, 2)
    sig_xy = _sigmoid(pred[..., 1:3])
    wh = jnp.exp(pred[..., 3:5]) * anc
    p_x1, p_y1 = sig_xy[..., 0] - wh[..., 0] / 2, sig_xy[..., 1] - wh[..., 1] / 2
    p_x2, p_y2 = sig_xy[..., 0] + wh[..., 0] / 2, sig_xy[..., 1] + wh[..., 1] / 2
    t_x1, t_y1 = target[..., 1] - target[..., 3] / 2, target[..., 2] - target[..., 4] / 2
    t_x2, t_y2 = target[..., 1] + target[..., 3] / 2, target[..., 2] + target[..., 4] / 2
    inter = (jnp.maximum(jnp.minimum(p_x2, t_x2) - jnp.maximum(p_x1, t_x1), 0.0)
             * jnp.maximum(jnp.minimum(p_y2, t_y2) - jnp.maximum(p_y1, t_y1), 0.0))
    iou = inter / (jnp.abs((p_x2 - p_x1) * (p_y2 - p_y1))
                   + jnp.abs((t_x2 - t_x1) * (t_y2 - t_y1)) - inter + 1e-6)

    obj_sq = (_sigmoid(pred[..., 0]) - iou * target[..., 0]) ** 2
    object_loss = jnp.sum(jnp.where(obj, obj_sq, 0.0)) / n_obj

    box_sq = jnp.concatenate(
        [(sig_xy - target[..., 1:3]) ** 2,
         (pred[..., 3:5] - jnp.log(1e-6 + target[..., 3:5] / anc)) ** 2], axis=-1)
    box_loss = jnp.sum(jnp.where(obj[..., None], box_sq, 0.0)) / (4.0 * n_obj)

    logits = pred[..., 5:]
    lbl = target[..., 5].astype(jnp.int32)
    lse = jax.nn.logsumexp(logits, axis=-1)
    picked = jnp.take_along_axis(logits, lbl[..., None], axis=-1)[..., 0]
    class_loss = jnp.sum(jnp.where(obj, lse - picked, 0.0)) / n_obj

    return box_loss + object_loss + no_object_loss + class_loss


if __name__ == "__main__":
    key = jax.random.PRNGKey(0)
    B, A, S, C = 2, 3, 8, 16           # N = B*A*S*S = 384 rows, D = 21 channels
    D = 5 + C
    k1, k2, k3, k4, k5, k6 = jax.random.split(key, 6)

    pred = jax.random.normal(k1, (B, A, S, S, D), jnp.float32)
    obj_flag = (jax.random.uniform(k2, (B, A, S, S, 1)) < 0.4).astype(jnp.float32)
    xy = jax.random.uniform(k3, (B, A, S, S, 2), minval=0.05, maxval=0.95)
    wh = jax.random.uniform(k4, (B, A, S, S, 2), minval=0.5, maxval=2.0)
    cls = jax.random.randint(k5, (B, A, S, S, 1), 0, C).astype(jnp.float32)
    target = jnp.concatenate([obj_flag, xy, wh, cls], axis=-1)   # (B,A,S,S,6)
    anchors = jax.random.uniform(k6, (A, 2), minval=0.5, maxval=2.0)

    loss_fn = jax.jit(yolo_loss_pallas)
    loss = jax.block_until_ready(loss_fn(pred, target, anchors))
    ref = jax.block_until_ready(yolo_loss_ref(pred, target, anchors))
    assert np.allclose(np.asarray(loss), np.asarray(ref), rtol=2e-3, atol=2e-3), (loss, ref)
    print("KERNEL_OK")
</pallas_src>

<mosaic_0001>
module attributes {stable_mosaic.version = 11 : i64} {
  func.func @_yolo_loss_kernel(%arg0: i32, %arg1: i32, %arg2: memref<6xf32, #tpu.memory_space<smem>>, %arg3: memref<21x64x128xf32, #tpu.memory_space<vmem>>, %arg4: memref<6x64x128xf32, #tpu.memory_space<vmem>>, %arg5: memref<1x48x128xf32, #tpu.memory_space<vmem>>, %arg6: memref<8x128xf32, #tpu.memory_space<vmem>>, %arg7: memref<8x128xf32, #tpu.memory_space<vmem>>, %arg8: memref<8x128xf32, #tpu.memory_space<vmem>>, %arg9: memref<8x128xf32, #tpu.memory_space<vmem>>, %arg10: memref<8x128xf32, #tpu.memory_space<vmem>>, %arg11: memref<8x128xf32, #tpu.memory_space<vmem>>) attributes {dimension_semantics = [#tpu.dimension_semantics<parallel>, #tpu.dimension_semantics<arbitrary>], iteration_bounds = array<i64: 2, 1>, scalar_prefetch = 1 : i64, scratch_operands = 6 : i64, tpu.core_type = #tpu.core_type<tc>, window_params = [{transform_indices = @transform_0, window_bounds = array<i64: 21, 64, 128>}, {transform_indices = @transform_1, window_bounds = array<i64: 6, 64, 128>}, {transform_indices = @transform_2, window_bounds = array<i64: 1, 48, 128>}]} {
    %c0_i32 = arith.constant 0 : i32
    %0 = arith.cmpi eq, %arg1, %c0_i32 : i32
    %1 = arith.extui %0 : i1 to i32
    %c0_i32_0 = arith.constant 0 : i32
    %2 = arith.cmpi ne, %1, %c0_i32_0 : i32
    scf.if %2 {
      %cst_204 = arith.constant 0.000000e+00 : f32
      %498 = vector.broadcast %cst_204 : f32 to vector<8x128xf32>
      %c0_205 = arith.constant 0 : index
      %c0_206 = arith.constant 0 : index
      %499 = vector.load %arg6[%c0_205, %c0_206] : memref<8x128xf32, #tpu.memory_space<vmem>>, vector<8x128xf32>
      tpu.vector_store %arg6[%c0_205, %c0_206], %498 {strides = array<i32>} : memref<8x128xf32, #tpu.memory_space<vmem>>, vector<8x128xf32>,
      %cst_207 = arith.constant 0.000000e+00 : f32
      %500 = vector.broadcast %cst_207 : f32 to vector<8x128xf32>
      %c0_208 = arith.constant 0 : index
      %c0_209 = arith.constant 0 : index
      %501 = vector.load %arg7[%c0_208, %c0_209] : memref<8x128xf32, #tpu.memory_space<vmem>>, vector<8x128xf32>
      tpu.vector_store %arg7[%c0_208, %c0_209], %500 {strides = array<i32>} : memref<8x128xf32, #tpu.memory_space<vmem>>, vector<8x128xf32>,
      %cst_210 = arith.constant 0.000000e+00 : f32
      %502 = vector.broadcast %cst_210 : f32 to vector<8x128xf32>
      %c0_211 = arith.constant 0 : index
      %c0_212 = arith.constant 0 : index
      %503 = vector.load %arg8[%c0_211, %c0_212] : memref<8x128xf32, #tpu.memory_space<vmem>>, vector<8x128xf32>
      tpu.vector_store %arg8[%c0_211, %c0_212], %502 {strides = array<i32>} : memref<8x128xf32, #tpu.memory_space<vmem>>, vector<8x128xf32>,
      %cst_213 = arith.constant 0.000000e+00 : f32
      %504 = vector.broadcast %cst_213 : f32 to vector<8x128xf32>
      %c0_214 = arith.constant 0 : index
      %c0_215 = arith.constant 0 : index
      %505 = vector.load %arg9[%c0_214, %c0_215] : memref<8x128xf32, #tpu.memory_space<vmem>>, vector<8x128xf32>
      tpu.vector_store %arg9[%c0_214, %c0_215], %504 {strides = array<i32>} : memref<8x128xf32, #tpu.memory_space<vmem>>, vector<8x128xf32>,
      %cst_216 = arith.constant 0.000000e+00 : f32
      %506 = vector.broadcast %cst_216 : f32 to vector<8x128xf32>
      %c0_217 = arith.constant 0 : index
      %c0_218 = arith.constant 0 : index
      %507 = vector.load %arg10[%c0_217, %c0_218] : memref<8x128xf32, #tpu.memory_space<vmem>>, vector<8x128xf32>
      tpu.vector_store %arg10[%c0_217, %c0_218], %506 {strides = array<i32>} : memref<8x128xf32, #tpu.memory_space<vmem>>, vector<8x128xf32>,
      %cst_219 = arith.constant 0.000000e+00 : f32
      %508 = vector.broadcast %cst_219 : f32 to vector<8x128xf32>
      %c0_220 = arith.constant 0 : index
      %c0_221 = arith.constant 0 : index
      %509 = vector.load %arg11[%c0_220, %c0_221] : memref<8x128xf32, #tpu.memory_space<vmem>>, vector<8x128xf32>
      tpu.vector_store %arg11[%c0_220, %c0_221], %508 {strides = array<i32>} : memref<8x128xf32, #tpu.memory_space<vmem>>, vector<8x128xf32>,
    } else {
    }
    %c0 = arith.constant 0 : index
    %c0_1 = arith.constant 0 : index
    %c0_2 = arith.constant 0 : index
    %3 = vector.load %arg4[%c0, %c0_1, %c0_2] : memref<6x64x128xf32, #tpu.memory_space<vmem>>, vector<1x64x128xf32>
    %4 = vector.shape_cast %3 : vector<1x64x128xf32> to vector<64x128xf32>
    %cst = arith.constant 1.000000e+00 : f32
    %5 = vector.broadcast %cst : f32 to vector<64x128xf32>
    %6 = arith.cmpf oeq, %4, %5 : vector<64x128xf32>
    %cst_3 = arith.constant 0.000000e+00 : f32
    %7 = vector.broadcast %cst_3 : f32 to vector<64x128xf32>
    %8 = arith.cmpf oeq, %4, %7 : vector<64x128xf32>
    %c1_i32 = arith.constant 1 : i32
    %9 = arith.muli %arg0, %c1_i32 : i32
    %10 = arith.addi %9, %arg1 : i32
    %c8192_i32 = arith.constant 8192 : i32
    %11 = arith.muli %10, %c8192_i32 : i32
    %12 = tpu.iota {dimensions = array<i32: 0>} : vector<64x128xi32>
    %c128_i32 = arith.constant 128 : i32
    %13 = vector.broadcast %c128_i32 : i32 to vector<64x128xi32>
    %14 = arith.muli %12, %13 : vector<64x128xi32>
    %15 = vector.broadcast %11 : i32 to vector<64x128xi32>
    %16 = arith.addi %15, %14 : vector<64x128xi32>
    %17 = tpu.iota {dimensions = array<i32: 1>} : vector<64x128xi32>
    %18 = arith.addi %16, %17 : vector<64x128xi32>
    %c128_i32_4 = arith.constant 128 : i32
    %19 = vector.broadcast %c128_i32_4 : i32 to vector<64x128xi32>
    %20 = arith.cmpi slt, %18, %19 : vector<64x128xi32>
    %c256_i32 = arith.constant 256 : i32
    %21 = vector.broadcast %c256_i32 : i32 to vector<64x128xi32>
    %22 = arith.cmpi slt, %18, %21 : vector<64x128xi32>
    %c0_5 = arith.constant 0 : index
    %23 = memref.load %arg2[%c0_5] : memref<6xf32, #tpu.memory_space<smem>>
    %c2 = arith.constant 2 : index
    %24 = memref.load %arg2[%c2] : memref<6xf32, #tpu.memory_space<smem>>
    %c4 = arith.constant 4 : index
    %25 = memref.load %arg2[%c4] : memref<6xf32, #tpu.memory_space<smem>>
    %26 = vector.broadcast %24 : f32 to vector<64x128xf32>
    %27 = vector.broadcast %25 : f32 to vector<64x128xf32>
    %28 = arith.select %22, %26, %27 : vector<64x128xi1>, vector<64x128xf32>
    %29 = vector.broadcast %23 : f32 to vector<64x128xf32>
    %30 = arith.select %20, %29, %28 : vector<64x128xi1>, vector<64x128xf32>
    %c1 = arith.constant 1 : index
    %31 = memref.load %arg2[%c1] : memref<6xf32, #tpu.memory_space<smem>>
    %c3 = arith.constant 3 : index
    %32 = memref.load %arg2[%c3] : memref<6xf32, #tpu.memory_space<smem>>
    %c5 = arith.constant 5 : index
    %33 = memref.load %arg2[%c5] : memref<6xf32, #tpu.memory_space<smem>>
    %34 = vector.broadcast %32 : f32 to vector<64x128xf32>
    %35 = vector.broadcast %33 : f32 to vector<64x128xf32>
    %36 = arith.select %22, %34, %35 : vector<64x128xi1>, vector<64x128xf32>
    %37 = vector.broadcast %31 : f32 to vector<64x128xf32>
    %38 = arith.select %20, %37, %36 : vector<64x128xi1>, vector<64x128xf32>
    %c0_6 = arith.constant 0 : index
    %c0_7 = arith.constant 0 : index
    %c0_8 = arith.constant 0 : index
    %39 = vector.load %arg3[%c0_6, %c0_7, %c0_8] : memref<21x64x128xf32, #tpu.memory_space<vmem>>, vector<1x64x128xf32>
    %40 = vector.shape_cast %39 : vector<1x64x128xf32> to vector<64x128xf32>
    %cst_9 = arith.constant 0.000000e+00 : f32
    %41 = vector.broadcast %cst_9 : f32 to vector<64x128xf32>
    %42 = arith.maximumf %40, %41 : vector<64x128xf32>
    %43 = arith.mulf %40, %4 : vector<64x128xf32>
    %44 = arith.subf %42, %43 : vector<64x128xf32>
    %45 = math.absf %40 : vector<64x128xf32>
    %cst_10 = arith.constant 0.000000e+00 : f32
    %46 = vector.broadcast %cst_10 : f32 to vector<64x128xf32>
    %47 = arith.subf %46, %45 : vector<64x128xf32>
    %48 = math.exp %47 : vector<64x128xf32>
    %cst_11 = arith.constant 1.000000e+00 : f32
    %49 = vector.broadcast %cst_11 : f32 to vector<64x128xf32>
    %50 = arith.addf %49, %48 : vector<64x128xf32>
    %51 = math.log %50 : vector<64x128xf32>
    %52 = arith.addf %44, %51 : vector<64x128xf32>
    %c1_12 = arith.constant 1 : index
    %c0_13 = arith.constant 0 : index
    %c0_14 = arith.constant 0 : index
    %53 = vector.load %arg3[%c1_12, %c0_13, %c0_14] : memref<21x64x128xf32, #tpu.memory_space<vmem>>, vector<1x64x128xf32>
    %54 = vector.shape_cast %53 : vector<1x64x128xf32> to vector<64x128xf32>
    %cst_15 = arith.constant 0.000000e+00 : f32
    %55 = vector.broadcast %cst_15 : f32 to vector<64x128xf32>
    %56 = arith.subf %55, %54 : vector<64x128xf32>
    %57 = math.exp %56 : vector<64x128xf32>
    %cst_16 = arith.constant 1.000000e+00 : f32
    %58 = vector.broadcast %cst_16 : f32 to vector<64x128xf32>
    %59 = arith.addf %58, %57 : vector<64x128xf32>
    %cst_17 = arith.constant 1.000000e+00 : f32
    %60 = vector.broadcast %cst_17 : f32 to vector<64x128xf32>
    %61 = arith.divf %60, %59 : vector<64x128xf32>
    %c2_18 = arith.constant 2 : index
    %c0_19 = arith.constant 0 : index
    %c0_20 = arith.constant 0 : index
    %62 = vector.load %arg3[%c2_18, %c0_19, %c0_20] : memref<21x64x128xf32, #tpu.memory_space<vmem>>, vector<1x64x128xf32>
    %63 = vector.shape_cast %62 : vector<1x64x128xf32> to vector<64x128xf32>
    %cst_21 = arith.constant 0.000000e+00 : f32
    %64 = vector.broadcast %cst_21 : f32 to vector<64x128xf32>
    %65 = arith.subf %64, %63 : vector<64x128xf32>
    %66 = math.exp %65 : vector<64x128xf32>
    %cst_22 = arith.constant 1.000000e+00 : f32
    %67 = vector.broadcast %cst_22 : f32 to vector<64x128xf32>
    %68 = arith.addf %67, %66 : vector<64x128xf32>
    %cst_23 = arith.constant 1.000000e+00 : f32
    %69 = vector.broadcast %cst_23 : f32 to vector<64x128xf32>
    %70 = arith.divf %69, %68 : vector<64x128xf32>
    %c3_24 = arith.constant 3 : index
    %c0_25 = arith.constant 0 : index
    %c0_26 = arith.constant 0 : index
    %71 = vector.load %arg3[%c3_24, %c0_25, %c0_26] : memref<21x64x128xf32, #tpu.memory_space<vmem>>, vector<1x64x128xf32>
    %72 = vector.shape_cast %71 : vector<1x64x128xf32> to vector<64x128xf32>
    %c4_27 = arith.constant 4 : index
    %c0_28 = arith.constant 0 : index
    %c0_29 = arith.constant 0 : index
    %73 = vector.load %arg3[%c4_27, %c0_28, %c0_29] : memref<21x64x128xf32, #tpu.memory_space<vmem>>, vector<1x64x128xf32>
    %74 = vector.shape_cast %73 : vector<1x64x128xf32> to vector<64x128xf32>
    %75 = math.exp %72 : vector<64x128xf32>
    %76 = arith.mulf %75, %30 : vector<64x128xf32>
    %77 = math.exp %74 : vector<64x128xf32>
    %78 = arith.mulf %77, %38 : vector<64x128xf32>
    %c1_30 = arith.constant 1 : index
    %c0_31 = arith.constant 0 : index
    %c0_32 = arith.constant 0 : index
    %79 = vector.load %arg4[%c1_30, %c0_31, %c0_32] : memref<6x64x128xf32, #tpu.memory_space<vmem>>, vector<1x64x128xf32>
    %80 = vector.shape_cast %79 : vector<1x64x128xf32> to vector<64x128xf32>
    %c2_33 = arith.constant 2 : index
    %c0_34 = arith.constant 0 : index
    %c0_35 = arith.constant 0 : index
    %81 = vector.load %arg4[%c2_33, %c0_34, %c0_35] : memref<6x64x128xf32, #tpu.memory_space<vmem>>, vector<1x64x128xf32>
    %82 = vector.shape_cast %81 : vector<1x64x128xf32> to vector<64x128xf32>
    %c3_36 = arith.constant 3 : index
    %c0_37 = arith.constant 0 : index
    %c0_38 = arith.constant 0 : index
    %83 = vector.load %arg4[%c3_36, %c0_37, %c0_38] : memref<6x64x128xf32, #tpu.memory_space<vmem>>, vector<1x64x128xf32>
    %84 = vector.shape_cast %83 : vector<1x64x128xf32> to vector<64x128xf32>
    %c4_39 = arith.constant 4 : index
    %c0_40 = arith.constant 0 : index
    %c0_41 = arith.constant 0 : index
    %85 = vector.load %arg4[%c4_39, %c0_40, %c0_41] : memref<6x64x128xf32, #tpu.memory_space<vmem>>, vector<1x64x128xf32>
    %86 = vector.shape_cast %85 : vector<1x64x128xf32> to vector<64x128xf32>
    %cst_42 = arith.constant 5.000000e-01 : f32
    %87 = vector.broadcast %cst_42 : f32 to vector<64x128xf32>
    %88 = arith.mulf %76, %87 : vector<64x128xf32>
    %89 = arith.subf %61, %88 : vector<64x128xf32>
    %cst_43 = arith.constant 5.000000e-01 : f32
    %90 = vector.broadcast %cst_43 : f32 to vector<64x128xf32>
    %91 = arith.mulf %76, %90 : vector<64x128xf32>
    %92 = arith.addf %61, %91 : vector<64x128xf32>
    %cst_44 = arith.constant 5.000000e-01 : f32
    %93 = vector.broadcast %cst_44 : f32 to vector<64x128xf32>
    %94 = arith.mulf %78, %93 : vector<64x128xf32>
    %95 = arith.subf %70, %94 : vector<64x128xf32>
    %cst_45 = arith.constant 5.000000e-01 : f32
    %96 = vector.broadcast %cst_45 : f32 to vector<64x128xf32>
    %97 = arith.mulf %78, %96 : vector<64x128xf32>
    %98 = arith.addf %70, %97 : vector<64x128xf32>
    %cst_46 = arith.constant 5.000000e-01 : f32
    %99 = vector.broadcast %cst_46 : f32 to vector<64x128xf32>
    %100 = arith.mulf %84, %99 : vector<64x128xf32>
    %101 = arith.subf %80, %100 : vector<64x128xf32>
    %cst_47 = arith.constant 5.000000e-01 : f32
    %102 = vector.broadcast %cst_47 : f32 to vector<64x128xf32>
    %103 = arith.mulf %84, %102 : vector<64x128xf32>
    %104 = arith.addf %80, %103 : vector<64x128xf32>
    %cst_48 = arith.constant 5.000000e-01 : f32
    %105 = vector.broadcast %cst_48 : f32 to vector<64x128xf32>
    %106 = arith.mulf %86, %105 : vector<64x128xf32>
    %107 = arith.subf %82, %106 : vector<64x128xf32>
    %cst_49 = arith.constant 5.000000e-01 : f32
    %108 = vector.broadcast %cst_49 : f32 to vector<64x128xf32>
    %109 = arith.mulf %86, %108 : vector<64x128xf32>
    %110 = arith.addf %82, %109 : vector<64x128xf32>
    %111 = arith.minimumf %92, %104 : vector<64x128xf32>
    %112 = arith.maximumf %89, %101 : vector<64x128xf32>
    %113 = arith.subf %111, %112 : vector<64x128xf32>
    %cst_50 = arith.constant 0.000000e+00 : f32
    %114 = vector.broadcast %cst_50 : f32 to vector<64x128xf32>
    %115 = arith.maximumf %113, %114 : vector<64x128xf32>
    %116 = arith.minimumf %98, %110 : vector<64x128xf32>
    %117 = arith.maximumf %95, %107 : vector<64x128xf32>
    %118 = arith.subf %116, %117 : vector<64x128xf32>
    %cst_51 = arith.constant 0.000000e+00 : f32
    %119 = vector.broadcast %cst_51 : f32 to vector<64x128xf32>
    %120 = arith.maximumf %118, %119 : vector<64x128xf32>
    %121 = arith.mulf %115, %120 : vector<64x128xf32>
    %122 = arith.subf %92, %89 : vector<64x128xf32>
    %123 = arith.subf %98, %95 : vector<64x128xf32>
    %124 = arith.mulf %122, %123 : vector<64x128xf32>
    %125 = math.absf %124 : vector<64x128xf32>
    %126 = arith.subf %104, %101 : vector<64x128xf32>
    %127 = arith.subf %110, %107 : vector<64x128xf32>
    %128 = arith.mulf %126, %127 : vector<64x128xf32>
    %129 = math.absf %128 : vector<64x128xf32>
    %130 = arith.addf %125, %129 : vector<64x128xf32>
    %131 = arith.subf %130, %121 : vector<64x128xf32>
    %cst_52 = arith.constant 9.99999997E-7 : f32
    %132 = vector.broadcast %cst_52 : f32 to vector<64x128xf32>
    %133 = arith.addf %131, %132 : vector<64x128xf32>
    %134 = tpu.reciprocal %133 {approx = true} : vector<64x128xf32> -> vector<64x128xf32>
    %135 = arith.mulf %121, %134 : vector<64x128xf32>
    %cst_53 = arith.constant 0.000000e+00 : f32
    %136 = vector.broadcast %cst_53 : f32 to vector<64x128xf32>
    %137 = arith.subf %136, %40 : vector<64x128xf32>
    %138 = math.exp %137 : vector<64x128xf32>
    %cst_54 = arith.constant 1.000000e+00 : f32
    %139 = vector.broadcast %cst_54 : f32 to vector<64x128xf32>
    %140 = arith.addf %139, %138 : vector<64x128xf32>
    %cst_55 = arith.constant 1.000000e+00 : f32
    %141 = vector.broadcast %cst_55 : f32 to vector<64x128xf32>
    %142 = arith.divf %141, %140 : vector<64x128xf32>
    %143 = arith.mulf %135, %4 : vector<64x128xf32>
    %144 = arith.subf %142, %143 : vector<64x128xf32>
    %145 = arith.mulf %144, %144 : vector<64x128xf32>
    %146 = arith.subf %61, %80 : vector<64x128xf32>
    %147 = arith.mulf %146, %146 : vector<64x128xf32>
    %148 = arith.subf %70, %82 : vector<64x128xf32>
    %149 = arith.mulf %148, %148 : vector<64x128xf32>
    %150 = arith.addf %147, %149 : vector<64x128xf32>
    %151 = arith.divf %84, %30 : vector<64x128xf32>
    %cst_56 = arith.constant 9.99999997E-7 : f32
    %152 = vector.broadcast %cst_56 : f32 to vector<64x128xf32>
    %153 = arith.addf %152, %151 : vector<64x128xf32>
    %154 = math.log %153 : vector<64x128xf32>
    %155 = arith.subf %72, %154 : vector<64x128xf32>
    %156 = arith.mulf %155, %155 : vector<64x128xf32>
    %157 = arith.addf %150, %156 : vector<64x128xf32>
    %158 = arith.divf %86, %38 : vector<64x128xf32>
    %cst_57 = arith.constant 9.99999997E-7 : f32
    %159 = vector.broadcast %cst_57 : f32 to vector<64x128xf32>
    %160 = arith.addf %159, %158 : vector<64x128xf32>
    %161 = math.log %160 : vector<64x128xf32>
    %162 = arith.subf %74, %161 : vector<64x128xf32>
    %163 = arith.mulf %162, %162 : vector<64x128xf32>
    %164 = arith.addf %157, %163 : vector<64x128xf32>
    %c5_58 = arith.constant 5 : index
    %c0_59 = arith.constant 0 : index
    %c0_60 = arith.constant 0 : index
    %165 = vector.load %arg4[%c5_58, %c0_59, %c0_60] : memref<6x64x128xf32, #tpu.memory_space<vmem>>, vector<1x64x128xf32>
    %166 = vector.shape_cast %165 : vector<1x64x128xf32> to vector<64x128xf32>
    %c5_61 = arith.constant 5 : index
    %c0_62 = arith.constant 0 : index
    %c0_63 = arith.constant 0 : index
    %167 = vector.load %arg3[%c5_61, %c0_62, %c0_63] : memref<21x64x128xf32, #tpu.memory_space<vmem>>, vector<1x64x128xf32>
    %168 = vector.shape_cast %167 : vector<1x64x128xf32> to vector<64x128xf32>
    %c6 = arith.constant 6 : index
    %c0_64 = arith.constant 0 : index
    %c0_65 = arith.constant 0 : index
    %169 = vector.load %arg3[%c6, %c0_64, %c0_65] : memref<21x64x128xf32, #tpu.memory_space<vmem>>, vector<1x64x128xf32>
    %170 = vector.shape_cast %169 : vector<1x64x128xf32> to vector<64x128xf32>
    %171 = arith.maximumf %168, %170 : vector<64x128xf32>
    %c7 = arith.constant 7 : index
    %c0_66 = arith.constant 0 : index
    %c0_67 = arith.constant 0 : index
    %172 = vector.load %arg3[%c7, %c0_66, %c0_67] : memref<21x64x128xf32, #tpu.memory_space<vmem>>, vector<1x64x128xf32>
    %173 = vector.shape_cast %172 : vector<1x64x128xf32> to vector<64x128xf32>
    %174 = arith.maximumf %171, %173 : vector<64x128xf32>
    %c8 = arith.constant 8 : index
    %c0_68 = arith.constant 0 : index
    %c0_69 = arith.constant 0 : index
    %175 = vector.load %arg3[%c8, %c0_68, %c0_69] : memref<21x64x128xf32, #tpu.memory_space<vmem>>, vector<1x64x128xf32>
    %176 = vector.shape_cast %175 : vector<1x64x128xf32> to vector<64x128xf32>
    %177 = arith.maximumf %174, %176 : vector<64x128xf32>
    %c9 = arith.constant 9 : index
    %c0_70 = arith.constant 0 : index
    %c0_71 = arith.constant 0 : index
    %178 = vector.load %arg3[%c9, %c0_70, %c0_71] : memref<21x64x128xf32, #tpu.memory_space<vmem>>, vector<1x64x128xf32>
    %179 = vector.shape_cast %178 : vector<1x64x128xf32> to vector<64x128xf32>
    %180 = arith.maximumf %177, %179 : vector<64x128xf32>
    %c10 = arith.constant 10 : index
    %c0_72 = arith.constant 0 : index
    %c0_73 = arith.constant 0 : index
    %181 = vector.load %arg3[%c10, %c0_72, %c0_73] : memref<21x64x128xf32, #tpu.memory_space<vmem>>, vector<1x64x128xf32>
    %182 = vector.shape_cast %181 : vector<1x64x128xf32> to vector<64x128xf32>
    %183 = arith.maximumf %180, %182 : vector<64x128xf32>
    %c11 = arith.constant 11 : index
    %c0_74 = arith.constant 0 : index
    %c0_75 = arith.constant 0 : index
    %184 = vector.load %arg3[%c11, %c0_74, %c0_75] : memref<21x64x128xf32, #tpu.memory_space<vmem>>, vector<1x64x128xf32>
    %185 = vector.shape_cast %184 : vector<1x64x128xf32> to vector<64x128xf32>
    %186 = arith.maximumf %183, %185 : vector<64x128xf32>
    %c12 = arith.constant 12 : index
    %c0_76 = arith.constant 0 : index
    %c0_77 = arith.constant 0 : index
    %187 = vector.load %arg3[%c12, %c0_76, %c0_77] : memref<21x64x128xf32, #tpu.memory_space<vmem>>, vector<1x64x128xf32>
    %188 = vector.shape_cast %187 : vector<1x64x128xf32> to vector<64x128xf32>
    %189 = arith.maximumf %186, %188 : vector<64x128xf32>
    %c13 = arith.constant 13 : index
    %c0_78 = arith.constant 0 : index
    %c0_79 = arith.constant 0 : index
    %190 = vector.load %arg3[%c13, %c0_78, %c0_79] : memref<21x64x128xf32, #tpu.memory_space<vmem>>, vector<1x64x128xf32>
    %191 = vector.shape_cast %190 : vector<1x64x128xf32> to vector<64x128xf32>
    %192 = arith.maximumf %189, %191 : vector<64x128xf32>
    %c14 = arith.constant 14 : index
    %c0_80 = arith.constant 0 : index
    %c0_81 = arith.constant 0 : index
    %193 = vector.load %arg3[%c14, %c0_80, %c0_81] : memref<21x64x128xf32, #tpu.memory_space<vmem>>, vector<1x64x128xf32>
    %194 = vector.shape_cast %193 : vector<1x64x128xf32> to vector<64x128xf32>
    %195 = arith.maximumf %192, %194 : vector<64x128xf32>
    %c15 = arith.constant 15 : index
    %c0_82 = arith.constant 0 : index
    %c0_83 = arith.constant 0 : index
    %196 = vector.load %arg3[%c15, %c0_82, %c0_83] : memref<21x64x128xf32, #tpu.memory_space<vmem>>, vector<1x64x128xf32>
    %197 = vector.shape_cast %196 : vector<1x64x128xf32> to vector<64x128xf32>
    %198 = arith.maximumf %195, %197 : vector<64x128xf32>
    %c16 = arith.constant 16 : index
    %c0_84 = arith.constant 0 : index
    %c0_85 = arith.constant 0 : index
    %199 = vector.load %arg3[%c16, %c0_84, %c0_85] : memref<21x64x128xf32, #tpu.memory_space<vmem>>, vector<1x64x128xf32>
    %200 = vector.shape_cast %199 : vector<1x64x128xf32> to vector<64x128xf32>
    %201 = arith.maximumf %198, %200 : vector<64x128xf32>
    %c17 = arith.constant 17 : index
    %c0_86 = arith.constant 0 : index
    %c0_87 = arith.constant 0 : index
    %202 = vector.load %arg3[%c17, %c0_86, %c0_87] : memref<21x64x128xf32, #tpu.memory_space<vmem>>, vector<1x64x128xf32>
    %203 = vector.shape_cast %202 : vector<1x64x128xf32> to vector<64x128xf32>
    %204 = arith.maximumf %201, %203 : vector<64x128xf32>
    %c18 = arith.constant 18 : index
    %c0_88 = arith.constant 0 : index
    %c0_89 = arith.constant 0 : index
    %205 = vector.load %arg3[%c18, %c0_88, %c0_89] : memref<21x64x128xf32, #tpu.memory_space<vmem>>, vector<1x64x128xf32>
    %206 = vector.shape_cast %205 : vector<1x64x128xf32> to vector<64x128xf32>
    %207 = arith.maximumf %204, %206 : vector<64x128xf32>
    %c19 = arith.constant 19 : index
    %c0_90 = arith.constant 0 : index
    %c0_91 = arith.constant 0 : index
    %208 = vector.load %arg3[%c19, %c0_90, %c0_91] : memref<21x64x128xf32, #tpu.memory_space<vmem>>, vector<1x64x128xf32>
    %209 = vector.shape_cast %208 : vector<1x64x128xf32> to vector<64x128xf32>
    %210 = arith.maximumf %207, %209 : vector<64x128xf32>
    %c20 = arith.constant 20 : index
    %c0_92 = arith.constant 0 : index
    %c0_93 = arith.constant 0 : index
    %211 = vector.load %arg3[%c20, %c0_92, %c0_93] : memref<21x64x128xf32, #tpu.memory_space<vmem>>, vector<1x64x128xf32>
    %212 = vector.shape_cast %211 : vector<1x64x128xf32> to vector<64x128xf32>
    %213 = arith.maximumf %210, %212 : vector<64x128xf32>
    %cst_94 = arith.constant 0.000000e+00 : f32
    %214 = vector.broadcast %cst_94 : f32 to vector<64x128xf32>
    %cst_95 = arith.constant 0.000000e+00 : f32
    %215 = vector.broadcast %cst_95 : f32 to vector<64x128xf32>
    %c5_96 = arith.constant 5 : index
    %c0_97 = arith.constant 0 : index
    %c0_98 = arith.constant 0 : index
    %216 = vector.load %arg3[%c5_96, %c0_97, %c0_98] : memref<21x64x128xf32, #tpu.memory_space<vmem>>, vector<1x64x128xf32>
    %217 = vector.shape_cast %216 : vector<1x64x128xf32> to vector<64x128xf32>
    %218 = arith.subf %217, %213 : vector<64x128xf32>
    %219 = math.exp %218 : vector<64x128xf32>
    %220 = arith.addf %214, %219 : vector<64x128xf32>
    %cst_99 = arith.constant 0.000000e+00 : f32
    %221 = vector.broadcast %cst_99 : f32 to vector<64x128xf32>
    %222 = arith.cmpf oeq, %166, %221 : vector<64x128xf32>
    %cst_100 = arith.constant 0.000000e+00 : f32
    %223 = vector.broadcast %cst_100 : f32 to vector<64x128xf32>
    %224 = arith.select %222, %217, %223 : vector<64x128xi1>, vector<64x128xf32>
    %225 = arith.addf %215, %224 : vector<64x128xf32>
    %c6_101 = arith.constant 6 : index
    %c0_102 = arith.constant 0 : index
    %c0_103 = arith.constant 0 : index
    %226 = vector.load %arg3[%c6_101, %c0_102, %c0_103] : memref<21x64x128xf32, #tpu.memory_space<vmem>>, vector<1x64x128xf32>
    %227 = vector.shape_cast %226 : vector<1x64x128xf32> to vector<64x128xf32>
    %228 = arith.subf %227, %213 : vector<64x128xf32>
    %229 = math.exp %228 : vector<64x128xf32>
    %230 = arith.addf %220, %229 : vector<64x128xf32>
    %cst_104 = arith.constant 1.000000e+00 : f32
    %231 = vector.broadcast %cst_104 : f32 to vector<64x128xf32>
    %232 = arith.cmpf oeq, %166, %231 : vector<64x128xf32>
    %cst_105 = arith.constant 0.000000e+00 : f32
    %233 = vector.broadcast %cst_105 : f32 to vector<64x128xf32>
    %234 = arith.select %232, %227, %233 : vector<64x128xi1>, vector<64x128xf32>
    %235 = arith.addf %225, %234 : vector<64x128xf32>
    %c7_106 = arith.constant 7 : index
    %c0_107 = arith.constant 0 : index
    %c0_108 = arith.constant 0 : index
    %236 = vector.load %arg3[%c7_106, %c0_107, %c0_108] : memref<21x64x128xf32, #tpu.memory_space<vmem>>, vector<1x64x128xf32>
    %237 = vector.shape_cast %236 : vector<1x64x128xf32> to vector<64x128xf32>
    %238 = arith.subf %237, %213 : vector<64x128xf32>
    %239 = math.exp %238 : vector<64x128xf32>
    %240 = arith.addf %230, %239 : vector<64x128xf32>
    %cst_109 = arith.constant 2.000000e+00 : f32
    %241 = vector.broadcast %cst_109 : f32 to vector<64x128xf32>
    %242 = arith.cmpf oeq, %166, %241 : vector<64x128xf32>
    %cst_110 = arith.constant 0.000000e+00 : f32
    %243 = vector.broadcast %cst_110 : f32 to vector<64x128xf32>
    %244 = arith.select %242, %237, %243 : vector<64x128xi1>, vector<64x128xf32>
    %245 = arith.addf %235, %244 : vector<64x128xf32>
    %c8_111 = arith.constant 8 : index
    %c0_112 = arith.constant 0 : index
    %c0_113 = arith.constant 0 : index
    %246 = vector.load %arg3[%c8_111, %c0_112, %c0_113] : memref<21x64x128xf32, #tpu.memory_space<vmem>>, vector<1x64x128xf32>
    %247 = vector.shape_cast %246 : vector<1x64x128xf32> to vector<64x128xf32>
    %248 = arith.subf %247, %213 : vector<64x128xf32>
    %249 = math.exp %248 : vector<64x128xf32>
    %250 = arith.addf %240, %249 : vector<64x128xf32>
    %cst_114 = arith.constant 3.000000e+00 : f32
    %251 = vector.broadcast %cst_114 : f32 to vector<64x128xf32>
    %252 = arith.cmpf oeq, %166, %251 : vector<64x128xf32>
    %cst_115 = arith.constant 0.000000e+00 : f32
    %253 = vector.broadcast %cst_115 : f32 to vector<64x128xf32>
    %254 = arith.select %252, %247, %253 : vector<64x128xi1>, vector<64x128xf32>
    %255 = arith.addf %245, %254 : vector<64x128xf32>
    %c9_116 = arith.constant 9 : index
    %c0_117 = arith.constant 0 : index
    %c0_118 = arith.constant 0 : index
    %256 = vector.load %arg3[%c9_116, %c0_117, %c0_118] : memref<21x64x128xf32, #tpu.memory_space<vmem>>, vector<1x64x128xf32>
    %257 = vector.shape_cast %256 : vector<1x64x128xf32> to vector<64x128xf32>
    %258 = arith.subf %257, %213 : vector<64x128xf32>
    %259 = math.exp %258 : vector<64x128xf32>
    %260 = arith.addf %250, %259 : vector<64x128xf32>
    %cst_119 = arith.constant 4.000000e+00 : f32
    %261 = vector.broadcast %cst_119 : f32 to vector<64x128xf32>
    %262 = arith.cmpf oeq, %166, %261 : vector<64x128xf32>
    %cst_120 = arith.constant 0.000000e+00 : f32
    %263 = vector.broadcast %cst_120 : f32 to vector<64x128xf32>
    %264 = arith.select %262, %257, %263 : vector<64x128xi1>, vector<64x128xf32>
    %265 = arith.addf %255, %264 : vector<64x128xf32>
    %c10_121 = arith.constant 10 : index
    %c0_122 = arith.constant 0 : index
    %c0_123 = arith.constant 0 : index
    %266 = vector.load %arg3[%c10_121, %c0_122, %c0_123] : memref<21x64x128xf32, #tpu.memory_space<vmem>>, vector<1x64x128xf32>
    %267 = vector.shape_cast %266 : vector<1x64x128xf32> to vector<64x128xf32>
    %268 = arith.subf %267, %213 : vector<64x128xf32>
    %269 = math.exp %268 : vector<64x128xf32>
    %270 = arith.addf %260, %269 : vector<64x128xf32>
    %cst_124 = arith.constant 5.000000e+00 : f32
    %271 = vector.broadcast %cst_124 : f32 to vector<64x128xf32>
    %272 = arith.cmpf oeq, %166, %271 : vector<64x128xf32>
    %cst_125 = arith.constant 0.000000e+00 : f32
    %273 = vector.broadcast %cst_125 : f32 to vector<64x128xf32>
    %274 = arith.select %272, %267, %273 : vector<64x128xi1>, vector<64x128xf32>
    %275 = arith.addf %265, %274 : vector<64x128xf32>
    %c11_126 = arith.constant 11 : index
    %c0_127 = arith.constant 0 : index
    %c0_128 = arith.constant 0 : index
    %276 = vector.load %arg3[%c11_126, %c0_127, %c0_128] : memref<21x64x128xf32, #tpu.memory_space<vmem>>, vector<1x64x128xf32>
    %277 = vector.shape_cast %276 : vector<1x64x128xf32> to vector<64x128xf32>
    %278 = arith.subf %277, %213 : vector<64x128xf32>
    %279 = math.exp %278 : vector<64x128xf32>
    %280 = arith.addf %270, %279 : vector<64x128xf32>
    %cst_129 = arith.constant 6.000000e+00 : f32
    %281 = vector.broadcast %cst_129 : f32 to vector<64x128xf32>
    %282 = arith.cmpf oeq, %166, %281 : vector<64x128xf32>
    %cst_130 = arith.constant 0.000000e+00 : f32
    %283 = vector.broadcast %cst_130 : f32 to vector<64x128xf32>
    %284 = arith.select %282, %277, %283 : vector<64x128xi1>, vector<64x128xf32>
    %285 = arith.addf %275, %284 : vector<64x128xf32>
    %c12_131 = arith.constant 12 : index
    %c0_132 = arith.constant 0 : index
    %c0_133 = arith.constant 0 : index
    %286 = vector.load %arg3[%c12_131, %c0_132, %c0_133] : memref<21x64x128xf32, #tpu.memory_space<vmem>>, vector<1x64x128xf32>
    %287 = vector.shape_cast %286 : vector<1x64x128xf32> to vector<64x128xf32>
    %288 = arith.subf %287, %213 : vector<64x128xf32>
    %289 = math.exp %288 : vector<64x128xf32>
    %290 = arith.addf %280, %289 : vector<64x128xf32>
    %cst_134 = arith.constant 7.000000e+00 : f32
    %291 = vector.broadcast %cst_134 : f32 to vector<64x128xf32>
    %292 = arith.cmpf oeq, %166, %291 : vector<64x128xf32>
    %cst_135 = arith.constant 0.000000e+00 : f32
    %293 = vector.broadcast %cst_135 : f32 to vector<64x128xf32>
    %294 = arith.select %292, %287, %293 : vector<64x128xi1>, vector<64x128xf32>
    %295 = arith.addf %285, %294 : vector<64x128xf32>
    %c13_136 = arith.constant 13 : index
    %c0_137 = arith.constant 0 : index
    %c0_138 = arith.constant 0 : index
    %296 = vector.load %arg3[%c13_136, %c0_137, %c0_138] : memref<21x64x128xf32, #tpu.memory_space<vmem>>, vector<1x64x128xf32>
    %297 = vector.shape_cast %296 : vector<1x64x128xf32> to vector<64x128xf32>
    %298 = arith.subf %297, %213 : vector<64x128xf32>
    %299 = math.exp %298 : vector<64x128xf32>
    %300 = arith.addf %290, %299 : vector<64x128xf32>
    %cst_139 = arith.constant 8.000000e+00 : f32
    %301 = vector.broadcast %cst_139 : f32 to vector<64x128xf32>
    %302 = arith.cmpf oeq, %166, %301 : vector<64x128xf32>
    %cst_140 = arith.constant 0.000000e+00 : f32
    %303 = vector.broadcast %cst_140 : f32 to vector<64x128xf32>
    %304 = arith.select %302, %297, %303 : vector<64x128xi1>, vector<64x128xf32>
    %305 = arith.addf %295, %304 : vector<64x128xf32>
    %c14_141 = arith.constant 14 : index
    %c0_142 = arith.constant 0 : index
    %c0_143 = arith.constant 0 : index
    %306 = vector.load %arg3[%c14_141, %c0_142, %c0_143] : memref<21x64x128xf32, #tpu.memory_space<vmem>>, vector<1x64x128xf32>
    %307 = vector.shape_cast %306 : vector<1x64x128xf32> to vector<64x128xf32>
    %308 = arith.subf %307, %213 : vector<64x128xf32>
    %309 = math.exp %308 : vector<64x128xf32>
    %310 = arith.addf %300, %309 : vector<64x128xf32>
    %cst_144 = arith.constant 9.000000e+00 : f32
    %311 = vector.broadcast %cst_144 : f32 to vector<64x128xf32>
    %312 = arith.cmpf oeq, %166, %311 : vector<64x128xf32>
    %cst_145 = arith.constant 0.000000e+00 : f32
    %313 = vector.broadcast %cst_145 : f32 to vector<64x128xf32>
    %314 = arith.select %312, %307, %313 : vector<64x128xi1>, vector<64x128xf32>
    %315 = arith.addf %305, %314 : vector<64x128xf32>
    %c15_146 = arith.constant 15 : index
    %c0_147 = arith.constant 0 : index
    %c0_148 = arith.constant 0 : index
    %316 = vector.load %arg3[%c15_146, %c0_147, %c0_148] : memref<21x64x128xf32, #tpu.memory_space<vmem>>, vector<1x64x128xf32>
    %317 = vector.shape_cast %316 : vector<1x64x128xf32> to vector<64x128xf32>
    %318 = arith.subf %317, %213 : vector<64x128xf32>
    %319 = math.exp %318 : vector<64x128xf32>
    %320 = arith.addf %310, %319 : vector<64x128xf32>
    %cst_149 = arith.constant 1.000000e+01 : f32
    %321 = vector.broadcast %cst_149 : f32 to vector<64x128xf32>
    %322 = arith.cmpf oeq, %166, %321 : vector<64x128xf32>
    %cst_150 = arith.constant 0.000000e+00 : f32
    %323 = vector.broadcast %cst_150 : f32 to vector<64x128xf32>
    %324 = arith.select %322, %317, %323 : vector<64x128xi1>, vector<64x128xf32>
    %325 = arith.addf %315, %324 : vector<64x128xf32>
    %c16_151 = arith.constant 16 : index
    %c0_152 = arith.constant 0 : index
    %c0_153 = arith.constant 0 : index
    %326 = vector.load %arg3[%c16_151, %c0_152, %c0_153] : memref<21x64x128xf32, #tpu.memory_space<vmem>>, vector<1x64x128xf32>
    %327 = vector.shape_cast %326 : vector<1x64x128xf32> to vector<64x128xf32>
    %328 = arith.subf %327, %213 : vector<64x128xf32>
    %329 = math.exp %328 : vector<64x128xf32>
    %330 = arith.addf %320, %329 : vector<64x128xf32>
    %cst_154 = arith.constant 1.100000e+01 : f32
    %331 = vector.broadcast %cst_154 : f32 to vector<64x128xf32>
    %332 = arith.cmpf oeq, %166, %331 : vector<64x128xf32>
    %cst_155 = arith.constant 0.000000e+00 : f32
    %333 = vector.broadcast %cst_155 : f32 to vector<64x128xf32>
    %334 = arith.select %332, %327, %333 : vector<64x128xi1>, vector<64x128xf32>
    %335 = arith.addf %325, %334 : vector<64x128xf32>
    %c17_156 = arith.constant 17 : index
    %c0_157 = arith.constant 0 : index
    %c0_158 = arith.constant 0 : index
    %336 = vector.load %arg3[%c17_156, %c0_157, %c0_158] : memref<21x64x128xf32, #tpu.memory_space<vmem>>, vector<1x64x128xf32>
    %337 = vector.shape_cast %336 : vector<1x64x128xf32> to vector<64x128xf32>
    %338 = arith.subf %337, %213 : vector<64x128xf32>
    %339 = math.exp %338 : vector<64x128xf32>
    %340 = arith.addf %330, %339 : vector<64x128xf32>
    %cst_159 = arith.constant 1.200000e+01 : f32
    %341 = vector.broadcast %cst_159 : f32 to vector<64x128xf32>
    %342 = arith.cmpf oeq, %166, %341 : vector<64x128xf32>
    %cst_160 = arith.constant 0.000000e+00 : f32
    %343 = vector.broadcast %cst_160 : f32 to vector<64x128xf32>
    %344 = arith.select %342, %337, %343 : vector<64x128xi1>, vector<64x128xf32>
    %345 = arith.addf %335, %344 : vector<64x128xf32>
    %c18_161 = arith.constant 18 : index
    %c0_162 = arith.constant 0 : index
    %c0_163 = arith.constant 0 : index
    %346 = vector.load %arg3[%c18_161, %c0_162, %c0_163] : memref<21x64x128xf32, #tpu.memory_space<vmem>>, vector<1x64x128xf32>
    %347 = vector.shape_cast %346 : vector<1x64x128xf32> to vector<64x128xf32>
    %348 = arith.subf %347, %213 : vector<64x128xf32>
    %349 = math.exp %348 : vector<64x128xf32>
    %350 = arith.addf %340, %349 : vector<64x128xf32>
    %cst_164 = arith.constant 1.300000e+01 : f32
    %351 = vector.broadcast %cst_164 : f32 to vector<64x128xf32>
    %352 = arith.cmpf oeq, %166, %351 : vector<64x128xf32>
    %cst_165 = arith.constant 0.000000e+00 : f32
    %353 = vector.broadcast %cst_165 : f32 to vector<64x128xf32>
    %354 = arith.select %352, %347, %353 : vector<64x128xi1>, vector<64x128xf32>
    %355 = arith.addf %345, %354 : vector<64x128xf32>
    %c19_166 = arith.constant 19 : index
    %c0_167 = arith.constant 0 : index
    %c0_168 = arith.constant 0 : index
    %356 = vector.load %arg3[%c19_166, %c0_167, %c0_168] : memref<21x64x128xf32, #tpu.memory_space<vmem>>, vector<1x64x128xf32>
    %357 = vector.shape_cast %356 : vector<1x64x128xf32> to vector<64x128xf32>
    %358 = arith.subf %357, %213 : vector<64x128xf32>
    %359 = math.exp %358 : vector<64x128xf32>
    %360 = arith.addf %350, %359 : vector<64x128xf32>
    %cst_169 = arith.constant 1.400000e+01 : f32
    %361 = vector.broadcast %cst_169 : f32 to vector<64x128xf32>
    %362 = arith.cmpf oeq, %166, %361 : vector<64x128xf32>
    %cst_170 = arith.constant 0.000000e+00 : f32
    %363 = vector.broadcast %cst_170 : f32 to vector<64x128xf32>
    %364 = arith.select %362, %357, %363 : vector<64x128xi1>, vector<64x128xf32>
    %365 = arith.addf %355, %364 : vector<64x128xf32>
    %c20_171 = arith.constant 20 : index
    %c0_172 = arith.constant 0 : index
    %c0_173 = arith.constant 0 : index
    %366 = vector.load %arg3[%c20_171, %c0_172, %c0_173] : memref<21x64x128xf32, #tpu.memory_space<vmem>>, vector<1x64x128xf32>
    %367 = vector.shape_cast %366 : vector<1x64x128xf32> to vector<64x128xf32>
    %368 = arith.subf %367, %213 : vector<64x128xf32>
    %369 = math.exp %368 : vector<64x128xf32>
    %370 = arith.addf %360, %369 : vector<64x128xf32>
    %cst_174 = arith.constant 1.500000e+01 : f32
    %371 = vector.broadcast %cst_174 : f32 to vector<64x128xf32>
    %372 = arith.cmpf oeq, %166, %371 : vector<64x128xf32>
    %cst_175 = arith.constant 0.000000e+00 : f32
    %373 = vector.broadcast %cst_175 : f32 to vector<64x128xf32>
    %374 = arith.select %372, %367, %373 : vector<64x128xi1>, vector<64x128xf32>
    %375 = arith.addf %365, %374 : vector<64x128xf32>
    %376 = math.log %370 : vector<64x128xf32>
    %377 = arith.addf %213, %376 : vector<64x128xf32>
    %378 = arith.subf %377, %375 : vector<64x128xf32>
    %cst_176 = arith.constant 0.000000e+00 : f32
    %379 = vector.broadcast %cst_176 : f32 to vector<64x128xf32>
    %cst_177 = arith.constant 1.000000e+00 : f32
    %380 = vector.broadcast %cst_177 : f32 to vector<64x128xf32>
    %c0_178 = arith.constant 0 : index
    %c0_179 = arith.constant 0 : index
    %381 = vector.load %arg6[%c0_178, %c0_179] : memref<8x128xf32, #tpu.memory_space<vmem>>, vector<8x128xf32>
    %382 = arith.select %8, %52, %379 : vector<64x128xi1>, vector<64x128xf32>
    %383 = vector.extract_strided_slice %382 {offsets = [0, 0], sizes = [8, 128], strides = [1, 1]} : vector<64x128xf32> to vector<8x128xf32>
    %384 = vector.extract_strided_slice %382 {offsets = [8, 0], sizes = [8, 128], strides = [1, 1]} : vector<64x128xf32> to vector<8x128xf32>
    %385 = arith.addf %383, %384 : vector<8x128xf32>
    %386 = vector.extract_strided_slice %382 {offsets = [16, 0], sizes = [8, 128], strides = [1, 1]} : vector<64x128xf32> to vector<8x128xf32>
    %387 = arith.addf %385, %386 : vector<8x128xf32>
    %388 = vector.extract_strided_slice %382 {offsets = [24, 0], sizes = [8, 128], strides = [1, 1]} : vector<64x128xf32> to vector<8x128xf32>
    %389 = arith.addf %387, %388 : vector<8x128xf32>
    %390 = vector.extract_strided_slice %382 {offsets = [32, 0], sizes = [8, 128], strides = [1, 1]} : vector<64x128xf32> to vector<8x128xf32>
    %391 = arith.addf %389, %390 : vector<8x128xf32>
    %392 = vector.extract_strided_slice %382 {offsets = [40, 0], sizes = [8, 128], strides = [1, 1]} : vector<64x128xf32> to vector<8x128xf32>
    %393 = arith.addf %391, %392 : vector<8x128xf32>
    %394 = vector.extract_strided_slice %382 {offsets = [48, 0], sizes = [8, 128], strides = [1, 1]} : vector<64x128xf32> to vector<8x128xf32>
    %395 = arith.addf %393, %394 : vector<8x128xf32>
    %396 = vector.extract_strided_slice %382 {offsets = [56, 0], sizes = [8, 128], strides = [1, 1]} : vector<64x128xf32> to vector<8x128xf32>
    %397 = arith.addf %395, %396 : vector<8x128xf32>
    %398 = arith.addf %381, %397 : vector<8x128xf32>
    %c0_180 = arith.constant 0 : index
    %c0_181 = arith.constant 0 : index
    %399 = vector.load %arg6[%c0_180, %c0_181] : memref<8x128xf32, #tpu.memory_space<vmem>>, vector<8x128xf32>
    tpu.vector_store %arg6[%c0_180, %c0_181], %398 {strides = array<i32>} : memref<8x128xf32, #tpu.memory_space<vmem>>, vector<8x128xf32>,
    %c0_182 = arith.constant 0 : index
    %c0_183 = arith.constant 0 : index
    %400 = vector.load %arg7[%c0_182, %c0_183] : memref<8x128xf32, #tpu.memory_space<vmem>>, vector<8x128xf32>
    %401 = arith.select %8, %380, %379 : vector<64x128xi1>, vector<64x128xf32>
    %402 = vector.extract_strided_slice %401 {offsets = [0, 0], sizes = [8, 128], strides = [1, 1]} : vector<64x128xf32> to vector<8x128xf32>
    %403 = vector.extract_strided_slice %401 {offsets = [8, 0], sizes = [8, 128], strides = [1, 1]} : vector<64x128xf32> to vector<8x128xf32>
    %404 = arith.addf %402, %403 : vector<8x128xf32>
    %405 = vector.extract_strided_slice %401 {offsets = [16, 0], sizes = [8, 128], strides = [1, 1]} : vector<64x128xf32> to vector<8x128xf32>
    %406 = arith.addf %404, %405 : vector<8x128xf32>
    %407 = vector.extract_strided_slice %401 {offsets = [24, 0], sizes = [8, 128], strides = [1, 1]} : vector<64x128xf32> to vector<8x128xf32>
    %408 = arith.addf %406, %407 : vector<8x128xf32>
    %409 = vector.extract_strided_slice %401 {offsets = [32, 0], sizes = [8, 128], strides = [1, 1]} : vector<64x128xf32> to vector<8x128xf32>
    %410 = arith.addf %408, %409 : vector<8x128xf32>
    %411 = vector.extract_strided_slice %401 {offsets = [40, 0], sizes = [8, 128], strides = [1, 1]} : vector<64x128xf32> to vector<8x128xf32>
    %412 = arith.addf %410, %411 : vector<8x128xf32>
    %413 = vector.extract_strided_slice %401 {offsets = [48, 0], sizes = [8, 128], strides = [1, 1]} : vector<64x128xf32> to vector<8x128xf32>
    %414 = arith.addf %412, %413 : vector<8x128xf32>
    %415 = vector.extract_strided_slice %401 {offsets = [56, 0], sizes = [8, 128], strides = [1, 1]} : vector<64x128xf32> to vector<8x128xf32>
    %416 = arith.addf %414, %415 : vector<8x128xf32>
    %417 = arith.addf %400, %416 : vector<8x128xf32>
    %c0_184 = arith.constant 0 : index
    %c0_185 = arith.constant 0 : index
    %418 = vector.load %arg7[%c0_184, %c0_185] : memref<8x128xf32, #tpu.memory_space<vmem>>, vector<8x128xf32>
    tpu.vector_store %arg7[%c0_184, %c0_185], %417 {strides = array<i32>} : memref<8x128xf32, #tpu.memory_space<vmem>>, vector<8x128xf32>,
    %c0_186 = arith.constant 0 : index
    %c0_187 = arith.constant 0 : index
    %419 = vector.load %arg8[%c0_186, %c0_187] : memref<8x128xf32, #tpu.memory_space<vmem>>, vector<8x128xf32>
    %420 = arith.select %6, %145, %379 : vector<64x128xi1>, vector<64x128xf32>
    %421 = vector.extract_strided_slice %420 {offsets = [0, 0], sizes = [8, 128], strides = [1, 1]} : vector<64x128xf32> to vector<8x128xf32>
    %422 = vector.extract_strided_slice %420 {offsets = [8, 0], sizes = [8, 128], strides = [1, 1]} : vector<64x128xf32> to vector<8x128xf32>
    %423 = arith.addf %421, %422 : vector<8x128xf32>
    %424 = vector.extract_strided_slice %420 {offsets = [16, 0], sizes = [8, 128], strides = [1, 1]} : vector<64x128xf32> to vector<8x128xf32>
    %425 = arith.addf %423, %424 : vector<8x128xf32>
    %426 = vector.extract_strided_slice %420 {offsets = [24, 0], sizes = [8, 128], strides = [1, 1]} : vector<64x128xf32> to vector<8x128xf32>
    %427 = arith.addf %425, %426 : vector<8x128xf32>
    %428 = vector.extract_strided_slice %420 {offsets = [32, 0], sizes = [8, 128], strides = [1, 1]} : vector<64x128xf32> to vector<8x128xf32>
    %429 = arith.addf %427, %428 : vector<8x128xf32>
    %430 = vector.extract_strided_slice %420 {offsets = [40, 0], sizes = [8, 128], strides = [1, 1]} : vector<64x128xf32> to vector<8x128xf32>
    %431 = arith.addf %429, %430 : vector<8x128xf32>
    %432 = vector.extract_strided_slice %420 {offsets = [48, 0], sizes = [8, 128], strides = [1, 1]} : vector<64x128xf32> to vector<8x128xf32>
    %433 = arith.addf %431, %432 : vector<8x128xf32>
    %434 = vector.extract_strided_slice %420 {offsets = [56, 0], sizes = [8, 128], strides = [1, 1]} : vector<64x128xf32> to vector<8x128xf32>
    %435 = arith.addf %433, %434 : vector<8x128xf32>
    %436 = arith.addf %419, %435 : vector<8x128xf32>
    %c0_188 = arith.constant 0 : index
    %c0_189 = arith.constant 0 : index
    %437 = vector.load %arg8[%c0_188, %c0_189] : memref<8x128xf32, #tpu.memory_space<vmem>>, vector<8x128xf32>
    tpu.vector_store %arg8[%c0_188, %c0_189], %436 {strides = array<i32>} : memref<8x128xf32, #tpu.memory_space<vmem>>, vector<8x128xf32>,
    %c0_190 = arith.constant 0 : index
    %c0_191 = arith.constant 0 : index
    %438 = vector.load %arg9[%c0_190, %c0_191] : memref<8x128xf32, #tpu.memory_space<vmem>>, vector<8x128xf32>
    %439 = arith.select %6, %380, %379 : vector<64x128xi1>, vector<64x128xf32>
    %440 = vector.extract_strided_slice %439 {offsets = [0, 0], sizes = [8, 128], strides = [1, 1]} : vector<64x128xf32> to vector<8x128xf32>
    %441 = vector.extract_strided_slice %439 {offsets = [8, 0], sizes = [8, 128], strides = [1, 1]} : vector<64x128xf32> to vector<8x128xf32>
    %442 = arith.addf %440, %441 : vector<8x128xf32>
    %443 = vector.extract_strided_slice %439 {offsets = [16, 0], sizes = [8, 128], strides = [1, 1]} : vector<64x128xf32> to vector<8x128xf32>
    %444 = arith.addf %442, %443 : vector<8x128xf32>
    %445 = vector.extract_strided_slice %439 {offsets = [24, 0], sizes = [8, 128], strides = [1, 1]} : vector<64x128xf32> to vector<8x128xf32>
    %446 = arith.addf %444, %445 : vector<8x128xf32>
    %447 = vector.extract_strided_slice %439 {offsets = [32, 0], sizes = [8, 128], strides = [1, 1]} : vector<64x128xf32> to vector<8x128xf32>
    %448 = arith.addf %446, %447 : vector<8x128xf32>
    %449 = vector.extract_strided_slice %439 {offsets = [40, 0], sizes = [8, 128], strides = [1, 1]} : vector<64x128xf32> to vector<8x128xf32>
    %450 = arith.addf %448, %449 : vector<8x128xf32>
    %451 = vector.extract_strided_slice %439 {offsets = [48, 0], sizes = [8, 128], strides = [1, 1]} : vector<64x128xf32> to vector<8x128xf32>
    %452 = arith.addf %450, %451 : vector<8x128xf32>
    %453 = vector.extract_strided_slice %439 {offsets = [56, 0], sizes = [8, 128], strides = [1, 1]} : vector<64x128xf32> to vector<8x128xf32>
    %454 = arith.addf %452, %453 : vector<8x128xf32>
    %455 = arith.addf %438, %454 : vector<8x128xf32>
    %c0_192 = arith.constant 0 : index
    %c0_193 = arith.constant 0 : index
    %456 = vector.load %arg9[%c0_192, %c0_193] : memref<8x128xf32, #tpu.memory_space<vmem>>, vector<8x128xf32>
    tpu.vector_store %arg9[%c0_192, %c0_193], %455 {strides = array<i32>} : memref<8x128xf32, #tpu.memory_space<vmem>>, vector<8x128xf32>,
    %c0_194 = arith.constant 0 : index
    %c0_195 = arith.constant 0 : index
    %457 = vector.load %arg10[%c0_194, %c0_195] : memref<8x128xf32, #tpu.memory_space<vmem>>, vector<8x128xf32>
    %458 = arith.select %6, %164, %379 : vector<64x128xi1>, vector<64x128xf32>
    %459 = vector.extract_strided_slice %458 {offsets = [0, 0], sizes = [8, 128], strides = [1, 1]} : vector<64x128xf32> to vector<8x128xf32>
    %460 = vector.extract_strided_slice %458 {offsets = [8, 0], sizes = [8, 128], strides = [1, 1]} : vector<64x128xf32> to vector<8x128xf32>
    %461 = arith.addf %459, %460 : vector<8x128xf32>
    %462 = vector.extract_strided_slice %458 {offsets = [16, 0], sizes = [8, 128], strides = [1, 1]} : vector<64x128xf32> to vector<8x128xf32>
    %463 = arith.addf %461, %462 : vector<8x128xf32>
    %464 = vector.extract_strided_slice %458 {offsets = [24, 0], sizes = [8, 128], strides = [1, 1]} : vector<64x128xf32> to vector<8x128xf32>
    %465 = arith.addf %463, %464 : vector<8x128xf32>
    %466 = vector.extract_strided_slice %458 {offsets = [32, 0], sizes = [8, 128], strides = [1, 1]} : vector<64x128xf32> to vector<8x128xf32>
    %467 = arith.addf %465, %466 : vector<8x128xf32>
    %468 = vector.extract_strided_slice %458 {offsets = [40, 0], sizes = [8, 128], strides = [1, 1]} : vector<64x128xf32> to vector<8x128xf32>
    %469 = arith.addf %467, %468 : vector<8x128xf32>
    %470 = vector.extract_strided_slice %458 {offsets = [48, 0], sizes = [8, 128], strides = [1, 1]} : vector<64x128xf32> to vector<8x128xf32>
    %471 = arith.addf %469, %470 : vector<8x128xf32>
    %472 = vector.extract_strided_slice %458 {offsets = [56, 0], sizes = [8, 128], strides = [1, 1]} : vector<64x128xf32> to vector<8x128xf32>
    %473 = arith.addf %471, %472 : vector<8x128xf32>
    %474 = arith.addf %457, %473 : vector<8x128xf32>
    %c0_196 = arith.constant 0 : index
    %c0_197 = arith.constant 0 : index
    %475 = vector.load %arg10[%c0_196, %c0_197] : memref<8x128xf32, #tpu.memory_space<vmem>>, vector<8x128xf32>
    tpu.vector_store %arg10[%c0_196, %c0_197], %474 {strides = array<i32>} : memref<8x128xf32, #tpu.memory_space<vmem>>, vector<8x128xf32>,
    %c0_198 = arith.constant 0 : index
    %c0_199 = arith.constant 0 : index
    %476 = vector.load %arg11[%c0_198, %c0_199] : memref<8x128xf32, #tpu.memory_space<vmem>>, vector<8x128xf32>
    %477 = arith.select %6, %378, %379 : vector<64x128xi1>, vector<64x128xf32>
    %478 = vector.extract_strided_slice %477 {offsets = [0, 0], sizes = [8, 128], strides = [1, 1]} : vector<64x128xf32> to vector<8x128xf32>
    %479 = vector.extract_strided_slice %477 {offsets = [8, 0], sizes = [8, 128], strides = [1, 1]} : vector<64x128xf32> to vector<8x128xf32>
    %480 = arith.addf %478, %479 : vector<8x128xf32>
    %481 = vector.extract_strided_slice %477 {offsets = [16, 0], sizes = [8, 128], strides = [1, 1]} : vector<64x128xf32> to vector<8x128xf32>
    %482 = arith.addf %480, %481 : vector<8x128xf32>
    %483 = vector.extract_strided_slice %477 {offsets = [24, 0], sizes = [8, 128], strides = [1, 1]} : vector<64x128xf32> to vector<8x128xf32>
    %484 = arith.addf %482, %483 : vector<8x128xf32>
    %485 = vector.extract_strided_slice %477 {offsets = [32, 0], sizes = [8, 128], strides = [1, 1]} : vector<64x128xf32> to vector<8x128xf32>
    %486 = arith.addf %484, %485 : vector<8x128xf32>
    %487 = vector.extract_strided_slice %477 {offsets = [40, 0], sizes = [8, 128], strides = [1, 1]} : vector<64x128xf32> to vector<8x128xf32>
    %488 = arith.addf %486, %487 : vector<8x128xf32>
    %489 = vector.extract_strided_slice %477 {offsets = [48, 0], sizes = [8, 128], strides = [1, 1]} : vector<64x128xf32> to vector<8x128xf32>
    %490 = arith.addf %488, %489 : vector<8x128xf32>
    %491 = vector.extract_strided_slice %477 {offsets = [56, 0], sizes = [8, 128], strides = [1, 1]} : vector<64x128xf32> to vector<8x128xf32>
    %492 = arith.addf %490, %491 : vector<8x128xf32>
    %493 = arith.addf %476, %492 : vector<8x128xf32>
    %c0_200 = arith.constant 0 : index
    %c0_201 = arith.constant 0 : index
    %494 = vector.load %arg11[%c0_200, %c0_201] : memref<8x128xf32, #tpu.memory_space<vmem>>, vector<8x128xf32>
    tpu.vector_store %arg11[%c0_200, %c0_201], %493 {strides = array<i32>} : memref<8x128xf32, #tpu.memory_space<vmem>>, vector<8x128xf32>,
    %c0_i32_202 = arith.constant 0 : i32
    %495 = arith.cmpi eq, %arg1, %c0_i32_202 : i32
    %496 = arith.extui %495 : i1 to i32
    %c0_i32_203 = arith.constant 0 : i32
    %497 = arith.cmpi ne, %496, %c0_i32_203 : i32
    scf.if %497 {
      %c0_204 = arith.constant 0 : index
      %c0_205 = arith.constant 0 : index
      %498 = vector.load %arg6[%c0_204, %c0_205] : memref<8x128xf32, #tpu.memory_space<vmem>>, vector<8x128xf32>
      %c0_206 = arith.constant 0 : index
      %c0_207 = arith.constant 0 : index
      %c0_208 = arith.constant 0 : index
      %499 = vector.load %arg5[%c0_206, %c0_207, %c0_208] : memref<1x48x128xf32, #tpu.memory_space<vmem>>, vector<1x8x128xf32>
      %500 = vector.shape_cast %499 : vector<1x8x128xf32> to vector<8x128xf32>
      %501 = vector.shape_cast %498 : vector<8x128xf32> to vector<1x8x128xf32>
      tpu.vector_store %arg5[%c0_206, %c0_207, %c0_208], %501 {strides = array<i32>} : memref<1x48x128xf32, #tpu.memory_space<vmem>>, vector<1x8x128xf32>,
      %c0_209 = arith.constant 0 : index
      %c0_210 = arith.constant 0 : index
      %502 = vector.load %arg7[%c0_209, %c0_210] : memref<8x128xf32, #tpu.memory_space<vmem>>, vector<8x128xf32>
      %c0_211 = arith.constant 0 : index
      %c8_212 = arith.constant 8 : index
      %c0_213 = arith.constant 0 : index
      %503 = vector.load %arg5[%c0_211, %c8_212, %c0_213] : memref<1x48x128xf32, #tpu.memory_space<vmem>>, vector<1x8x128xf32>
      %504 = vector.shape_cast %503 : vector<1x8x128xf32> to vector<8x128xf32>
      %505 = vector.shape_cast %502 : vector<8x128xf32> to vector<1x8x128xf32>
      tpu.vector_store %arg5[%c0_211, %c8_212, %c0_213], %505 {strides = array<i32>} : memref<1x48x128xf32, #tpu.memory_space<vmem>>, vector<1x8x128xf32>,
      %c0_214 = arith.constant 0 : index
      %c0_215 = arith.constant 0 : index
      %506 = vector.load %arg8[%c0_214, %c0_215] : memref<8x128xf32, #tpu.memory_space<vmem>>, vector<8x128xf32>
      %c0_216 = arith.constant 0 : index
      %c16_217 = arith.constant 16 : index
      %c0_218 = arith.constant 0 : index
      %507 = vector.load %arg5[%c0_216, %c16_217, %c0_218] : memref<1x48x128xf32, #tpu.memory_space<vmem>>, vector<1x8x128xf32>
      %508 = vector.shape_cast %507 : vector<1x8x128xf32> to vector<8x128xf32>
      %509 = vector.shape_cast %506 : vector<8x128xf32> to vector<1x8x128xf32>
      tpu.vector_store %arg5[%c0_216, %c16_217, %c0_218], %509 {strides = array<i32>} : memref<1x48x128xf32, #tpu.memory_space<vmem>>, vector<1x8x128xf32>,
      %c0_219 = arith.constant 0 : index
      %c0_220 = arith.constant 0 : index
      %510 = vector.load %arg9[%c0_219, %c0_220] : memref<8x128xf32, #tpu.memory_space<vmem>>, vector<8x128xf32>
      %c0_221 = arith.constant 0 : index
      %c24 = arith.constant 24 : index
      %c0_222 = arith.constant 0 : index
      %511 = vector.load %arg5[%c0_221, %c24, %c0_222] : memref<1x48x128xf32, #tpu.memory_space<vmem>>, vector<1x8x128xf32>
      %512 = vector.shape_cast %511 : vector<1x8x128xf32> to vector<8x128xf32>
      %513 = vector.shape_cast %510 : vector<8x128xf32> to vector<1x8x128xf32>
      tpu.vector_store %arg5[%c0_221, %c24, %c0_222], %513 {strides = array<i32>} : memref<1x48x128xf32, #tpu.memory_space<vmem>>, vector<1x8x128xf32>,
      %c0_223 = arith.constant 0 : index
      %c0_224 = arith.constant 0 : index
      %514 = vector.load %arg10[%c0_223, %c0_224] : memref<8x128xf32, #tpu.memory_space<vmem>>, vector<8x128xf32>
      %c0_225 = arith.constant 0 : index
      %c32 = arith.constant 32 : index
      %c0_226 = arith.constant 0 : index
      %515 = vector.load %arg5[%c0_225, %c32, %c0_226] : memref<1x48x128xf32, #tpu.memory_space<vmem>>, vector<1x8x128xf32>
      %516 = vector.shape_cast %515 : vector<1x8x128xf32> to vector<8x128xf32>
      %517 = vector.shape_cast %514 : vector<8x128xf32> to vector<1x8x128xf32>
      tpu.vector_store %arg5[%c0_225, %c32, %c0_226], %517 {strides = array<i32>} : memref<1x48x128xf32, #tpu.memory_space<vmem>>, vector<1x8x128xf32>,
      %c0_227 = arith.constant 0 : index
      %c0_228 = arith.constant 0 : index
      %518 = vector.load %arg11[%c0_227, %c0_228] : memref<8x128xf32, #tpu.memory_space<vmem>>, vector<8x128xf32>
      %c0_229 = arith.constant 0 : index
      %c40 = arith.constant 40 : index
      %c0_230 = arith.constant 0 : index
      %519 = vector.load %arg5[%c0_229, %c40, %c0_230] : memref<1x48x128xf32, #tpu.memory_space<vmem>>, vector<1x8x128xf32>
      %520 = vector.shape_cast %519 : vector<1x8x128xf32> to vector<8x128xf32>
      %521 = vector.shape_cast %518 : vector<8x128xf32> to vector<1x8x128xf32>
      tpu.vector_store %arg5[%c0_229, %c40, %c0_230], %521 {strides = array<i32>} : memref<1x48x128xf32, #tpu.memory_space<vmem>>, vector<1x8x128xf32>,
    } else {
    }
    return
  }
  func.func @transform_0(%arg0: i32, %arg1: i32, %arg2: memref<6xf32, #tpu.memory_space<smem>>) -> (i32, i32, i32) {
    %c1_i32 = arith.constant 1 : i32
    %0 = arith.muli %arg0, %c1_i32 : i32
    %1 = arith.addi %0, %arg1 : i32
    %c0_i32 = arith.constant 0 : i32
    %c0_i32_0 = arith.constant 0 : i32
    %c0_i32_1 = arith.constant 0 : i32
    return %c0_i32, %1, %c0_i32_0 : i32, i32, i32
  }
  func.func @transform_1(%arg0: i32, %arg1: i32, %arg2: memref<6xf32, #tpu.memory_space<smem>>) -> (i32, i32, i32) {
    %c1_i32 = arith.constant 1 : i32
    %0 = arith.muli %arg0, %c1_i32 : i32
    %1 = arith.addi %0, %arg1 : i32
    %c0_i32 = arith.constant 0 : i32
    %c0_i32_0 = arith.constant 0 : i32
    %c0_i32_1 = arith.constant 0 : i32
    return %c0_i32, %1, %c0_i32_0 : i32, i32, i32
  }
  func.func @transform_2(%arg0: i32, %arg1: i32, %arg2: memref<6xf32, #tpu.memory_space<smem>>) -> (i32, i32, i32) {
    %c0_i32 = arith.constant 0 : i32
    %c0_i32_0 = arith.constant 0 : i32
    %c0_i32_1 = arith.constant 0 : i32
    return %arg0, %c0_i32, %c0_i32_0 : i32, i32, i32
  }
}

</mosaic_0001>

<bundles_post_ra>
// kernel: yolo_loss_pallas.1
= control target key start
LH: loop header
LB: loop body
LE: loop exit
PB: predicated region body
PF: predicated region fallthrough
CT: control target
= control target key end

     0   :  { %s8349_s0 = inlined_call_operand.vmem [shape: f32[6], index: 0, kind: input, shape index: {}]   ;;  %s8350_s1 = inlined_call_operand.vmem [shape: f32[21,128,128], index: 1, kind: input, shape index: {}]   ;;  %s8351_s2 = inlined_call_operand.vmem [shape: f32[6,128,128], index: 2, kind: input, shape index: {}]   ;;  %s8352_s3 = inlined_call_operand.vmem [shape: f32[2,48,128], index: 3, kind: output, shape index: {}]  }
   0x1   :  { %s8_s14 = sshll.u32 %s8349_s0, 4  ;;  %s9_s14 = int_to_ptr.vmem [resolvable:$true] %s8_s14 }
   0x2   :  { %s4443_s15 = scalar_lea.vmem %s9_s14, 16  ;;  %p4448_p1 = scmp.lt.s32.totalorder %s9_s14, %s9_s14 }
   0x3   :  { %p4444_p0 = scmp.ne.s32.totalorder %s9_s14, %s4443_s15  ;;  %p4449_p2 = scmp.lt.s32.totalorder %s4443_s15, %s4443_s15 }
   0x5   :  { %p4450_p3 = por %p4449_p2, %p4448_p1 }
   0x7   :  { %p4451_p4 = pnand %p4450_p3, %p4444_p0 }
   0x9   :  { %4454 = shalt.err (!%p4451_p4)  }
   0xa   :  { %s4497_s16 = smov [#allocation9]  }
   0xb   :  { %11 = dma.vmem_to_smem %s9_s14, 16, %s4497_s16, [#allocation8] }
   0xc   :  { %4475 = dma.done.wait [#allocation8], 16 }
   0xd   :  { %4476 = vsyncadd [#allocation8], 4294967280 }
   0xe   :  { %13 = sfence }
   0xf   :  { %s4522_s17 = smov 0   ;;  %s4524_s18 = smov 0  }
  0x10   :  { %s4526_s19 = smov 0   ;;  %s4528_s0 = smov 0  }
  0x11   :  { %s4530_s20 = smov 0  }
  0x12 LB: > { %s31_s21 = sadd.s32 1, %s4491_s0  ;;  %p47_p6 = scmp.ne.s32.totalorder %s4483_s18, %s4479_s17  ;;  %s4495_s20 = sphi %s4530_s20, %s19_s20   ;;  %s4491_s0 = sphi %s4528_s0, %s8832_s0   ;;  %s4487_s19 = sphi %s4526_s19, %s8831_s19   ;;  %s4483_s18 = sphi %s4524_s18, %s8830_s18   ;;  %s4479_s17 = sphi %s4522_s17, %s8829_s17  }
  0x13   : > { %p33_p5 = scmp.ge.s32.totalorder %s31_s21, 2  ;;  %p48_p7 = scmp.eq.s32.totalorder %s4495_s20, 0 }
  0x14   : > { %s40_s24 = sadd.s32 1, %s4483_s18  ;;  %p3491_p10 = scmp.ge.s32.totalorder %s4495_s20, 2 }
  0x15   : > { %s8834_s21 = smov (%p33_p5, %s31_s21), 0  ;;  %p4553_p8 = por %p48_p7, %p47_p6 }
  0x16   : > { %s37_s23 = ssub.s32 %s4491_s0, %s8834_s21  ;;  %127 = sbr.rel (%p3491_p10) target bundleno = 147 (0x93), region = 16 }
  0x17   : > { %p38_p9 = scmp.eq.s32.totalorder %s37_s23, 0 }
  0x19   : > { %s4561_s25 = scalar_select %p38_p9, %s4483_s18, %s40_s24  }
  0x1d   : > { %130 = sbr.rel (!%p4553_p8) target bundleno = 118 (0x76), region = 20  ;;  %s132_s26 = sand.u32 (%p4553_p8), 1, %s4483_s18  }
  0x1e   : > { %s3706_s27 = sshll.u32 (%p4553_p8), %s4491_s0, 6  ;;  %s3708_s28 = smul.u32 (%p4553_p8), 1344, %s132_s26 }
  0x1f   : > { %s4571_s4 = scalar_lea.vmem (%p4553_p8), %s8350_s1, %s3706_s27 }
  0x20   : > { %v500_v0 = vld [vmem:[%s4571_s4] sm:$0xff] (%p4553_p8)  ;;  %v502_v1 = vld [vmem:[%s4571_s4 + $0x8] sm:$0xff] (%p4553_p8)  ;;  %v504_v2 = vld [vmem:[%s4571_s4 + $0x10] sm:$0xff] (%p4553_p8)  ;;  %s4579_s5 = scalar_lea.vmem (%p4553_p8), [#allocation10], %s3708_s28 }
  0x21   : > { %v506_v3 = vld [vmem:[%s4571_s4 + $0x18] sm:$0xff] (%p4553_p8)  ;;  %v508_v4 = vld [vmem:[%s4571_s4 + $0x20] sm:$0xff] (%p4553_p8)  ;;  %v510_v5 = vld [vmem:[%s4571_s4 + $0x28] sm:$0xff] (%p4553_p8)  ;;  %501 = vst [vmem:[%s4579_s5] sm:$0xff] (%p4553_p8), %v500_v0 }
  0x22   : > { %503 = vst [vmem:[%s4579_s5 + $0x8] sm:$0xff] (%p4553_p8), %v502_v1  ;;  %505 = vst [vmem:[%s4579_s5 + $0x10] sm:$0xff] (%p4553_p8), %v504_v2  ;;  %v512_v6 = vld [vmem:[%s4571_s4 + $0x30] sm:$0xff] (%p4553_p8)  ;;  %v514_v7 = vld [vmem:[%s4571_s4 + $0x38] sm:$0xff] (%p4553_p8) }
  0x23   : > { %507 = vst [vmem:[%s4579_s5 + $0x18] sm:$0xff] (%p4553_p8), %v506_v3  ;;  %509 = vst [vmem:[%s4579_s5 + $0x20] sm:$0xff] (%p4553_p8), %v508_v4  ;;  %v516_v8 = vld [vmem:[%s4571_s4 + $0x80] sm:$0xff] (%p4553_p8)  ;;  %v518_v9 = vld [vmem:[%s4571_s4 + $0x88] sm:$0xff] (%p4553_p8) }
  0x24   : > { %511 = vst [vmem:[%s4579_s5 + $0x28] sm:$0xff] %v510_v5  ;;  %513 = vst [vmem:[%s4579_s5 + $0x30] sm:$0xff] %v512_v6  ;;  %v520_v10 = vld [vmem:[%s4571_s4 + $0x90] sm:$0xff]  ;;  %v522_v11 = vld [vmem:[%s4571_s4 + $0x98] sm:$0xff] }
  0x25   : > { %515 = vst [vmem:[%s4579_s5 + $0x38] sm:$0xff] %v514_v7  ;;  %517 = vst [vmem:[%s4579_s5 + $0x40] sm:$0xff] %v516_v8  ;;  %v524_v12 = vld [vmem:[%s4571_s4 + $0xa0] sm:$0xff]  ;;  %v526_v13 = vld [vmem:[%s4571_s4 + $0xa8] sm:$0xff] }
  0x26   : > { %519 = vst [vmem:[%s4579_s5 + $0x48] sm:$0xff] %v518_v9  ;;  %521 = vst [vmem:[%s4579_s5 + $0x50] sm:$0xff] %v520_v10  ;;  %v528_v14 = vld [vmem:[%s4571_s4 + $0xb0] sm:$0xff]  ;;  %v530_v15 = vld [vmem:[%s4571_s4 + $0xb8] sm:$0xff] }
  0x27   : > { %523 = vst [vmem:[%s4579_s5 + $0x58] sm:$0xff] %v522_v11  ;;  %525 = vst [vmem:[%s4579_s5 + $0x60] sm:$0xff] %v524_v12  ;;  %v532_v16 = vld [vmem:[%s4571_s4 + $0x100] sm:$0xff]  ;;  %v534_v17 = vld [vmem:[%s4571_s4 + $0x108] sm:$0xff] }
  0x28   : > { %527 = vst [vmem:[%s4579_s5 + $0x68] sm:$0xff] %v526_v13  ;;  %529 = vst [vmem:[%s4579_s5 + $0x70] sm:$0xff] %v528_v14  ;;  %v536_v18 = vld [vmem:[%s4571_s4 + $0x110] sm:$0xff]  ;;  %v538_v19 = vld [vmem:[%s4571_s4 + $0x118] sm:$0xff] }
  0x29   : > { %531 = vst [vmem:[%s4579_s5 + $0x78] sm:$0xff] %v530_v15  ;;  %533 = vst [vmem:[%s4579_s5 + $0x80] sm:$0xff] %v532_v16  ;;  %v540_v20 = vld [vmem:[%s4571_s4 + $0x120] sm:$0xff]  ;;  %v542_v21 = vld [vmem:[%s4571_s4 + $0x128] sm:$0xff] }
  0x2a   : > { %535 = vst [vmem:[%s4579_s5 + $0x88] sm:$0xff] %v534_v17  ;;  %537 = vst [vmem:[%s4579_s5 + $0x90] sm:$0xff] %v536_v18  ;;  %v544_v22 = vld [vmem:[%s4571_s4 + $0x130] sm:$0xff]  ;;  %v546_v23 = vld [vmem:[%s4571_s4 + $0x138] sm:$0xff] }
  0x2b   : > { %539 = vst [vmem:[%s4579_s5 + $0x98] sm:$0xff] %v538_v19  ;;  %541 = vst [vmem:[%s4579_s5 + $0xa0] sm:$0xff] %v540_v20  ;;  %v548_v24 = vld [vmem:[%s4571_s4 + $0x180] sm:$0xff]  ;;  %v550_v25 = vld [vmem:[%s4571_s4 + $0x188] sm:$0xff] }
  0x2c   : > { %543 = vst [vmem:[%s4579_s5 + $0xa8] sm:$0xff] %v542_v21  ;;  %545 = vst [vmem:[%s4579_s5 + $0xb0] sm:$0xff] %v544_v22  ;;  %v552_v26 = vld [vmem:[%s4571_s4 + $0x190] sm:$0xff]  ;;  %v554_v27 = vld [vmem:[%s4571_s4 + $0x198] sm:$0xff] }
  0x2d   : > { %547 = vst [vmem:[%s4579_s5 + $0xb8] sm:$0xff] %v546_v23  ;;  %549 = vst [vmem:[%s4579_s5 + $0xc0] sm:$0xff] %v548_v24  ;;  %v556_v28 = vld [vmem:[%s4571_s4 + $0x1a0] sm:$0xff]  ;;  %v558_v29 = vld [vmem:[%s4571_s4 + $0x1a8] sm:$0xff] }
  0x2e   : > { %551 = vst [vmem:[%s4579_s5 + $0xc8] sm:$0xff] %v550_v25  ;;  %553 = vst [vmem:[%s4579_s5 + $0xd0] sm:$0xff] %v552_v26  ;;  %v560_v30 = vld [vmem:[%s4571_s4 + $0x1b0] sm:$0xff]  ;;  %v562_v31 = vld [vmem:[%s4571_s4 + $0x1b8] sm:$0xff] }
  0x2f   : > { %555 = vst [vmem:[%s4579_s5 + $0xd8] sm:$0xff] %v554_v27  ;;  %557 = vst [vmem:[%s4579_s5 + $0xe0] sm:$0xff] %v556_v28  ;;  %v564_v32 = vld [vmem:[%s4571_s4 + $0x200] sm:$0xff]  ;;  %v566_v33 = vld [vmem:[%s4571_s4 + $0x208] sm:$0xff] }
  0x30   : > { %559 = vst [vmem:[%s4579_s5 + $0xe8] sm:$0xff] %v558_v29  ;;  %561 = vst [vmem:[%s4579_s5 + $0xf0] sm:$0xff] %v560_v30  ;;  %v568_v34 = vld [vmem:[%s4571_s4 + $0x210] sm:$0xff]  ;;  %v570_v35 = vld [vmem:[%s4571_s4 + $0x218] sm:$0xff] }
  0x31   : > { %563 = vst [vmem:[%s4579_s5 + $0xf8] sm:$0xff] %v562_v31  ;;  %565 = vst [vmem:[%s4579_s5 + $0x100] sm:$0xff] %v564_v32  ;;  %v572_v36 = vld [vmem:[%s4571_s4 + $0x220] sm:$0xff]  ;;  %v574_v37 = vld [vmem:[%s4571_s4 + $0x228] sm:$0xff] }
  0x32   : > { %567 = vst [vmem:[%s4579_s5 + $0x108] sm:$0xff] %v566_v33  ;;  %569 = vst [vmem:[%s4579_s5 + $0x110] sm:$0xff] %v568_v34  ;;  %v576_v38 = vld [vmem:[%s4571_s4 + $0x230] sm:$0xff]  ;;  %v578_v39 = vld [vmem:[%s4571_s4 + $0x238] sm:$0xff] }
  0x33   : > { %571 = vst [vmem:[%s4579_s5 + $0x118] sm:$0xff] %v570_v35  ;;  %573 = vst [vmem:[%s4579_s5 + $0x120] sm:$0xff] %v572_v36  ;;  %v580_v40 = vld [vmem:[%s4571_s4 + $0x280] sm:$0xff]  ;;  %v582_v41 = vld [vmem:[%s4571_s4 + $0x288] sm:$0xff] }
  0x34   : > { %575 = vst [vmem:[%s4579_s5 + $0x128] sm:$0xff] %v574_v37  ;;  %577 = vst [vmem:[%s4579_s5 + $0x130] sm:$0xff] %v576_v38  ;;  %v584_v42 = vld [vmem:[%s4571_s4 + $0x290] sm:$0xff]  ;;  %v586_v43 = vld [vmem:[%s4571_s4 + $0x298] sm:$0xff] }
  0x35   : > { %579 = vst [vmem:[%s4579_s5 + $0x138] sm:$0xff] %v578_v39  ;;  %581 = vst [vmem:[%s4579_s5 + $0x140] sm:$0xff] %v580_v40  ;;  %v588_v44 = vld [vmem:[%s4571_s4 + $0x2a0] sm:$0xff]  ;;  %v590_v45 = vld [vmem:[%s4571_s4 + $0x2a8] sm:$0xff] }
  0x36   : > { %583 = vst [vmem:[%s4579_s5 + $0x148] sm:$0xff] %v582_v41  ;;  %585 = vst [vmem:[%s4579_s5 + $0x150] sm:$0xff] %v584_v42  ;;  %v592_v46 = vld [vmem:[%s4571_s4 + $0x2b0] sm:$0xff]  ;;  %v594_v47 = vld [vmem:[%s4571_s4 + $0x2b8] sm:$0xff] }
  0x37   : > { %587 = vst [vmem:[%s4579_s5 + $0x158] sm:$0xff] %v586_v43  ;;  %589 = vst [vmem:[%s4579_s5 + $0x160] sm:$0xff] %v588_v44  ;;  %v596_v48 = vld [vmem:[%s4571_s4 + $0x300] sm:$0xff]  ;;  %v598_v49 = vld [vmem:[%s4571_s4 + $0x308] sm:$0xff] }
  0x38   : > { %591 = vst [vmem:[%s4579_s5 + $0x168] sm:$0xff] %v590_v45  ;;  %593 = vst [vmem:[%s4579_s5 + $0x170] sm:$0xff] %v592_v46  ;;  %v600_v50 = vld [vmem:[%s4571_s4 + $0x310] sm:$0xff]  ;;  %v602_v51 = vld [vmem:[%s4571_s4 + $0x318] sm:$0xff] }
  0x39   : > { %595 = vst [vmem:[%s4579_s5 + $0x178] sm:$0xff] %v594_v47  ;;  %597 = vst [vmem:[%s4579_s5 + $0x180] sm:$0xff] %v596_v48  ;;  %v604_v52 = vld [vmem:[%s4571_s4 + $0x320] sm:$0xff]  ;;  %v606_v53 = vld [vmem:[%s4571_s4 + $0x328] sm:$0xff] }
  0x3a   : > { %599 = vst [vmem:[%s4579_s5 + $0x188] sm:$0xff] %v598_v49  ;;  %601 = vst [vmem:[%s4579_s5 + $0x190] sm:$0xff] %v600_v50  ;;  %v608_v54 = vld [vmem:[%s4571_s4 + $0x330] sm:$0xff]  ;;  %v610_v55 = vld [vmem:[%s4571_s4 + $0x338] sm:$0xff] }
  0x3b   : > { %603 = vst [vmem:[%s4579_s5 + $0x198] sm:$0xff] %v602_v51  ;;  %605 = vst [vmem:[%s4579_s5 + $0x1a0] sm:$0xff] %v604_v52  ;;  %v612_v56 = vld [vmem:[%s4571_s4 + $0x380] sm:$0xff]  ;;  %v614_v57 = vld [vmem:[%s4571_s4 + $0x388] sm:$0xff] }
  0x3c   : > { %607 = vst [vmem:[%s4579_s5 + $0x1a8] sm:$0xff] %v606_v53  ;;  %609 = vst [vmem:[%s4579_s5 + $0x1b0] sm:$0xff] %v608_v54  ;;  %v616_v58 = vld [vmem:[%s4571_s4 + $0x390] sm:$0xff]  ;;  %v618_v59 = vld [vmem:[%s4571_s4 + $0x398] sm:$0xff] }
  0x3d   : > { %611 = vst [vmem:[%s4579_s5 + $0x1b8] sm:$0xff] %v610_v55  ;;  %613 = vst [vmem:[%s4579_s5 + $0x1c0] sm:$0xff] %v612_v56  ;;  %v620_v60 = vld [vmem:[%s4571_s4 + $0x3a0] sm:$0xff]  ;;  %v622_v61 = vld [vmem:[%s4571_s4 + $0x3a8] sm:$0xff] }
  0x3e   : > { %615 = vst [vmem:[%s4579_s5 + $0x1c8] sm:$0xff] %v614_v57  ;;  %617 = vst [vmem:[%s4579_s5 + $0x1d0] sm:$0xff] %v616_v58  ;;  %v624_v62 = vld [vmem:[%s4571_s4 + $0x3b0] sm:$0xff]  ;;  %v626_v63 = vld [vmem:[%s4571_s4 + $0x3b8] sm:$0xff] }
  0x3f   : > { %619 = vst [vmem:[%s4579_s5 + $0x1d8] sm:$0xff] %v618_v59  ;;  %621 = vst [vmem:[%s4579_s5 + $0x1e0] sm:$0xff] %v620_v60  ;;  %v628_v0 = vld [vmem:[%s4571_s4 + $0x400] sm:$0xff]  ;;  %v630_v1 = vld [vmem:[%s4571_s4 + $0x408] sm:$0xff] }
  0x40   : > { %623 = vst [vmem:[%s4579_s5 + $0x1e8] sm:$0xff] %v622_v61  ;;  %625 = vst [vmem:[%s4579_s5 + $0x1f0] sm:$0xff] %v624_v62  ;;  %v632_v2 = vld [vmem:[%s4571_s4 + $0x410] sm:$0xff]  ;;  %v634_v3 = vld [vmem:[%s4571_s4 + $0x418] sm:$0xff] }
  0x41   : > { %627 = vst [vmem:[%s4579_s5 + $0x1f8] sm:$0xff] %v626_v63  ;;  %629 = vst [vmem:[%s4579_s5 + $0x200] sm:$0xff] %v628_v0  ;;  %v636_v4 = vld [vmem:[%s4571_s4 + $0x420] sm:$0xff]  ;;  %v638_v5 = vld [vmem:[%s4571_s4 + $0x428] sm:$0xff] }
  0x42   : > { %631 = vst [vmem:[%s4579_s5 + $0x208] sm:$0xff] %v630_v1  ;;  %633 = vst [vmem:[%s4579_s5 + $0x210] sm:$0xff] %v632_v2  ;;  %v640_v6 = vld [vmem:[%s4571_s4 + $0x430] sm:$0xff]  ;;  %v642_v7 = vld [vmem:[%s4571_s4 + $0x438] sm:$0xff] }
  0x43   : > { %635 = vst [vmem:[%s4579_s5 + $0x218] sm:$0xff] %v634_v3  ;;  %637 = vst [vmem:[%s4579_s5 + $0x220] sm:$0xff] %v636_v4  ;;  %v644_v8 = vld [vmem:[%s4571_s4 + $0x480] sm:$0xff]  ;;  %v646_v9 = vld [vmem:[%s4571_s4 + $0x488] sm:$0xff] }
  0x44   : > { %639 = vst [vmem:[%s4579_s5 + $0x228] sm:$0xff] %v638_v5  ;;  %641 = vst [vmem:[%s4579_s5 + $0x230] sm:$0xff] %v640_v6  ;;  %v648_v10 = vld [vmem:[%s4571_s4 + $0x490] sm:$0xff]  ;;  %v650_v11 = vld [vmem:[%s4571_s4 + $0x498] sm:$0xff] }
  0x45   : > { %643 = vst [vmem:[%s4579_s5 + $0x238] sm:$0xff] %v642_v7  ;;  %645 = vst [vmem:[%s4579_s5 + $0x240] sm:$0xff] %v644_v8  ;;  %v652_v12 = vld [vmem:[%s4571_s4 + $0x4a0] sm:$0xff]  ;;  %v654_v13 = vld [vmem:[%s4571_s4 + $0x4a8] sm:$0xff] }
  0x46   : > { %647 = vst [vmem:[%s4579_s5 + $0x248] sm:$0xff] %v646_v9  ;;  %649 = vst [vmem:[%s4579_s5 + $0x250] sm:$0xff] %v648_v10  ;;  %v656_v14 = vld [vmem:[%s4571_s4 + $0x4b0] sm:$0xff]  ;;  %v658_v15 = vld [vmem:[%s4571_s4 + $0x4b8] sm:$0xff] }
  0x47   : > { %651 = vst [vmem:[%s4579_s5 + $0x258] sm:$0xff] %v650_v11  ;;  %653 = vst [vmem:[%s4579_s5 + $0x260] sm:$0xff] %v652_v12  ;;  %v660_v16 = vld [vmem:[%s4571_s4 + $0x500] sm:$0xff]  ;;  %v662_v17 = vld [vmem:[%s4571_s4 + $0x508] sm:$0xff] }
  0x48   : > { %655 = vst [vmem:[%s4579_s5 + $0x268] sm:$0xff] %v654_v13  ;;  %657 = vst [vmem:[%s4579_s5 + $0x270] sm:$0xff] %v656_v14  ;;  %v664_v18 = vld [vmem:[%s4571_s4 + $0x510] sm:$0xff]  ;;  %v666_v19 = vld [vmem:[%s4571_s4 + $0x518] sm:$0xff] }
  0x49   : > { %659 = vst [vmem:[%s4579_s5 + $0x278] sm:$0xff] %v658_v15  ;;  %661 = vst [vmem:[%s4579_s5 + $0x280] sm:$0xff] %v660_v16  ;;  %v668_v20 = vld [vmem:[%s4571_s4 + $0x520] sm:$0xff]  ;;  %v670_v21 = vld [vmem:[%s4571_s4 + $0x528] sm:$0xff] }
  0x4a   : > { %663 = vst [vmem:[%s4579_s5 + $0x288] sm:$0xff] %v662_v17  ;;  %665 = vst [vmem:[%s4579_s5 + $0x290] sm:$0xff] %v664_v18  ;;  %v672_v22 = vld [vmem:[%s4571_s4 + $0x530] sm:$0xff]  ;;  %v674_v23 = vld [vmem:[%s4571_s4 + $0x538] sm:$0xff] }
  0x4b   : > { %667 = vst [vmem:[%s4579_s5 + $0x298] sm:$0xff] %v666_v19  ;;  %669 = vst [vmem:[%s4579_s5 + $0x2a0] sm:$0xff] %v668_v20  ;;  %v676_v24 = vld [vmem:[%s4571_s4 + $0x580] sm:$0xff]  ;;  %v678_v25 = vld [vmem:[%s4571_s4 + $0x588] sm:$0xff] }
  0x4c   : > { %671 = vst [vmem:[%s4579_s5 + $0x2a8] sm:$0xff] %v670_v21  ;;  %673 = vst [vmem:[%s4579_s5 + $0x2b0] sm:$0xff] %v672_v22  ;;  %v680_v26 = vld [vmem:[%s4571_s4 + $0x590] sm:$0xff]  ;;  %v682_v27 = vld [vmem:[%s4571_s4 + $0x598] sm:$0xff] }
  0x4d   : > { %675 = vst [vmem:[%s4579_s5 + $0x2b8] sm:$0xff] %v674_v23  ;;  %677 = vst [vmem:[%s4579_s5 + $0x2c0] sm:$0xff] %v676_v24  ;;  %v684_v28 = vld [vmem:[%s4571_s4 + $0x5a0] sm:$0xff]  ;;  %v686_v29 = vld [vmem:[%s4571_s4 + $0x5a8] sm:$0xff] }
  0x4e   : > { %679 = vst [vmem:[%s4579_s5 + $0x2c8] sm:$0xff] %v678_v25  ;;  %681 = vst [vmem:[%s4579_s5 + $0x2d0] sm:$0xff] %v680_v26  ;;  %v688_v30 = vld [vmem:[%s4571_s4 + $0x5b0] sm:$0xff]  ;;  %v690_v31 = vld [vmem:[%s4571_s4 + $0x5b8] sm:$0xff] }
  0x4f   : > { %683 = vst [vmem:[%s4579_s5 + $0x2d8] sm:$0xff] %v682_v27  ;;  %685 = vst [vmem:[%s4579_s5 + $0x2e0] sm:$0xff] %v684_v28  ;;  %v692_v32 = vld [vmem:[%s4571_s4 + $0x600] sm:$0xff]  ;;  %v694_v33 = vld [vmem:[%s4571_s4 + $0x608] sm:$0xff] }
  0x50   : > { %687 = vst [vmem:[%s4579_s5 + $0x2e8] sm:$0xff] %v686_v29  ;;  %689 = vst [vmem:[%s4579_s5 + $0x2f0] sm:$0xff] %v688_v30  ;;  %v696_v34 = vld [vmem:[%s4571_s4 + $0x610] sm:$0xff]  ;;  %v698_v35 = vld [vmem:[%s4571_s4 + $0x618] sm:$0xff] }
  0x51   : > { %691 = vst [vmem:[%s4579_s5 + $0x2f8] sm:$0xff] %v690_v31  ;;  %693 = vst [vmem:[%s4579_s5 + $0x300] sm:$0xff] %v692_v32  ;;  %v700_v36 = vld [vmem:[%s4571_s4 + $0x620] sm:$0xff]  ;;  %v702_v37 = vld [vmem:[%s4571_s4 + $0x628] sm:$0xff] }
  0x52   : > { %695 = vst [vmem:[%s4579_s5 + $0x308] sm:$0xff] %v694_v33  ;;  %697 = vst [vmem:[%s4579_s5 + $0x310] sm:$0xff] %v696_v34  ;;  %v704_v38 = vld [vmem:[%s4571_s4 + $0x630] sm:$0xff]  ;;  %v706_v39 = vld [vmem:[%s4571_s4 + $0x638] sm:$0xff] }
  0x53   : > { %699 = vst [vmem:[%s4579_s5 + $0x318] sm:$0xff] %v698_v35  ;;  %701 = vst [vmem:[%s4579_s5 + $0x320] sm:$0xff] %v700_v36  ;;  %v708_v40 = vld [vmem:[%s4571_s4 + $0x680] sm:$0xff]  ;;  %v710_v41 = vld [vmem:[%s4571_s4 + $0x688] sm:$0xff] }
  0x54   : > { %703 = vst [vmem:[%s4579_s5 + $0x328] sm:$0xff] %v702_v37  ;;  %705 = vst [vmem:[%s4579_s5 + $0x330] sm:$0xff] %v704_v38  ;;  %v712_v42 = vld [vmem:[%s4571_s4 + $0x690] sm:$0xff]  ;;  %v714_v43 = vld [vmem:[%s4571_s4 + $0x698] sm:$0xff] }
  0x55   : > { %707 = vst [vmem:[%s4579_s5 + $0x338] sm:$0xff] %v706_v39  ;;  %709 = vst [vmem:[%s4579_s5 + $0x340] sm:$0xff] %v708_v40  ;;  %v716_v44 = vld [vmem:[%s4571_s4 + $0x6a0] sm:$0xff]  ;;  %v718_v45 = vld [vmem:[%s4571_s4 + $0x6a8] sm:$0xff] }
  0x56   : > { %711 = vst [vmem:[%s4579_s5 + $0x348] sm:$0xff] %v710_v41  ;;  %713 = vst [vmem:[%s4579_s5 + $0x350] sm:$0xff] %v712_v42  ;;  %v720_v46 = vld [vmem:[%s4571_s4 + $0x6b0] sm:$0xff]  ;;  %v722_v47 = vld [vmem:[%s4571_s4 + $0x6b8] sm:$0xff] }
  0x57   : > { %715 = vst [vmem:[%s4579_s5 + $0x358] sm:$0xff] %v714_v43  ;;  %717 = vst [vmem:[%s4579_s5 + $0x360] sm:$0xff] %v716_v44  ;;  %v724_v48 = vld [vmem:[%s4571_s4 + $0x700] sm:$0xff]  ;;  %v726_v49 = vld [vmem:[%s4571_s4 + $0x708] sm:$0xff] }
  0x58   : > { %719 = vst [vmem:[%s4579_s5 + $0x368] sm:$0xff] %v718_v45  ;;  %721 = vst [vmem:[%s4579_s5 + $0x370] sm:$0xff] %v720_v46  ;;  %v728_v50 = vld [vmem:[%s4571_s4 + $0x710] sm:$0xff]  ;;  %v730_v51 = vld [vmem:[%s4571_s4 + $0x718] sm:$0xff] }
  0x59   : > { %723 = vst [vmem:[%s4579_s5 + $0x378] sm:$0xff] %v722_v47  ;;  %725 = vst [vmem:[%s4579_s5 + $0x380] sm:$0xff] %v724_v48  ;;  %v732_v52 = vld [vmem:[%s4571_s4 + $0x720] sm:$0xff]  ;;  %v734_v53 = vld [vmem:[%s4571_s4 + $0x728] sm:$0xff] }
  0x5a   : > { %727 = vst [vmem:[%s4579_s5 + $0x388] sm:$0xff] %v726_v49  ;;  %729 = vst [vmem:[%s4579_s5 + $0x390] sm:$0xff] %v728_v50  ;;  %v736_v54 = vld [vmem:[%s4571_s4 + $0x730] sm:$0xff]  ;;  %v738_v55 = vld [vmem:[%s4571_s4 + $0x738] sm:$0xff] }
  0x5b   : > { %731 = vst [vmem:[%s4579_s5 + $0x398] sm:$0xff] %v730_v51  ;;  %733 = vst [vmem:[%s4579_s5 + $0x3a0] sm:$0xff] %v732_v52  ;;  %v740_v56 = vld [vmem:[%s4571_s4 + $0x780] sm:$0xff]  ;;  %v742_v57 = vld [vmem:[%s4571_s4 + $0x788] sm:$0xff] }
  0x5c   : > { %735 = vst [vmem:[%s4579_s5 + $0x3a8] sm:$0xff] %v734_v53  ;;  %737 = vst [vmem:[%s4579_s5 + $0x3b0] sm:$0xff] %v736_v54  ;;  %v744_v58 = vld [vmem:[%s4571_s4 + $0x790] sm:$0xff]  ;;  %v746_v59 = vld [vmem:[%s4571_s4 + $0x798] sm:$0xff] }
  0x5d   : > { %739 = vst [vmem:[%s4579_s5 + $0x3b8] sm:$0xff] %v738_v55  ;;  %741 = vst [vmem:[%s4579_s5 + $0x3c0] sm:$0xff] %v740_v56  ;;  %v748_v60 = vld [vmem:[%s4571_s4 + $0x7a0] sm:$0xff]  ;;  %v750_v61 = vld [vmem:[%s4571_s4 + $0x7a8] sm:$0xff] }
  0x5e   : > { %743 = vst [vmem:[%s4579_s5 + $0x3c8] sm:$0xff] %v742_v57  ;;  %745 = vst [vmem:[%s4579_s5 + $0x3d0] sm:$0xff] %v744_v58  ;;  %v752_v62 = vld [vmem:[%s4571_s4 + $0x7b0] sm:$0xff]  ;;  %v754_v63 = vld [vmem:[%s4571_s4 + $0x7b8] sm:$0xff] }
  0x5f   : > { %747 = vst [vmem:[%s4579_s5 + $0x3d8] sm:$0xff] %v746_v59  ;;  %749 = vst [vmem:[%s4579_s5 + $0x3e0] sm:$0xff] %v748_v60  ;;  %v756_v0 = vld [vmem:[%s4571_s4 + $0x800] sm:$0xff]  ;;  %v758_v1 = vld [vmem:[%s4571_s4 + $0x808] sm:$0xff] }
  0x60   : > { %751 = vst [vmem:[%s4579_s5 + $0x3e8] sm:$0xff] %v750_v61  ;;  %753 = vst [vmem:[%s4579_s5 + $0x3f0] sm:$0xff] %v752_v62  ;;  %v760_v2 = vld [vmem:[%s4571_s4 + $0x810] sm:$0xff]  ;;  %v762_v3 = vld [vmem:[%s4571_s4 + $0x818] sm:$0xff] }
  0x61   : > { %755 = vst [vmem:[%s4579_s5 + $0x3f8] sm:$0xff] %v754_v63  ;;  %757 = vst [vmem:[%s4579_s5 + $0x400] sm:$0xff] %v756_v0  ;;  %v764_v4 = vld [vmem:[%s4571_s4 + $0x820] sm:$0xff]  ;;  %v766_v5 = vld [vmem:[%s4571_s4 + $0x828] sm:$0xff] }
  0x62   : > { %759 = vst [vmem:[%s4579_s5 + $0x408] sm:$0xff] %v758_v1  ;;  %761 = vst [vmem:[%s4579_s5 + $0x410] sm:$0xff] %v760_v2  ;;  %v768_v6 = vld [vmem:[%s4571_s4 + $0x830] sm:$0xff]  ;;  %v770_v7 = vld [vmem:[%s4571_s4 + $0x838] sm:$0xff] }
  0x63   : > { %763 = vst [vmem:[%s4579_s5 + $0x418] sm:$0xff] %v762_v3  ;;  %765 = vst [vmem:[%s4579_s5 + $0x420] sm:$0xff] %v764_v4  ;;  %v772_v8 = vld [vmem:[%s4571_s4 + $0x880] sm:$0xff]  ;;  %v774_v9 = vld [vmem:[%s4571_s4 + $0x888] sm:$0xff] }
  0x64   : > { %767 = vst [vmem:[%s4579_s5 + $0x428] sm:$0xff] %v766_v5  ;;  %769 = vst [vmem:[%s4579_s5 + $0x430] sm:$0xff] %v768_v6  ;;  %v776_v10 = vld [vmem:[%s4571_s4 + $0x890] sm:$0xff]  ;;  %v778_v11 = vld [vmem:[%s4571_s4 + $0x898] sm:$0xff] }
  0x65   : > { %771 = vst [vmem:[%s4579_s5 + $0x438] sm:$0xff] %v770_v7  ;;  %773 = vst [vmem:[%s4579_s5 + $0x440] sm:$0xff] %v772_v8  ;;  %v780_v12 = vld [vmem:[%s4571_s4 + $0x8a0] sm:$0xff]  ;;  %v782_v13 = vld [vmem:[%s4571_s4 + $0x8a8] sm:$0xff] }
  0x66   : > { %775 = vst [vmem:[%s4579_s5 + $0x448] sm:$0xff] %v774_v9  ;;  %777 = vst [vmem:[%s4579_s5 + $0x450] sm:$0xff] %v776_v10  ;;  %v784_v14 = vld [vmem:[%s4571_s4 + $0x8b0] sm:$0xff]  ;;  %v786_v15 = vld [vmem:[%s4571_s4 + $0x8b8] sm:$0xff] }
  0x67   : > { %779 = vst [vmem:[%s4579_s5 + $0x458] sm:$0xff] %v778_v11  ;;  %781 = vst [vmem:[%s4579_s5 + $0x460] sm:$0xff] %v780_v12  ;;  %v788_v16 = vld [vmem:[%s4571_s4 + $0x900] sm:$0xff]  ;;  %v790_v17 = vld [vmem:[%s4571_s4 + $0x908] sm:$0xff] }
  0x68   : > { %783 = vst [vmem:[%s4579_s5 + $0x468] sm:$0xff] %v782_v13  ;;  %785 = vst [vmem:[%s4579_s5 + $0x470] sm:$0xff] %v784_v14  ;;  %v792_v18 = vld [vmem:[%s4571_s4 + $0x910] sm:$0xff]  ;;  %v794_v19 = vld [vmem:[%s4571_s4 + $0x918] sm:$0xff] }
  0x69   : > { %787 = vst [vmem:[%s4579_s5 + $0x478] sm:$0xff] %v786_v15  ;;  %789 = vst [vmem:[%s4579_s5 + $0x480] sm:$0xff] %v788_v16  ;;  %v796_v20 = vld [vmem:[%s4571_s4 + $0x920] sm:$0xff]  ;;  %v798_v21 = vld [vmem:[%s4571_s4 + $0x928] sm:$0xff] }
  0x6a   : > { %791 = vst [vmem:[%s4579_s5 + $0x488] sm:$0xff] %v790_v17  ;;  %793 = vst [vmem:[%s4579_s5 + $0x490] sm:$0xff] %v792_v18  ;;  %v800_v22 = vld [vmem:[%s4571_s4 + $0x930] sm:$0xff]  ;;  %v802_v23 = vld [vmem:[%s4571_s4 + $0x938] sm:$0xff] }
  0x6b   : > { %795 = vst [vmem:[%s4579_s5 + $0x498] sm:$0xff] %v794_v19  ;;  %797 = vst [vmem:[%s4579_s5 + $0x4a0] sm:$0xff] %v796_v20  ;;  %v804_v24 = vld [vmem:[%s4571_s4 + $0x980] sm:$0xff]  ;;  %v806_v25 = vld [vmem:[%s4571_s4 + $0x988] sm:$0xff] }
  0x6c   : > { %799 = vst [vmem:[%s4579_s5 + $0x4a8] sm:$0xff] %v798_v21  ;;  %801 = vst [vmem:[%s4579_s5 + $0x4b0] sm:$0xff] %v800_v22  ;;  %v808_v26 = vld [vmem:[%s4571_s4 + $0x990] sm:$0xff]  ;;  %v810_v27 = vld [vmem:[%s4571_s4 + $0x998] sm:$0xff] }
  0x6d   : > { %803 = vst [vmem:[%s4579_s5 + $0x4b8] sm:$0xff] %v802_v23  ;;  %805 = vst [vmem:[%s4579_s5 + $0x4c0] sm:$0xff] %v804_v24  ;;  %v812_v28 = vld [vmem:[%s4571_s4 + $0x9a0] sm:$0xff]  ;;  %v814_v29 = vld [vmem:[%s4571_s4 + $0x9a8] sm:$0xff] }
  0x6e   : > { %807 = vst [vmem:[%s4579_s5 + $0x4c8] sm:$0xff] %v806_v25  ;;  %809 = vst [vmem:[%s4579_s5 + $0x4d0] sm:$0xff] %v808_v26  ;;  %v816_v30 = vld [vmem:[%s4571_s4 + $0x9b0] sm:$0xff]  ;;  %v818_v31 = vld [vmem:[%s4571_s4 + $0x9b8] sm:$0xff] }
  0x6f   : > { %811 = vst [vmem:[%s4579_s5 + $0x4d8] sm:$0xff] %v810_v27  ;;  %813 = vst [vmem:[%s4579_s5 + $0x4e0] sm:$0xff] %v812_v28  ;;  %v820_v32 = vld [vmem:[%s4571_s4 + $0xa00] sm:$0xff]  ;;  %v822_v33 = vld [vmem:[%s4571_s4 + $0xa08] sm:$0xff] }
  0x70   : > { %815 = vst [vmem:[%s4579_s5 + $0x4e8] sm:$0xff] %v814_v29  ;;  %817 = vst [vmem:[%s4579_s5 + $0x4f0] sm:$0xff] %v816_v30  ;;  %v824_v34 = vld [vmem:[%s4571_s4 + $0xa10] sm:$0xff]  ;;  %v826_v35 = vld [vmem:[%s4571_s4 + $0xa18] sm:$0xff] }
  0x71   : > { %819 = vst [vmem:[%s4579_s5 + $0x4f8] sm:$0xff] %v818_v31  ;;  %821 = vst [vmem:[%s4579_s5 + $0x500] sm:$0xff] %v820_v32  ;;  %v828_v36 = vld [vmem:[%s4571_s4 + $0xa20] sm:$0xff]  ;;  %v830_v37 = vld [vmem:[%s4571_s4 + $0xa28] sm:$0xff] }
  0x72   : > { %823 = vst [vmem:[%s4579_s5 + $0x508] sm:$0xff] %v822_v33  ;;  %825 = vst [vmem:[%s4579_s5 + $0x510] sm:$0xff] %v824_v34  ;;  %v832_v38 = vld [vmem:[%s4571_s4 + $0xa30] sm:$0xff]  ;;  %v834_v39 = vld [vmem:[%s4571_s4 + $0xa38] sm:$0xff] }
  0x73   : > { %827 = vst [vmem:[%s4579_s5 + $0x518] sm:$0xff] %v826_v35  ;;  %829 = vst [vmem:[%s4579_s5 + $0x520] sm:$0xff] %v828_v36 }
  0x74   : > { %831 = vst [vmem:[%s4579_s5 + $0x528] sm:$0xff] %v830_v37  ;;  %833 = vst [vmem:[%s4579_s5 + $0x530] sm:$0xff] %v832_v38 }
  0x75   : > { %835 = vst [vmem:[%s4579_s5 + $0x538] sm:$0xff] %v834_v39 }
  0x76 PF: > { %841 = sbr.rel (!%p4553_p8) target bundleno = 147 (0x93), region = 58  ;;  %s843_s6 = sand.u32 (%p4553_p8), 1, %s4483_s18  }
  0x77   : > { %s3707_s7 = sshll.u32 (%p4553_p8), %s4491_s0, 6  ;;  %s3709_s8 = smul.u32 (%p4553_p8), 384, %s843_s6 }
  0x78   : > { %s4918_s11 = scalar_lea.vmem (%p4553_p8), %s8351_s2, %s3707_s7 }
  0x79   : > { %v971_v40 = vld [vmem:[%s4918_s11] sm:$0xff] (%p4553_p8)  ;;  %v973_v41 = vld [vmem:[%s4918_s11 + $0x8] sm:$0xff] (%p4553_p8)  ;;  %v975_v42 = vld [vmem:[%s4918_s11 + $0x10] sm:$0xff] (%p4553_p8)  ;;  %s4926_s12 = scalar_lea.vmem (%p4553_p8), [#allocation11], %s3709_s8 }
  0x7a   : > { %v977_v43 = vld [vmem:[%s4918_s11 + $0x18] sm:$0xff] (%p4553_p8)  ;;  %v979_v44 = vld [vmem:[%s4918_s11 + $0x20] sm:$0xff] (%p4553_p8)  ;;  %v981_v45 = vld [vmem:[%s4918_s11 + $0x28] sm:$0xff] (%p4553_p8)  ;;  %972 = vst [vmem:[%s4926_s12] sm:$0xff] (%p4553_p8), %v971_v40 }
  0x7b   : > { %974 = vst [vmem:[%s4926_s12 + $0x8] sm:$0xff] (%p4553_p8), %v973_v41  ;;  %976 = vst [vmem:[%s4926_s12 + $0x10] sm:$0xff] (%p4553_p8), %v975_v42  ;;  %v983_v46 = vld [vmem:[%s4918_s11 + $0x30] sm:$0xff] (%p4553_p8)  ;;  %v985_v47 = vld [vmem:[%s4918_s11 + $0x38] sm:$0xff] (%p4553_p8) }
  0x7c   : > { %978 = vst [vmem:[%s4926_s12 + $0x18] sm:$0xff] (%p4553_p8), %v977_v43  ;;  %980 = vst [vmem:[%s4926_s12 + $0x20] sm:$0xff] (%p4553_p8), %v979_v44  ;;  %v987_v48 = vld [vmem:[%s4918_s11 + $0x80] sm:$0xff] (%p4553_p8)  ;;  %v989_v49 = vld [vmem:[%s4918_s11 + $0x88] sm:$0xff] (%p4553_p8) }
  0x7d   : > { %982 = vst [vmem:[%s4926_s12 + $0x28] sm:$0xff] %v981_v45  ;;  %984 = vst [vmem:[%s4926_s12 + $0x30] sm:$0xff] %v983_v46  ;;  %v991_v50 = vld [vmem:[%s4918_s11 + $0x90] sm:$0xff]  ;;  %v993_v51 = vld [vmem:[%s4918_s11 + $0x98] sm:$0xff] }
  0x7e   : > { %986 = vst [vmem:[%s4926_s12 + $0x38] sm:$0xff] %v985_v47  ;;  %988 = vst [vmem:[%s4926_s12 + $0x40] sm:$0xff] %v987_v48  ;;  %v995_v52 = vld [vmem:[%s4918_s11 + $0xa0] sm:$0xff]  ;;  %v997_v53 = vld [vmem:[%s4918_s11 + $0xa8] sm:$0xff] }
  0x7f   : > { %990 = vst [vmem:[%s4926_s12 + $0x48] sm:$0xff] %v989_v49  ;;  %992 = vst [vmem:[%s4926_s12 + $0x50] sm:$0xff] %v991_v50  ;;  %v999_v54 = vld [vmem:[%s4918_s11 + $0xb0] sm:$0xff]  ;;  %v1001_v55 = vld [vmem:[%s4918_s11 + $0xb8] sm:$0xff] }
  0x80   : > { %994 = vst [vmem:[%s4926_s12 + $0x58] sm:$0xff] %v993_v51  ;;  %996 = vst [vmem:[%s4926_s12 + $0x60] sm:$0xff] %v995_v52  ;;  %v1003_v56 = vld [vmem:[%s4918_s11 + $0x100] sm:$0xff]  ;;  %v1005_v57 = vld [vmem:[%s4918_s11 + $0x108] sm:$0xff] }
  0x81   : > { %998 = vst [vmem:[%s4926_s12 + $0x68] sm:$0xff] %v997_v53  ;;  %1000 = vst [vmem:[%s4926_s12 + $0x70] sm:$0xff] %v999_v54  ;;  %v1007_v58 = vld [vmem:[%s4918_s11 + $0x110] sm:$0xff]  ;;  %v1009_v59 = vld [vmem:[%s4918_s11 + $0x118] sm:$0xff] }
  0x82   : > { %1002 = vst [vmem:[%s4926_s12 + $0x78] sm:$0xff] %v1001_v55  ;;  %1004 = vst [vmem:[%s4926_s12 + $0x80] sm:$0xff] %v1003_v56  ;;  %v1011_v60 = vld [vmem:[%s4918_s11 + $0x120] sm:$0xff]  ;;  %v1013_v61 = vld [vmem:[%s4918_s11 + $0x128] sm:$0xff] }
  0x83   : > { %1006 = vst [vmem:[%s4926_s12 + $0x88] sm:$0xff] %v1005_v57  ;;  %1008 = vst [vmem:[%s4926_s12 + $0x90] sm:$0xff] %v1007_v58  ;;  %v1015_v62 = vld [vmem:[%s4918_s11 + $0x130] sm:$0xff]  ;;  %v1017_v63 = vld [vmem:[%s4918_s11 + $0x138] sm:$0xff] }
  0x84   : > { %1010 = vst [vmem:[%s4926_s12 + $0x98] sm:$0xff] %v1009_v59  ;;  %1012 = vst [vmem:[%s4926_s12 + $0xa0] sm:$0xff] %v1011_v60  ;;  %v1019_v0 = vld [vmem:[%s4918_s11 + $0x180] sm:$0xff]  ;;  %v1021_v1 = vld [vmem:[%s4918_s11 + $0x188] sm:$0xff] }
  0x85   : > { %1014 = vst [vmem:[%s4926_s12 + $0xa8] sm:$0xff] %v1013_v61  ;;  %1016 = vst [vmem:[%s4926_s12 + $0xb0] sm:$0xff] %v1015_v62  ;;  %v1023_v2 = vld [vmem:[%s4918_s11 + $0x190] sm:$0xff]  ;;  %v1025_v3 = vld [vmem:[%s4918_s11 + $0x198] sm:$0xff] }
  0x86   : > { %1018 = vst [vmem:[%s4926_s12 + $0xb8] sm:$0xff] %v1017_v63  ;;  %1020 = vst [vmem:[%s4926_s12 + $0xc0] sm:$0xff] %v1019_v0  ;;  %v1027_v4 = vld [vmem:[%s4918_s11 + $0x1a0] sm:$0xff]  ;;  %v1029_v5 = vld [vmem:[%s4918_s11 + $0x1a8] sm:$0xff] }
  0x87   : > { %1022 = vst [vmem:[%s4926_s12 + $0xc8] sm:$0xff] %v1021_v1  ;;  %1024 = vst [vmem:[%s4926_s12 + $0xd0] sm:$0xff] %v1023_v2  ;;  %v1031_v6 = vld [vmem:[%s4918_s11 + $0x1b0] sm:$0xff]  ;;  %v1033_v7 = vld [vmem:[%s4918_s11 + $0x1b8] sm:$0xff] }
  0x88   : > { %1026 = vst [vmem:[%s4926_s12 + $0xd8] sm:$0xff] %v1025_v3  ;;  %1028 = vst [vmem:[%s4926_s12 + $0xe0] sm:$0xff] %v1027_v4  ;;  %v1035_v8 = vld [vmem:[%s4918_s11 + $0x200] sm:$0xff]  ;;  %v1037_v9 = vld [vmem:[%s4918_s11 + $0x208] sm:$0xff] }
  0x89   : > { %1030 = vst [vmem:[%s4926_s12 + $0xe8] sm:$0xff] %v1029_v5  ;;  %1032 = vst [vmem:[%s4926_s12 + $0xf0] sm:$0xff] %v1031_v6  ;;  %v1039_v10 = vld [vmem:[%s4918_s11 + $0x210] sm:$0xff]  ;;  %v1041_v11 = vld [vmem:[%s4918_s11 + $0x218] sm:$0xff] }
  0x8a   : > { %1034 = vst [vmem:[%s4926_s12 + $0xf8] sm:$0xff] %v1033_v7  ;;  %1036 = vst [vmem:[%s4926_s12 + $0x100] sm:$0xff] %v1035_v8  ;;  %v1043_v12 = vld [vmem:[%s4918_s11 + $0x220] sm:$0xff]  ;;  %v1045_v13 = vld [vmem:[%s4918_s11 + $0x228] sm:$0xff] }
  0x8b   : > { %1038 = vst [vmem:[%s4926_s12 + $0x108] sm:$0xff] %v1037_v9  ;;  %1040 = vst [vmem:[%s4926_s12 + $0x110] sm:$0xff] %v1039_v10  ;;  %v1047_v14 = vld [vmem:[%s4918_s11 + $0x230] sm:$0xff]  ;;  %v1049_v15 = vld [vmem:[%s4918_s11 + $0x238] sm:$0xff] }
  0x8c   : > { %1042 = vst [vmem:[%s4926_s12 + $0x118] sm:$0xff] %v1041_v11  ;;  %1044 = vst [vmem:[%s4926_s12 + $0x120] sm:$0xff] %v1043_v12  ;;  %v1051_v16 = vld [vmem:[%s4918_s11 + $0x280] sm:$0xff]  ;;  %v1053_v17 = vld [vmem:[%s4918_s11 + $0x288] sm:$0xff] }
  0x8d   : > { %1046 = vst [vmem:[%s4926_s12 + $0x128] sm:$0xff] %v1045_v13  ;;  %1048 = vst [vmem:[%s4926_s12 + $0x130] sm:$0xff] %v1047_v14  ;;  %v1055_v18 = vld [vmem:[%s4918_s11 + $0x290] sm:$0xff]  ;;  %v1057_v19 = vld [vmem:[%s4918_s11 + $0x298] sm:$0xff] }
  0x8e   : > { %1050 = vst [vmem:[%s4926_s12 + $0x138] sm:$0xff] %v1049_v15  ;;  %1052 = vst [vmem:[%s4926_s12 + $0x140] sm:$0xff] %v1051_v16  ;;  %v1059_v20 = vld [vmem:[%s4918_s11 + $0x2a0] sm:$0xff]  ;;  %v1061_v21 = vld [vmem:[%s4918_s11 + $0x2a8] sm:$0xff] }
  0x8f   : > { %1054 = vst [vmem:[%s4926_s12 + $0x148] sm:$0xff] %v1053_v17  ;;  %1056 = vst [vmem:[%s4926_s12 + $0x150] sm:$0xff] %v1055_v18  ;;  %v1063_v22 = vld [vmem:[%s4918_s11 + $0x2b0] sm:$0xff]  ;;  %v1065_v23 = vld [vmem:[%s4918_s11 + $0x2b8] sm:$0xff] }
  0x90   : > { %1058 = vst [vmem:[%s4926_s12 + $0x158] sm:$0xff] %v1057_v19  ;;  %1060 = vst [vmem:[%s4926_s12 + $0x160] sm:$0xff] %v1059_v20 }
  0x91   : > { %1062 = vst [vmem:[%s4926_s12 + $0x168] sm:$0xff] %v1061_v21  ;;  %1064 = vst [vmem:[%s4926_s12 + $0x170] sm:$0xff] %v1063_v22 }
  0x92   : > { %1066 = vst [vmem:[%s4926_s12 + $0x178] sm:$0xff] %v1065_v23 }
  0x93 PF: > { %p3496_p11 = scmp.ge.s32.totalorder %s4495_s20, 1  ;;  %p1071_p12 = scmp.lt.s32.totalorder %s4495_s20, 3 }
  0x95   : > { %p1072_p13 = pnand %p3496_p11, %p1071_p12 }
  0x97   : > { %1075 = sbr.rel (%p1072_p13) target bundleno = 662 (0x296), region = 96 }
  0x9e   : > { %v1155_v24 = vlaneseq  ;;  %s3498_s13 = sshll.u32 %s4487_s19, 13  ;;  %s1078_s14 = sand.u32 1, %s4479_s17  }
  0x9f   : > { %v1172_v34 = vstv %s3498_s13  ;;  %s3711_s15 = smul.u32 384, %s1078_s14  ;;  %s3499_s16 = sld [smem:[#allocation9 + $0x2]] }
  0xa0   : > { %v1156_v25 = vshrl.u32 %v1155_v24, 7  ;;  %v1182_v39 = vand.u32 127, %v1155_v24  ;;  %s1207_s22 = sld [smem:[#allocation9]]  ;;  %s3710_s23 = smul.u32 1344, %s1078_s14 }
  0xa1   : > { %s3500_s24 = sld [smem:[#allocation9 + $0x4]]  ;;  %s5022_s17 = scalar_lea.vmem [#allocation11], %s3711_s15 }
  0xa2   : > { %v1157_v26 = vadd.s32 8, %v1156_v25  ;;  %v1158_v27 = vadd.s32 16, %v1156_v25  ;;  %v1159_v28 = vadd.s32 24, %v1156_v25  ;;  %v1160_v29 = vadd.s32 32, %v1156_v25  ;;  %v1129_v49 = vld [vmem:[%s5022_s17] sm:$0xff]  ;;  %s5035_s26 = sld [smem:[#allocation9 + $0x3]] }
  0xa3   : > { %v1161_v30 = vadd.s32 40, %v1156_v25  ;;  %v1162_v31 = vadd.s32 48, %v1156_v25  ;;  %v1163_v32 = vadd.s32 56, %v1156_v25  ;;  %v1164_v33 = vmul.u32 128, %v1156_v25  ;;  %s5037_s27 = sld [smem:[#allocation9 + $0x5]]  ;;  %s5039_s28 = scalar_lea.vmem [#allocation10], %s3710_s23 }
  0xa4   : > { %v1165_v35 = vmul.u32 128, %v1157_v26  ;;  %v1166_v36 = vmul.u32 128, %v1158_v27  ;;  %v5042_v57 = vld [vmem:[%s5039_s28] sm:$0xff]  ;;  %s5057_s29 = sld [smem:[#allocation9 + $0x1]]  ;;  %p1114_p0 = scmp.lt.s32.totalorder %s4487_s19, 1 }
  0xa5   : > { %v1167_v37 = vmul.u32 128, %v1159_v28  ;;  %v1168_v38 = vmul.u32 128, %v1160_v29  ;;  %v1173_v42 = vadd.s32 %v1172_v34, %v1164_v33  ;;  %v1210_v59 = vstv %s3499_s16  ;;  %v5140_v29 = vld [vmem:[%s5039_s28 + $0x8] sm:$0xff] }
  0xa6   : > { %v1169_v40 = vmul.u32 128, %v1161_v30  ;;  %v1170_v41 = vmul.u32 128, %v1162_v31  ;;  %v1174_v43 = vadd.s32 %v1172_v34, %v1165_v35  ;;  %v1175_v45 = vadd.s32 %v1172_v34, %v1166_v36  ;;  %v5143_v30 = vld [vmem:[%s5039_s28 + $0x10] sm:$0xff]  ;;  %v1130_v31 = vld [vmem:[%s5022_s17 + $0x8] sm:$0xff]  ;;  %s8836_s19 = smov (!%p1114_p0, %s4487_s19), 1 }
  0xa7   : > { %v1171_v44 = vmul.u32 128, %v1163_v32  ;;  %v1176_v46 = vadd.s32 %v1172_v34, %v1167_v37  ;;  %v1177_v47 = vadd.s32 %v1172_v34, %v1168_v38  ;;  %v5025_v52 = vadd.s32 %v1182_v39, %v1173_v42  ;;  %v1131_v36 = vld [vmem:[%s5022_s17 + $0x10] sm:$0xff]  ;;  %v5177_v42 = vld [vmem:[%s5039_s28 + $0x20] sm:$0xff]  ;;  %s3712_s30 = smul.u32 48, %s8836_s19 }
  0xa8   : > { %v1178_v48 = vadd.s32 %v1172_v34, %v1169_v40  ;;  %v1179_v50 = vadd.s32 %v1172_v34, %v1170_v41  ;;  %v5027_v53 = vadd.s32 %v1182_v39, %v1174_v43  ;;  %v5029_v54 = vadd.s32 %v1182_v39, %v1175_v45  ;;  %v5174_v41 = vld [vmem:[%s5039_s28 + $0x18] sm:$0xff]  ;;  %v5188_v45 = vld [vmem:[%s5039_s28 + $0x28] sm:$0xff] }
  0xa9   : > { %v1180_v51 = vadd.s32 %v1172_v34, %v1171_v44  ;;  %v5031_v55 = vadd.s32 %v1182_v39, %v1176_v46  ;;  %v5033_v56 = vadd.s32 %v1182_v39, %v1177_v47  ;;  %v5047_v60 = vmul.f32 %v5042_v57, %v1129_v49  ;;  %v5191_v46 = vld [vmem:[%s5039_s28 + $0x30] sm:$0xff]  ;;  %v5194_v47 = vld [vmem:[%s5039_s28 + $0x38] sm:$0xff]  ;;  %s8205_s5 = scalar_lea.vmem %s8352_s3, %s3712_s30 }
  0xaa   : > { %v5044_v58 = vadd.s32 %v1182_v39, %v1178_v48  ;;  %v5049_v61 = vadd.s32 %v1182_v39, %v1179_v50  ;;  %v1220_v63 = vstv %s1207_s22  ;;  %v1259_v0 = vmax.f32 %v5042_v57, 0.0 }
  0xab   : > { %v5051_v62 = vadd.s32 %v1182_v39, %v1180_v51  ;;  %vm1191_vm0 = vcmp.lt.s32.totalorder %v5025_v52, 128  ;;  %vm1192_vm1 = vcmp.lt.s32.totalorder %v5027_v53, 128  ;;  %vm1199_vm2 = vcmp.lt.s32.totalorder %v5025_v52, 256 }
  0xac   : > { %v1211_v1 = vstv %s3500_s24  ;;  %vm1200_vm3 = vcmp.lt.s32.totalorder %v5027_v53, 256  ;;  %vm1201_vm4 = vcmp.lt.s32.totalorder %v5029_v54, 256  ;;  %vm1202_vm5 = vcmp.lt.s32.totalorder %v5031_v55, 256 }
  0xad   : > { %vm1203_vm6 = vcmp.lt.s32.totalorder %v5033_v56, 256  ;;  %vm1193_vm7 = vcmp.lt.s32.totalorder %v5029_v54, 128  ;;  %vm1194_vm8 = vcmp.lt.s32.totalorder %v5031_v55, 128  ;;  %vm1195_vm9 = vcmp.lt.s32.totalorder %v5033_v56, 128 }
  0xae   : > { %vm1204_vm10 = vcmp.lt.s32.totalorder %v5044_v58, 256  ;;  %vm1196_vm11 = vcmp.lt.s32.totalorder %v5044_v58, 128  ;;  %vm1205_vm12 = vcmp.lt.s32.totalorder %v5049_v61, 256  ;;  %vm1206_vm13 = vcmp.lt.s32.totalorder %v5051_v62, 256 }
  0xaf   : > { %v1212_v2 = vsel %vm1199_vm2, %v1210_v59, %v1211_v1  ;;  %v1213_v3 = vsel %vm1200_vm3, %v1210_v59, %v1211_v1  ;;  %v1214_v4 = vsel %vm1201_vm4, %v1210_v59, %v1211_v1  ;;  %v1215_v5 = vsel %vm1202_vm5, %v1210_v59, %v1211_v1 }
  0xb0   : > { %v1216_v6 = vsel %vm1203_vm6, %v1210_v59, %v1211_v1  ;;  %vm1197_vm14 = vcmp.lt.s32.totalorder %v5049_v61, 128  ;;  %v1217_v7 = vsel %vm1204_vm10, %v1210_v59, %v1211_v1  ;;  %v1232_v8 = vstv %s5035_s26  ;;  %v1133_v61 = vld [vmem:[%s5022_s17 + $0x20] sm:$0xff] }
  0xb1   : > { %v1233_v9 = vstv %s5037_s27  ;;  %vm1198_vm15 = vcmp.lt.s32.totalorder %v5051_v62, 128  ;;  %v1218_v10 = vsel %vm1205_vm12, %v1210_v59, %v1211_v1  ;;  %v1219_v11 = vsel %vm1206_vm13, %v1210_v59, %v1211_v1  ;;  %v1132_v59 = vld [vmem:[%s5022_s17 + $0x18] sm:$0xff] }
  0xb2   : > { %v5092_v12 = vsel %vm1191_vm0, %v1220_v63, %v1212_v2  ;;  %v5096_v13 = vsel %vm1192_vm1, %v1220_v63, %v1213_v3  ;;  %v5100_v14 = vsel %vm1193_vm7, %v1220_v63, %v1214_v4  ;;  %v5104_v15 = vsel %vm1194_vm8, %v1220_v63, %v1215_v5 }
  0xb3   : > { %8474 = vst [vmem:[#allocation13_spill] sm:$0xff] %v5100_v14  ;;  %8475 = vst [vmem:[#allocation14_spill] sm:$0xff] %v5104_v15  ;;  %v5108_v16 = vsel %vm1195_vm9, %v1220_v63, %v1216_v6  ;;  %v5112_v17 = vsel %vm1196_vm11, %v1220_v63, %v1217_v7  ;;  %v1234_v18 = vsel %vm1199_vm2, %v1232_v8, %v1233_v9  ;;  %v1242_v20 = vstv %s5057_s29  ;;  %v1134_v6 = vld [vmem:[%s5022_s17 + $0x28] sm:$0xff] }
  0xb4   : > { %8476 = vst [vmem:[#allocation15_spill] sm:$0xff] %v5108_v16  ;;  %8477 = vst [vmem:[#allocation16_spill] sm:$0xff] %v5112_v17  ;;  %v1235_v19 = vsel %vm1200_vm3, %v1232_v8, %v1233_v9  ;;  %v1236_v21 = vsel %vm1201_vm4, %v1232_v8, %v1233_v9  ;;  %v1237_v22 = vsel %vm1202_vm5, %v1232_v8, %v1233_v9  ;;  %v1260_v34 = vmax.f32 %v5140_v29, 0.0 }
  0xb5   : > { %v1238_v23 = vsel %vm1203_vm6, %v1232_v8, %v1233_v9  ;;  %v1239_v24 = vsel %vm1204_vm10, %v1232_v8, %v1233_v9  ;;  %v5129_v25 = vsel %vm1197_vm14, %v1220_v63, %v1218_v10  ;;  %v5133_v26 = vsel %vm1198_vm15, %v1220_v63, %v1219_v11  ;;  %v3504_v11 = vld [vmem:[%s5039_s28 + $0x40] sm:$0xff] }
  0xb6   : > { %8478 = vst [vmem:[#allocation17_spill] sm:$0xff] %v5129_v25  ;;  %8479 = vst [vmem:[#allocation18_spill] sm:$0xff] %v5133_v26  ;;  %v1240_v27 = vsel %vm1205_vm12, %v1232_v8, %v1233_v9  ;;  %v1241_v28 = vsel %vm1206_vm13, %v1232_v8, %v1233_v9  ;;  %v5148_v32 = vsel %vm1191_vm0, %v1242_v20, %v1234_v18  ;;  %v1261_v35 = vmax.f32 %v5143_v30, 0.0 }
  0xb7   : > { %8480 = vst [vmem:[#allocation19_spill] sm:$0xff] %v5148_v32  ;;  %v5152_v33 = vsel %vm1192_vm1, %v1242_v20, %v1235_v19  ;;  %v5159_v37 = vsel %vm1193_vm7, %v1242_v20, %v1236_v21  ;;  %v5163_v38 = vsel %vm1194_vm8, %v1242_v20, %v1237_v22  ;;  %v5167_v39 = vsel %vm1195_vm9, %v1242_v20, %v1238_v23  ;;  %v3505_v21 = vld [vmem:[%s5039_s28 + $0x48] sm:$0xff] }
  0xb8   : > { %8481 = vst [vmem:[#allocation20_spill] sm:$0xff] %v5152_v33  ;;  %8482 = vst [vmem:[#allocation21_spill] sm:$0xff] %v5159_v37  ;;  %v5171_v40 = vsel %vm1196_vm11, %v1242_v20, %v1239_v24  ;;  %v5181_v43 = vsel %vm1197_vm14, %v1242_v20, %v1240_v27  ;;  %v5185_v44 = vsel %vm1198_vm15, %v1242_v20, %v1241_v28  ;;  %v1262_v48 = vmax.f32 %v5174_v41, 0.0  ;;  %v3506_v27 = vld [vmem:[%s5039_s28 + $0x50] sm:$0xff]  ;;  %v3565_v32 = vld [vmem:[%s5022_s17 + $0x128] sm:$0xff] }
  0xb9   : > { %8483 = vst [vmem:[#allocation22_spill] sm:$0xff] %v5163_v38  ;;  %8484 = vst [vmem:[#allocation23_spill] sm:$0xff] %v5167_v39  ;;  %v1263_v49 = vmax.f32 %v5177_v42, 0.0  ;;  %v1264_v50 = vmax.f32 %v5188_v45, 0.0  ;;  %v1265_v51 = vmax.f32 %v5191_v46, 0.0  ;;  %v5202_v53 = vmul.f32 %v5140_v29, %v1130_v31  ;;  %v1135_v28 = vld [vmem:[%s5022_s17 + $0x30] sm:$0xff] }
  0xba   : > { %8485 = vst [vmem:[#allocation24_spill] sm:$0xff] %v5171_v40  ;;  %8486 = vst [vmem:[#allocation25_spill] sm:$0xff] %v5181_v43  ;;  %v5205_v54 = vmul.f32 %v5143_v30, %v1131_v36  ;;  %v1283_v55 = vand.u32 2147483647, %v5042_v57  ;;  %v1284_v56 = vand.u32 2147483647, %v5140_v29  ;;  %3755 = vrcp.f32 %v5092_v12 }
  0xbb   : > { %8487 = vst [vmem:[#allocation26_spill] sm:$0xff] %v5185_v44  ;;  %v1285_v58 = vand.u32 2147483647, %v5143_v30  ;;  %v1286_v62 = vand.u32 2147483647, %v5174_v41  ;;  %3757 = vrcp.f32 %v5096_v13  ;;  %v1270_v31 = vmul.f32 %v5174_v41, %v1132_v59  ;;  %v3512_v30 = vld [vmem:[%s5039_s28 + $0x80] sm:$0xff] }
  0xbc   : > { %v1287_v63 = vand.u32 2147483647, %v5177_v42  ;;  %v1288_v1 = vand.u32 2147483647, %v5188_v45  ;;  %v1289_v2 = vand.u32 2147483647, %v5191_v46  ;;  %3759 = vrcp.f32 %v5100_v14 }
  0xbd   : > { %v1290_v3 = vand.u32 2147483647, %v5194_v47  ;;  %v1291_v4 = vsub.f32 0.0, %v1283_v55  ;;  %v1292_v5 = vsub.f32 0.0, %v1284_v56  ;;  %v1293_v7 = vsub.f32 0.0, %v1285_v58  ;;  %v3507_v56 = vld [vmem:[%s5039_s28 + $0x58] sm:$0xff] }
  0xbe   : > { %v1294_v8 = vsub.f32 0.0, %v1286_v62  ;;  %v1295_v9 = vsub.f32 0.0, %v1287_v63  ;;  %v1296_v10 = vsub.f32 0.0, %v1288_v1  ;;  %v1297_v18 = vsub.f32 0.0, %v1289_v2  ;;  %v1136_v58 = vld [vmem:[%s5022_s17 + $0x38] sm:$0xff]  ;;  %v3508_v63 = vld [vmem:[%s5039_s28 + $0x60] sm:$0xff] }
  0xbf   : > { %v1299_v19 = vmul.f32 1.442695, %v1291_v4  ;;  %v1301_v20 = vmul.f32 1.442695, %v1292_v5  ;;  %v1298_v22 = vsub.f32 0.0, %v1290_v3  ;;  %v1271_v36 = vmul.f32 %v5177_v42, %v1133_v61  ;;  %v3509_v5 = vld [vmem:[%s5039_s28 + $0x68] sm:$0xff] }
  0xc0   : > { %v1303_v23 = vmul.f32 1.442695, %v1293_v7  ;;  %v1305_v24 = vmul.f32 1.442695, %v1294_v8  ;;  %v1307_v55 = vmul.f32 1.442695, %v1295_v9  ;;  %v1272_v3 = vmul.f32 %v5188_v45, %v1134_v6 }
  0xc1   : > { %3761 = vpow2.f32 %v1299_v19  ;;  %v1309_v62 = vmul.f32 1.442695, %v1296_v10  ;;  %v1356_v1 = vsub.f32 0.0, %v3504_v11  ;;  %v1357_v2 = vsub.f32 0.0, %v3505_v21  ;;  %v3510_v8 = vld [vmem:[%s5039_s28 + $0x70] sm:$0xff]  ;;  %v3511_v9 = vld [vmem:[%s5039_s28 + $0x78] sm:$0xff] }
  0xc2   : > { %3763 = vpow2.f32 %v1301_v20  ;;  %v1311_v4 = vmul.f32 1.442695, %v1297_v18  ;;  %v1358_v7 = vsub.f32 0.0, %v3506_v27  ;;  %v1273_v59 = vmul.f32 %v5191_v46, %v1135_v28 }
  0xc3   : > { %3765 = vpow2.f32 %v1303_v23  ;;  %v1313_v61 = vmul.f32 1.442695, %v1298_v22  ;;  %v1359_v19 = vsub.f32 0.0, %v3507_v56  ;;  %v1274_v52 = vmul.f32 %v5194_v47, %v1136_v58 }
  0xc4   : > { %3767 = vpow2.f32 %v1305_v24  ;;  %v1360_v10 = vsub.f32 0.0, %v3508_v63  ;;  %v1364_v20 = vmul.f32 1.442695, %v1356_v1  ;;  %v5236_v11 = vpop.eup %3755  ;;  %v5241_v6 = vsub.f32 %v1259_v0, %v5047_v60  ;;  %v3519_v63 = vld [vmem:[%s5039_s28 + $0xb8] sm:$0xff] }
  0xc5   : > { %3769 = vpow2.f32 %v1307_v55  ;;  %8488 = vst [vmem:[#allocation27_spill] sm:$0xff] %v5236_v11  ;;  %v1361_v18 = vsub.f32 0.0, %v3509_v5  ;;  %v1366_v21 = vmul.f32 1.442695, %v1357_v2  ;;  %v1362_v22 = vsub.f32 0.0, %v3510_v8  ;;  %v5253_v0 = vpop.eup %3757 }
  0xc6   : > { %3771 = vpow2.f32 %v1309_v62  ;;  %v1363_v23 = vsub.f32 0.0, %v3511_v9  ;;  %v1368_v24 = vmul.f32 1.442695, %v1358_v7  ;;  %v5246_v27 = vsub.f32 %v1260_v34, %v5202_v53  ;;  %8491 = vst [vmem:[#allocation30_spill] sm:$0xff] %v5253_v0  ;;  %v3514_v53 = vld [vmem:[%s5039_s28 + $0x90] sm:$0xff] }
  0xc7   : > { %3773 = vpow2.f32 %v1311_v4  ;;  %v5251_v57 = vsub.f32 %v1261_v35, %v5205_v54  ;;  %v1370_v60 = vmul.f32 1.442695, %v1359_v19  ;;  %v5257_v28 = vsub.f32 %v1262_v48, %v1270_v31  ;;  %v3513_v35 = vld [vmem:[%s5039_s28 + $0x88] sm:$0xff]  ;;  %v5266_v54 = vpop.eup %3759  ;;  %v3516_v31 = vld [vmem:[%s5039_s28 + $0xa0] sm:$0xff] }
  0xc8   : > { %8489 = vst [vmem:[#allocation28_spill] sm:$0xff] %v5246_v27  ;;  %3775 = vpow2.f32 %v1313_v61  ;;  %v5261_v29 = vsub.f32 %v1263_v49, %v1271_v36  ;;  %v1372_v34 = vmul.f32 1.442695, %v1360_v10  ;;  %8494 = vst [vmem:[#allocation33_spill] sm:$0xff] %v5266_v54  ;;  %v5270_v55 = vsub.f32 %v1264_v50, %v1272_v3  ;;  %v3515_v49 = vld [vmem:[%s5039_s28 + $0x98] sm:$0xff]  ;;  %v3517_v36 = vld [vmem:[%s5039_s28 + $0xa8] sm:$0xff] }
  0xc9   : > { %8490 = vst [vmem:[#allocation29_spill] sm:$0xff] %v5251_v57  ;;  %8492 = vst [vmem:[#allocation31_spill] sm:$0xff] %v5257_v28  ;;  %3777 = vpow2.f32 %v1364_v20  ;;  %v5274_v41 = vsub.f32 %v1265_v51, %v1273_v59  ;;  %v8497_v42 = vmax.f32 %v5194_v47, 0.0  ;;  %v5283_v58 = vmul.f32 1.442695, %v1361_v18  ;;  %v3518_v51 = vld [vmem:[%s5039_s28 + $0xb0] sm:$0xff] }
  0xca   : > { %8493 = vst [vmem:[#allocation32_spill] sm:$0xff] %v5261_v29  ;;  %8495 = vst [vmem:[#allocation34_spill] sm:$0xff] %v5270_v55  ;;  %3779 = vpow2.f32 %v1366_v21  ;;  %v5285_v45 = vmul.f32 1.442695, %v1362_v22  ;;  %v5287_v50 = vmul.f32 1.442695, %v1363_v23 }
  0xcb   : > { %8496 = vst [vmem:[#allocation35_spill] sm:$0xff] %v5274_v41  ;;  %v5278_v48 = vsub.f32 %v8497_v42, %v1274_v52  ;;  %v3762_v56 = vpop.eup %3761  ;;  %3781 = vpow2.f32 %v1368_v24  ;;  %v1413_v47 = vsub.f32 0.0, %v3512_v30  ;;  %v1414_v52 = vsub.f32 0.0, %v3513_v35  ;;  %v3520_v20 = vld [vmem:[%s5039_s28 + $0xc0] sm:$0xff]  ;;  %v3521_v18 = vld [vmem:[%s5039_s28 + $0xc8] sm:$0xff]  ;;  %v3522_v21 = vld [vmem:[%s5039_s28 + $0xd0] sm:$0xff] }
  0xcc   : > { %v3764_v46 = vpop.eup %3763  ;;  %v1315_v62 = vadd.f32 1.0, %v3762_v56  ;;  %3783 = vpow2.f32 %v1370_v60  ;;  %v1415_v3 = vsub.f32 0.0, %v3514_v53  ;;  %v1416_v4 = vsub.f32 0.0, %v3515_v49  ;;  %v3524_v30 = vld [vmem:[%s5039_s28 + $0xe0] sm:$0xff]  ;;  %v3557_v28 = vld [vmem:[%s5022_s17 + $0xe8] sm:$0xff] }
  0xcd   : > { %8498 = vst [vmem:[#allocation36_spill] sm:$0xff] %v5278_v48  ;;  %v3766_v1 = vpop.eup %3765  ;;  %v1316_v2 = vadd.f32 1.0, %v3764_v46  ;;  %3785 = vpow2.f32 %v1372_v34  ;;  %v1417_v59 = vsub.f32 0.0, %v3516_v31  ;;  %v1418_v61 = vsub.f32 0.0, %v3517_v36  ;;  %v3523_v34 = vld [vmem:[%s5039_s28 + $0xd8] sm:$0xff]  ;;  %v3525_v31 = vld [vmem:[%s5039_s28 + $0xe8] sm:$0xff] }
  0xce   : > { %v3768_v5 = vpop.eup %3767  ;;  %v1317_v7 = vadd.f32 1.0, %v3766_v1  ;;  %3787 = vlog2.f32 %v1315_v62  ;;  %v1419_v19 = vsub.f32 0.0, %v3518_v51  ;;  %v1420_v10 = vsub.f32 0.0, %v3519_v63  ;;  %v3526_v36 = vld [vmem:[%s5039_s28 + $0xf0] sm:$0xff]  ;;  %v3527_v63 = vld [vmem:[%s5039_s28 + $0xf8] sm:$0xff]  ;;  %v5358_v29 = vld [vmem:[%s5022_s17 + $0x40] sm:$0xff] }
  0xcf   : > { %v3770_v8 = vpop.eup %3769  ;;  %v1318_v9 = vadd.f32 1.0, %v3768_v5  ;;  %3789 = vlog2.f32 %v1316_v2  ;;  %v5294_v24 = vmul.f32 1.442695, %v1413_v47  ;;  %v5296_v60 = vmul.f32 1.442695, %v1414_v52  ;;  %v3528_v47 = vld [vmem:[%s5039_s28 + $0x100] sm:$0xff] }
  0xd0   : > { %v3772_v22 = vpop.eup %3771  ;;  %v1319_v23 = vadd.f32 1.0, %v3770_v8  ;;  %3791 = vlog2.f32 %v1317_v7  ;;  %v5300_v42 = vmul.f32 1.442695, %v1415_v3  ;;  %v5302_v49 = vmul.f32 1.442695, %v1416_v4  ;;  %v3529_v4 = vld [vmem:[%s5039_s28 + $0x108] sm:$0xff] }
  0xd1   : > { %v3774_v35 = vpop.eup %3773  ;;  %v1320_v53 = vadd.f32 1.0, %v3772_v22  ;;  %3793 = vlog2.f32 %v1318_v9  ;;  %v5306_v62 = vmul.f32 1.442695, %v1417_v59  ;;  %v5308_v51 = vmul.f32 1.442695, %v1418_v61  ;;  %v3530_v5 = vld [vmem:[%s5039_s28 + $0x110] sm:$0xff] }
  0xd2   : > { %v3776_v56 = vpop.eup %3775  ;;  %v1321_v46 = vadd.f32 1.0, %v3774_v35  ;;  %3795 = vlog2.f32 %v1319_v23  ;;  %v5312_v2 = vmul.f32 1.442695, %v1419_v19  ;;  %v5314_v3 = vmul.f32 1.442695, %v1420_v10  ;;  %v3531_v59 = vld [vmem:[%s5039_s28 + $0x118] sm:$0xff] }
  0xd3   : > { %v3778_v52 = vpop.eup %3777  ;;  %v1322_v1 = vadd.f32 1.0, %v3776_v56  ;;  %3797 = vlog2.f32 %v1320_v53  ;;  %v3532_v61 = vld [vmem:[%s5039_s28 + $0x120] sm:$0xff]  ;;  %v5320_v8 = vmul.f32 1.442695, %v3520_v20  ;;  %v5322_v9 = vmul.f32 1.442695, %v3521_v18 }
  0xd4   : > { %v3780_v7 = vpop.eup %3779  ;;  %3799 = vlog2.f32 %v1321_v46  ;;  %v5324_v22 = vmul.f32 1.442695, %v3522_v21  ;;  %v1380_v10 = vadd.f32 1.0, %v3778_v52  ;;  %v3533_v23 = vld [vmem:[%s5039_s28 + $0x128] sm:$0xff]  ;;  %v5327_v35 = vmul.f32 1.442695, %v3523_v34 }
  0xd5   : > { %v3782_v19 = vpop.eup %3781  ;;  %3801 = vlog2.f32 %v1322_v1  ;;  %v5329_v53 = vmul.f32 1.442695, %v3524_v30  ;;  %v3552_v56 = vld [vmem:[%s5022_s17 + $0xc0] sm:$0xff]  ;;  %v3553_v46 = vld [vmem:[%s5022_s17 + $0xc8] sm:$0xff]  ;;  %v1381_v20 = vadd.f32 1.0, %v3780_v7  ;;  %v3534_v18 = vld [vmem:[%s5039_s28 + $0x130] sm:$0xff] }
  0xd6   : > { %v3784_v54 = vpop.eup %3783  ;;  %3803 = vpow2.f32 %v5283_v58  ;;  %v5335_v21 = vmul.f32 1.442695, %v3525_v31  ;;  %v5337_v0 = vmul.f32 1.442695, %v3526_v36  ;;  %v3554_v52 = vld [vmem:[%s5022_s17 + $0xd0] sm:$0xff]  ;;  %v1382_v34 = vadd.f32 1.0, %v3782_v19 }
  0xd7   : > { %v3786_v1 = vpop.eup %3785  ;;  %3805 = vpow2.f32 %v5285_v45  ;;  %v3535_v30 = vld [vmem:[%s5039_s28 + $0x138] sm:$0xff]  ;;  %v5342_v11 = vmul.f32 1.442695, %v3527_v63  ;;  %v5344_v48 = vmul.f32 1.442695, %v3528_v47  ;;  %v1383_v31 = vadd.f32 1.0, %v3784_v54 }
  0xd8   : > { %v3555_v58 = vld [vmem:[%s5022_s17 + $0xd8] sm:$0xff]  ;;  %v3788_v7 = vpop.eup %3787  ;;  %3807 = vpow2.f32 %v5287_v50  ;;  %v5348_v36 = vmul.f32 1.442695, %v3529_v4  ;;  %v5350_v41 = vmul.f32 1.442695, %v3530_v5  ;;  %v3556_v45 = vld [vmem:[%s5022_s17 + $0xe0] sm:$0xff] }
  0xd9   : > { %v3790_v19 = vpop.eup %3789  ;;  %v1384_v55 = vadd.f32 1.0, %v3786_v1  ;;  %3809 = vrcp.f32 %v1380_v10  ;;  %v5353_v63 = vmul.f32 1.442695, %v3531_v59  ;;  %v5355_v47 = vmul.f32 1.442695, %v3532_v61  ;;  %8502 = vst [vmem:[#allocation40_spill] sm:$0xff] %v5358_v29 }
  0xda   : > { %8499 = vst [vmem:[#allocation37_spill] sm:$0xff] %v5350_v41  ;;  %v3792_v50 = vpop.eup %3791  ;;  %3811 = vrcp.f32 %v1381_v20  ;;  %v5361_v54 = vmul.f32 1.442695, %v3533_v23  ;;  %v3558_v4 = vld [vmem:[%s5022_s17 + $0xf0] sm:$0xff]  ;;  %v3559_v5 = vld [vmem:[%s5022_s17 + $0xf8] sm:$0xff]  ;;  %v1611_v57 = vmul.f32 0.5, %v3552_v56 }
  0xdb   : > { %8500 = vst [vmem:[#allocation38_spill] sm:$0xff] %v5353_v63  ;;  %8501 = vst [vmem:[#allocation39_spill] sm:$0xff] %v5355_v47  ;;  %v1612_v27 = vmul.f32 0.5, %v3553_v46  ;;  %v3794_v1 = vpop.eup %3793  ;;  %3813 = vrcp.f32 %v1382_v34  ;;  %v5365_v10 = vmul.f32 1.442695, %v3534_v18  ;;  %v5368_v59 = vld [vmem:[%s5022_s17 + $0x48] sm:$0xff] }
  0xdc   : > { %8503 = vst [vmem:[#allocation41_spill] sm:$0xff] %v5361_v54  ;;  %8505 = vst [vmem:[#allocation43_spill] sm:$0xff] %v5368_v59  ;;  %v5371_v61 = vld [vmem:[%s5022_s17 + $0x50] sm:$0xff]  ;;  %v1613_v44 = vmul.f32 0.5, %v3554_v52  ;;  %v1614_v43 = vmul.f32 0.5, %v3555_v58  ;;  %v5373_v20 = vpop.eup %3795  ;;  %3815 = vrcp.f32 %v1383_v31  ;;  %v5378_v56 = vld [vmem:[%s5022_s17 + $0x58] sm:$0xff] }
  0xdd   : > { %8504 = vst [vmem:[#allocation42_spill] sm:$0xff] %v5365_v10  ;;  %8506 = vst [vmem:[#allocation44_spill] sm:$0xff] %v5371_v61  ;;  %v1324_v23 = vmul.f32 0.6931472, %v3788_v7  ;;  %v5375_v40 = vmul.f32 1.442695, %v3535_v30  ;;  %v5380_v34 = vpop.eup %3797  ;;  %3817 = vrcp.f32 %v1384_v55 }
  0xde   : > { %8507 = vst [vmem:[#allocation45_spill] sm:$0xff] %v5373_v20  ;;  %8509 = vst [vmem:[#allocation47_spill] sm:$0xff] %v5378_v56  ;;  %v1615_v46 = vmul.f32 0.5, %v3556_v45  ;;  %v5383_v18 = vld [vmem:[%s5022_s17 + $0x60] sm:$0xff]  ;;  %v1616_v39 = vmul.f32 0.5, %v3557_v28  ;;  %v5385_v52 = vmul.f32 0.5, %v3558_v4  ;;  %v5389_v20 = vpop.eup %3799  ;;  %3819 = vpow2.f32 %v5294_v24 }
  0xdf   : > { %8508 = vst [vmem:[#allocation46_spill] sm:$0xff] %v5375_v40  ;;  %8510 = vst [vmem:[#allocation48_spill] sm:$0xff] %v5380_v34  ;;  %v5387_v58 = vmul.f32 0.5, %v3559_v5  ;;  %v5391_v7 = vmul.f32 0.6931472, %v3790_v19  ;;  %v5395_v30 = vld [vmem:[%s5022_s17 + $0x68] sm:$0xff]  ;;  %v5401_v45 = vsub.f32 %v5358_v29, %v1611_v57  ;;  %v5404_v28 = vsub.f32 %v5368_v59, %v1612_v27  ;;  %v5406_v55 = vpop.eup %3801 }
  0xe0   : > { %8511 = vst [vmem:[#allocation49_spill] sm:$0xff] %v5383_v18  ;;  %8512 = vst [vmem:[#allocation50_spill] sm:$0xff] %v5389_v20  ;;  %v5398_v31 = vld [vmem:[%s5022_s17 + $0x70] sm:$0xff]  ;;  %v5408_v4 = vmul.f32 0.6931472, %v3792_v50  ;;  %3821 = vpow2.f32 %v5296_v60  ;;  %v5412_v19 = vld [vmem:[%s5022_s17 + $0x78] sm:$0xff]  ;;  %v5415_v24 = vsub.f32 %v5371_v61, %v1613_v44  ;;  %v5418_v5 = vsub.f32 %v5378_v56, %v1614_v43  ;;  %v3804_v20 = vpop.eup %3803 }
  0xe1   : > { %8513 = vst [vmem:[#allocation51_spill] sm:$0xff] %v5391_v7  ;;  %8514 = vst [vmem:[#allocation52_spill] sm:$0xff] %v5395_v30  ;;  %v5420_v34 = vmul.f32 0.6931472, %v3794_v1  ;;  %3823 = vpow2.f32 %v5300_v42  ;;  %v5427_v60 = vsub.f32 %v5383_v18, %v1615_v46  ;;  %v3806_v50 = vpop.eup %3805  ;;  %v3560_v7 = vld [vmem:[%s5022_s17 + $0x100] sm:$0xff]  ;;  %v5432_v38 = vsub.f32 %v5395_v30, %v1616_v39  ;;  %v3561_v42 = vld [vmem:[%s5022_s17 + $0x108] sm:$0xff] }
  0xe2   : > { %8515 = vst [vmem:[#allocation53_spill] sm:$0xff] %v5398_v31  ;;  %8516 = vst [vmem:[#allocation54_spill] sm:$0xff] %v5406_v55  ;;  %v5423_v55 = vadd.f32 %v1324_v23, %v5241_v6  ;;  %3825 = vpow2.f32 %v5302_v49  ;;  %v5436_v1 = vsub.f32 %v5398_v31, %v5385_v52  ;;  %v3808_v6 = vpop.eup %3807  ;;  %v1386_v23 = vadd.f32 1.0, %v3806_v50  ;;  %v3564_v50 = vld [vmem:[%s5022_s17 + $0x120] sm:$0xff] }
  0xe3   : > { %8517 = vst [vmem:[#allocation55_spill] sm:$0xff] %v5408_v4  ;;  %8518 = vst [vmem:[#allocation56_spill] sm:$0xff] %v5412_v19  ;;  %v1385_v4 = vadd.f32 1.0, %v3804_v20  ;;  %3827 = vpow2.f32 %v5306_v62  ;;  %v3562_v20 = vld [vmem:[%s5022_s17 + $0x110] sm:$0xff]  ;;  %v5444_v49 = vsub.f32 %v5412_v19, %v5387_v58  ;;  %v5449_v37 = vpop.eup %3809  ;;  %v1387_v33 = vadd.f32 1.0, %v3808_v6 }
  0xe4   : > { %8519 = vst [vmem:[#allocation57_spill] sm:$0xff] %v5420_v34  ;;  %8520 = vst [vmem:[#allocation58_spill] sm:$0xff] %v5423_v55  ;;  %v3563_v55 = vld [vmem:[%s5022_s17 + $0x118] sm:$0xff]  ;;  %v5447_v34 = vadd.f32 %v5358_v29, %v1611_v57  ;;  %v5454_v62 = vadd.f32 %v5368_v59, %v1612_v27  ;;  %v5457_v26 = vadd.f32 %v5371_v61, %v1613_v44  ;;  %v5459_v25 = vpop.eup %3811  ;;  %v3566_v57 = vld [vmem:[%s5022_s17 + $0x130] sm:$0xff]  ;;  %v1635_v6 = vmul.f32 0.5, %v3560_v7 }
  0xe5   : > { %8521 = vst [vmem:[#allocation59_spill] sm:$0xff] %v5449_v37  ;;  %3829 = vrcp.f32 %v1385_v4  ;;  %8522 = vst [vmem:[#allocation60_spill] sm:$0xff] %v5459_v25  ;;  %v3567_v29 = vld [vmem:[%s5022_s17 + $0x138] sm:$0xff]  ;;  %v5464_v17 = vadd.f32 %v5378_v56, %v1614_v43  ;;  %v5467_v4 = vadd.f32 %v5383_v18, %v1615_v46  ;;  %v5469_v40 = vpop.eup %3813  ;;  %v5472_v44 = vld [vmem:[%s5022_s17 + $0x80] sm:$0xff]  ;;  %v1637_v61 = vmul.f32 0.5, %v3562_v20 }
  0xe6   : > { %3831 = vrcp.f32 %v1386_v23  ;;  %8523 = vst [vmem:[#allocation61_spill] sm:$0xff] %v5469_v40  ;;  %8524 = vst [vmem:[#allocation62_spill] sm:$0xff] %v5472_v44  ;;  %v5475_v27 = vld [vmem:[%s5022_s17 + $0x88] sm:$0xff]  ;;  %v1636_v23 = vmul.f32 0.5, %v3561_v42  ;;  %v1638_v59 = vmul.f32 0.5, %v3563_v55  ;;  %v5477_v10 = vpop.eup %3815  ;;  %v5481_v43 = vld [vmem:[%s5022_s17 + $0x90] sm:$0xff] }
  0xe7   : > { %3833 = vrcp.f32 %v1387_v33  ;;  %8525 = vst [vmem:[#allocation63_spill] sm:$0xff] %v5475_v27  ;;  %8526 = vst [vmem:[#allocation64_spill] sm:$0xff] %v5477_v10  ;;  %v5484_v46 = vld [vmem:[%s5022_s17 + $0x98] sm:$0xff]  ;;  %v5487_v33 = vadd.f32 %v5395_v30, %v1616_v39  ;;  %v1639_v7 = vmul.f32 0.5, %v3564_v50  ;;  %v1640_v18 = vmul.f32 0.5, %v3565_v32  ;;  %v5489_v56 = vpop.eup %3817  ;;  %v5493_v55 = vld [vmem:[%s5022_s17 + $0xa0] sm:$0xff] }
  0xe8   : > { %3835 = vpow2.f32 %v5308_v51  ;;  %8527 = vst [vmem:[#allocation65_spill] sm:$0xff] %v5481_v43  ;;  %8528 = vst [vmem:[#allocation66_spill] sm:$0xff] %v5484_v46  ;;  %v5496_v42 = vld [vmem:[%s5022_s17 + $0xa8] sm:$0xff]  ;;  %v5500_v51 = vadd.f32 %v5398_v31, %v5385_v52  ;;  %v1641_v20 = vmul.f32 0.5, %v3566_v57  ;;  %v1642_v10 = vmul.f32 0.5, %v3567_v29  ;;  %v3820_v40 = vpop.eup %3819  ;;  %v5504_v39 = vld [vmem:[%s5022_s17 + $0xb0] sm:$0xff] }
  0xe9   : > { %8529 = vst [vmem:[#allocation67_spill] sm:$0xff] %v5489_v56  ;;  %3837 = vpow2.f32 %v5312_v2  ;;  %8530 = vst [vmem:[#allocation68_spill] sm:$0xff] %v5493_v55  ;;  %v5507_v32 = vld [vmem:[%s5022_s17 + $0xb8] sm:$0xff]  ;;  %v5511_v2 = vadd.f32 %v5412_v19, %v5387_v58  ;;  %v5514_v50 = vsub.f32 %v5472_v44, %v1635_v6  ;;  %v5517_v30 = vsub.f32 %v5475_v27, %v1636_v23 }
  0xea   : > { %8531 = vst [vmem:[#allocation69_spill] sm:$0xff] %v5496_v42  ;;  %3839 = vpow2.f32 %v5314_v3  ;;  %8532 = vst [vmem:[#allocation70_spill] sm:$0xff] %v5504_v39  ;;  %v3822_v52 = vpop.eup %3821  ;;  %v1437_v57 = vadd.f32 1.0, %v3820_v40  ;;  %v5521_v29 = vsub.f32 %v5481_v43, %v1637_v61  ;;  %v5524_v3 = vsub.f32 %v5484_v46, %v1638_v59 }
  0xeb   : > { %8533 = vst [vmem:[#allocation71_spill] sm:$0xff] %v5507_v32  ;;  %8534 = vst [vmem:[#allocation72_spill] sm:$0xff] %v5514_v50  ;;  %3841 = vpow2.f32 %v5320_v8  ;;  %v3824_v31 = vpop.eup %3823  ;;  %v1438_v56 = vadd.f32 1.0, %v3822_v52  ;;  %v5528_v58 = vsub.f32 %v5493_v55, %v1639_v7  ;;  %v5531_v19 = vsub.f32 %v5496_v42, %v1640_v18 }
  0xec   : > { %8535 = vst [vmem:[#allocation73_spill] sm:$0xff] %v5521_v29  ;;  %8536 = vst [vmem:[#allocation74_spill] sm:$0xff] %v5524_v3  ;;  %3843 = vpow2.f32 %v5322_v9  ;;  %v3826_v54 = vpop.eup %3825  ;;  %v1439_v40 = vadd.f32 1.0, %v3824_v31  ;;  %v5534_v8 = vsub.f32 %v5504_v39, %v1641_v20  ;;  %v5537_v47 = vsub.f32 %v5507_v32, %v1642_v10 }
  0xed   : > { %8537 = vst [vmem:[#allocation75_spill] sm:$0xff] %v5528_v58  ;;  %3845 = vrcp.f32 %v1437_v57  ;;  %v3828_v16 = vpop.eup %3827  ;;  %v1440_v63 = vadd.f32 1.0, %v3826_v54  ;;  %v5540_v9 = vadd.f32 %v5472_v44, %v1635_v6  ;;  %v5543_v52 = vadd.f32 %v5475_v27, %v1636_v23 }
  0xee   : > { %8538 = vst [vmem:[#allocation76_spill] sm:$0xff] %v5534_v8  ;;  %3847 = vrcp.f32 %v1438_v56  ;;  %v1441_v41 = vadd.f32 1.0, %v3828_v16  ;;  %v5548_v31 = vadd.f32 %v5481_v43, %v1637_v61  ;;  %v5551_v57 = vadd.f32 %v5484_v46, %v1638_v59 }
  0xef   : > { %v5545_v15 = vpop.eup %3829  ;;  %3849 = vrcp.f32 %v1439_v40  ;;  %v5556_v54 = vadd.f32 %v5493_v55, %v1639_v7  ;;  %v5559_v56 = vadd.f32 %v5496_v42, %v1640_v18  ;;  %v5562_v6 = vadd.f32 %v5504_v39, %v1641_v20 }
  0xf0   : > { %8539 = vst [vmem:[#allocation77_spill] sm:$0xff] %v5545_v15  ;;  %v5553_v14 = vpop.eup %3831  ;;  %3851 = vrcp.f32 %v1440_v63  ;;  %v5567_v61 = vadd.f32 %v5507_v32, %v1642_v10  ;;  %v1763_v59 = vsub.f32 %v5447_v34, %v5401_v45  ;;  %v1764_v63 = vsub.f32 %v5454_v62, %v5404_v28 }
  0xf1   : > { %8540 = vst [vmem:[#allocation78_spill] sm:$0xff] %v5553_v14  ;;  %v5564_v16 = vpop.eup %3833  ;;  %3853 = vrcp.f32 %v1441_v41  ;;  %v1765_v18 = vsub.f32 %v5457_v26, %v5415_v24  ;;  %v1766_v7 = vsub.f32 %v5464_v17, %v5418_v5  ;;  %v1767_v41 = vsub.f32 %v5467_v4, %v5427_v60 }
  0xf2   : > { %8541 = vst [vmem:[#allocation79_spill] sm:$0xff] %v5564_v16  ;;  %v3836_v23 = vpop.eup %3835  ;;  %3855 = vpow2.f32 %v5324_v22  ;;  %v1768_v40 = vsub.f32 %v5487_v33, %v5432_v38  ;;  %v1769_v32 = vsub.f32 %v5500_v51, %v5436_v1  ;;  %v1770_v42 = vsub.f32 %v5511_v2, %v5444_v49 }
  0xf3   : > { %v3838_v10 = vpop.eup %3837  ;;  %v1442_v20 = vadd.f32 1.0, %v3836_v23  ;;  %3857 = vpow2.f32 %v5327_v35  ;;  %v1771_v55 = vsub.f32 %v5540_v9, %v5514_v50  ;;  %v1772_v35 = vsub.f32 %v5543_v52, %v5517_v30 }
  0xf4   : > { %v3840_v22 = vpop.eup %3839  ;;  %v1443_v39 = vadd.f32 1.0, %v3838_v10  ;;  %3859 = vpow2.f32 %v5329_v53  ;;  %v1773_v43 = vsub.f32 %v5548_v31, %v5521_v29  ;;  %v1774_v53 = vsub.f32 %v5551_v57, %v5524_v3 }
  0xf5   : > { %v3842_v46 = vpop.eup %3841  ;;  %v1444_v23 = vadd.f32 1.0, %v3840_v22  ;;  %3861 = vrcp.f32 %v1442_v20  ;;  %v1775_v44 = vsub.f32 %v5556_v54, %v5528_v58  ;;  %v1776_v22 = vsub.f32 %v5559_v56, %v5531_v19 }
  0xf6   : > { %v3844_v27 = vpop.eup %3843  ;;  %3863 = vrcp.f32 %v1443_v39  ;;  %v1495_v10 = vmul.f32 %v3842_v46, %v5092_v12  ;;  %v1777_v29 = vsub.f32 %v5562_v6, %v5534_v8  ;;  %v1778_v46 = vsub.f32 %v5567_v61, %v5537_v47 }
  0xf7   : > { %v5599_v50 = vpop.eup %3845  ;;  %3865 = vrcp.f32 %v1444_v23  ;;  %v1496_v20 = vmul.f32 %v3844_v27, %v5096_v13  ;;  %v5611_v58 = vmul.f32 %v1771_v55, %v1763_v59  ;;  %v5616_v27 = vmul.f32 %v1772_v35, %v1764_v63 }
  0xf8   : > { %8542 = vst [vmem:[#allocation80_spill] sm:$0xff] %v5599_v50  ;;  %v5606_v39 = vpop.eup %3847  ;;  %3867 = vpow2.f32 %v5335_v21  ;;  %v1563_v12 = vmul.f32 0.5, %v1495_v10  ;;  %v5618_v23 = vmul.f32 %v1773_v43, %v1765_v18  ;;  %v5629_v55 = vmul.f32 %v1774_v53, %v1766_v7  ;;  %v8557_v53 = vld [vmem:[#allocation13_spill] sm:$0xff] }
  0xf9   : > { %8543 = vst [vmem:[#allocation81_spill] sm:$0xff] %v5606_v39  ;;  %8544 = vst [vmem:[#allocation82_spill] sm:$0xff] %v5611_v58  ;;  %v5613_v3 = vpop.eup %3849  ;;  %3869 = vpow2.f32 %v5337_v0  ;;  %v1564_v13 = vmul.f32 0.5, %v1496_v20  ;;  %v5640_v63 = vmul.f32 %v1775_v44, %v1767_v41  ;;  %v5647_v35 = vmul.f32 %v1776_v22, %v1768_v40  ;;  %v8564_v22 = vld [vmem:[#allocation15_spill] sm:$0xff] }
  0xfa   : > { %8545 = vst [vmem:[#allocation83_spill] sm:$0xff] %v5613_v3  ;;  %8546 = vst [vmem:[#allocation84_spill] sm:$0xff] %v5616_v27  ;;  %v5620_v8 = vpop.eup %3851  ;;  %3871 = vpow2.f32 %v5342_v11  ;;  %v5624_v21 = vsub.f32 %v5449_v37, %v1563_v12  ;;  %v5627_v10 = vadd.f32 %v5449_v37, %v1563_v12  ;;  %v8558_v12 = vld [vmem:[#allocation37_spill] sm:$0xff]  ;;  %v5653_v44 = vmul.f32 %v1778_v46, %v1770_v42  ;;  %v8562_v37 = vld [vmem:[#allocation38_spill] sm:$0xff] }
  0xfb   : > { %8547 = vst [vmem:[#allocation85_spill] sm:$0xff] %v5618_v23  ;;  %8548 = vst [vmem:[#allocation86_spill] sm:$0xff] %v5620_v8  ;;  %v5631_v59 = vpop.eup %3853  ;;  %3873 = vpow2.f32 %v5344_v48  ;;  %v5635_v0 = vsub.f32 %v5459_v25, %v1564_v13  ;;  %v5638_v43 = vadd.f32 %v5459_v25, %v1564_v13  ;;  %v5651_v13 = vmul.f32 %v1777_v29, %v1769_v32  ;;  %v8561_v25 = vld [vmem:[#allocation14_spill] sm:$0xff]  ;;  %v8567_v46 = vld [vmem:[#allocation41_spill] sm:$0xff] }
  0xfc   : > { %8549 = vst [vmem:[#allocation87_spill] sm:$0xff] %v5624_v21  ;;  %8550 = vst [vmem:[#allocation88_spill] sm:$0xff] %v5627_v10  ;;  %v3856_v11 = vpop.eup %3855  ;;  %3875 = vpow2.f32 %v5348_v36  ;;  %v1659_v18 = vmin.f32 %v5627_v10, %v5447_v34  ;;  %v1667_v7 = vmax.f32 %v5624_v21, %v5401_v45  ;;  %v8577_v23 = vld [vmem:[#allocation19_spill] sm:$0xff] }
  0xfd   : > { %8551 = vst [vmem:[#allocation89_spill] sm:$0xff] %v5629_v55  ;;  %8552 = vst [vmem:[#allocation90_spill] sm:$0xff] %v5631_v59  ;;  %v3858_v48 = vpop.eup %3857  ;;  %v1497_v20 = vmul.f32 %v3856_v11, %v8557_v53  ;;  %3877 = vpow2.f32 %v8558_v12  ;;  %v1660_v34 = vmin.f32 %v5638_v43, %v5454_v62  ;;  %v1668_v45 = vmax.f32 %v5635_v0, %v5404_v28  ;;  %v8565_v53 = vld [vmem:[#allocation39_spill] sm:$0xff]  ;;  %v8569_v12 = vld [vmem:[#allocation42_spill] sm:$0xff] }
  0xfe   : > { %8553 = vst [vmem:[#allocation91_spill] sm:$0xff] %v5635_v0  ;;  %8554 = vst [vmem:[#allocation92_spill] sm:$0xff] %v5638_v43  ;;  %v3860_v41 = vpop.eup %3859  ;;  %v1498_v36 = vmul.f32 %v3858_v48, %v8561_v25  ;;  %3879 = vpow2.f32 %v8562_v37  ;;  %v5670_v48 = vsub.f32 %v1659_v18, %v1667_v7  ;;  %v8571_v25 = vld [vmem:[#allocation46_spill] sm:$0xff]  ;;  %v8578_v0 = vld [vmem:[#allocation20_spill] sm:$0xff] }
  0xff   : > { %8555 = vst [vmem:[#allocation93_spill] sm:$0xff] %v5640_v63  ;;  %8556 = vst [vmem:[#allocation94_spill] sm:$0xff] %v5647_v35  ;;  %v5661_v40 = vpop.eup %3861  ;;  %v1499_v11 = vmul.f32 %v3860_v41, %v8564_v22  ;;  %3881 = vpow2.f32 %v8565_v53  ;;  %v1565_v32 = vmul.f32 0.5, %v1497_v20  ;;  %v8570_v53 = vld [vmem:[#allocation61_spill] sm:$0xff] }
 0x100   : > { %8559 = vst [vmem:[#allocation13_spill] sm:$0xff] %v5651_v13  ;;  %8560 = vst [vmem:[#allocation37_spill] sm:$0xff] %v5653_v44  ;;  %v5667_v29 = vpop.eup %3863  ;;  %3883 = vpow2.f32 %v8567_v46  ;;  %v1566_v37 = vmul.f32 0.5, %v1498_v36  ;;  %v8572_v36 = vld [vmem:[#allocation64_spill] sm:$0xff]  ;;  %v5690_v46 = vsub.f32 %v1660_v34, %v1668_v45  ;;  %v8574_v44 = vld [vmem:[#allocation67_spill] sm:$0xff] }
 0x101   : > { %8563 = vst [vmem:[#allocation38_spill] sm:$0xff] %v5661_v40  ;;  %8566 = vst [vmem:[#allocation39_spill] sm:$0xff] %v5667_v29  ;;  %v5674_v62 = vpop.eup %3865  ;;  %3885 = vpow2.f32 %v8569_v12  ;;  %v1567_v41 = vmul.f32 0.5, %v1499_v11  ;;  %v5678_v20 = vsub.f32 %v8570_v53, %v1565_v32  ;;  %v5681_v42 = vadd.f32 %v8570_v53, %v1565_v32  ;;  %v8573_v12 = vld [vmem:[#allocation16_spill] sm:$0xff]  ;;  %v8575_v35 = vld [vmem:[#allocation17_spill] sm:$0xff] }
 0x102   : > { %8568 = vst [vmem:[#allocation41_spill] sm:$0xff] %v5674_v62  ;;  %v3868_v22 = vpop.eup %3867  ;;  %3887 = vpow2.f32 %v8571_v25  ;;  %v5685_v18 = vsub.f32 %v8572_v36, %v1566_v37  ;;  %v5688_v7 = vadd.f32 %v8572_v36, %v1566_v37 }
 0x103   : > { %v3870_v28 = vpop.eup %3869  ;;  %v1500_v11 = vmul.f32 %v3868_v22, %v8573_v12  ;;  %v5694_v13 = vsub.f32 %v8574_v44, %v1567_v41  ;;  %v5697_v32 = vadd.f32 %v8574_v44, %v1567_v41  ;;  %v1661_v25 = vmin.f32 %v5681_v42, %v5457_v26  ;;  %v8576_v12 = vld [vmem:[#allocation18_spill] sm:$0xff]  ;;  %v8579_v26 = vld [vmem:[#allocation21_spill] sm:$0xff] }
 0x104   : > { %v3872_v53 = vpop.eup %3871  ;;  %v1501_v63 = vmul.f32 %v3870_v28, %v8575_v35  ;;  %v1662_v37 = vmin.f32 %v5688_v7, %v5464_v17  ;;  %v1669_v34 = vmax.f32 %v5678_v20, %v5415_v24  ;;  %v1670_v45 = vmax.f32 %v5685_v18, %v5418_v5  ;;  %v8580_v24 = vld [vmem:[#allocation22_spill] sm:$0xff] }
 0x105   : > { %v3874_v22 = vpop.eup %3873  ;;  %v1502_v36 = vmul.f32 %v3872_v53, %v8576_v12  ;;  %v1568_v41 = vmul.f32 0.5, %v1500_v11  ;;  %v1663_v17 = vmin.f32 %v5697_v32, %v5467_v4  ;;  %v1671_v53 = vmax.f32 %v5694_v13, %v5427_v60 }
 0x106   : > { %v3876_v55 = vpop.eup %3875  ;;  %v1519_v28 = vmul.f32 %v3874_v22, %v8577_v23  ;;  %v1569_v35 = vmul.f32 0.5, %v1501_v63  ;;  %v5718_v11 = vsub.f32 %v1661_v25, %v1669_v34  ;;  %v5724_v23 = vsub.f32 %v1662_v37, %v1670_v45  ;;  %v8581_v34 = vld [vmem:[#allocation23_spill] sm:$0xff] }
 0x107   : > { %v3878_v27 = vpop.eup %3877  ;;  %v1520_v5 = vmul.f32 %v3876_v55, %v8578_v0  ;;  %v1570_v43 = vmul.f32 0.5, %v1502_v36  ;;  %v5722_v22 = vsub.f32 %v5545_v15, %v1568_v41  ;;  %v5731_v36 = vadd.f32 %v5545_v15, %v1568_v41  ;;  %v8583_v15 = vld [vmem:[#allocation25_spill] sm:$0xff] }
 0x108   : > { %v3880_v44 = vpop.eup %3879  ;;  %v1521_v12 = vmul.f32 %v3878_v27, %v8579_v26  ;;  %v1587_v63 = vmul.f32 0.5, %v1519_v28  ;;  %v5728_v55 = vsub.f32 %v5553_v14, %v1569_v35  ;;  %v5738_v28 = vadd.f32 %v5553_v14, %v1569_v35  ;;  %v8582_v26 = vld [vmem:[#allocation24_spill] sm:$0xff] }
 0x109   : > { %v3882_v4 = vpop.eup %3881  ;;  %v1522_v58 = vmul.f32 %v3880_v44, %v8580_v24  ;;  %v1588_v60 = vmul.f32 0.5, %v1520_v5  ;;  %v5735_v27 = vsub.f32 %v5564_v16, %v1570_v43  ;;  %v5742_v24 = vadd.f32 %v5564_v16, %v1570_v43 }
 0x10a   : > { %v3884_v25 = vpop.eup %3883  ;;  %v1523_v0 = vmul.f32 %v3882_v4, %v8581_v34  ;;  %v1589_v37 = vmul.f32 0.5, %v1521_v12  ;;  %v5745_v41 = vsub.f32 %v5599_v50, %v1587_v63  ;;  %v5752_v35 = vadd.f32 %v5599_v50, %v1587_v63  ;;  %v8584_v12 = vld [vmem:[#allocation26_spill] sm:$0xff] }
 0x10b   : > { %v3886_v45 = vpop.eup %3885  ;;  %v1524_v44 = vmul.f32 %v3884_v25, %v8582_v26  ;;  %v1590_v21 = vmul.f32 0.5, %v1522_v58  ;;  %v5749_v10 = vsub.f32 %v5606_v39, %v1588_v60  ;;  %v5759_v58 = vadd.f32 %v5606_v39, %v1588_v60 }
 0x10c   : > { %v3888_v5 = vpop.eup %3887  ;;  %v1525_v4 = vmul.f32 %v3886_v45, %v8583_v15  ;;  %v1591_v34 = vmul.f32 0.5, %v1523_v0  ;;  %v5756_v43 = vsub.f32 %v5613_v3, %v1589_v37  ;;  %v5765_v0 = vadd.f32 %v5613_v3, %v1589_v37 }
 0x10d   : > { %v1526_v14 = vmul.f32 %v3888_v5, %v8584_v12  ;;  %v1592_v25 = vmul.f32 0.5, %v1524_v44  ;;  %v5762_v16 = vsub.f32 %v5620_v8, %v1590_v21  ;;  %v5768_v45 = vadd.f32 %v5620_v8, %v1590_v21 }
 0x10e   : > { %v1593_v26 = vmul.f32 0.5, %v1525_v4  ;;  %v5771_v5 = vsub.f32 %v5631_v59, %v1591_v34  ;;  %v1664_v44 = vmin.f32 %v5731_v36, %v5487_v33  ;;  %v1665_v60 = vmin.f32 %v5738_v28, %v5500_v51 }
 0x10f   : > { %v1594_v63 = vmul.f32 0.5, %v1526_v14  ;;  %v5778_v4 = vsub.f32 %v5661_v40, %v1592_v25  ;;  %v5781_v12 = vadd.f32 %v5631_v59, %v1591_v34  ;;  %v1666_v21 = vmin.f32 %v5742_v24, %v5511_v2 }
 0x110   : > { %v1672_v14 = vmax.f32 %v5722_v22, %v5432_v38  ;;  %v5788_v37 = vsub.f32 %v5667_v29, %v1593_v26  ;;  %v5791_v33 = vadd.f32 %v5661_v40, %v1592_v25  ;;  %v1673_v51 = vmax.f32 %v5728_v55, %v5436_v1 }
 0x111   : > { %8585 = vst [vmem:[#allocation42_spill] sm:$0xff] %v5778_v4  ;;  %v1674_v15 = vmax.f32 %v5735_v27, %v5444_v49  ;;  %v5798_v34 = vsub.f32 %v5674_v62, %v1594_v63  ;;  %v5801_v2 = vadd.f32 %v5667_v29, %v1593_v26  ;;  %v5804_v38 = vadd.f32 %v5674_v62, %v1594_v63  ;;  %v8591_v63 = vld [vmem:[#allocation73_spill] sm:$0xff] }
 0x112   : > { %8586 = vst [vmem:[#allocation46_spill] sm:$0xff] %v5788_v37  ;;  %8587 = vst [vmem:[#allocation95_spill] sm:$0xff] %v5791_v33  ;;  %v1679_v59 = vsub.f32 %v1663_v17, %v1671_v53  ;;  %v5806_v8 = vsub.f32 %v1664_v44, %v1672_v14  ;;  %v5808_v25 = vsub.f32 %v1665_v60, %v1673_v51  ;;  %v1685_v40 = vmax.f32 %v5718_v11, 0.0  ;;  %v8592_v44 = vld [vmem:[#allocation74_spill] sm:$0xff]  ;;  %v8593_v60 = vld [vmem:[#allocation75_spill] sm:$0xff] }
 0x113   : > { %8588 = vst [vmem:[#allocation96_spill] sm:$0xff] %v5801_v2  ;;  %8589 = vst [vmem:[#allocation97_spill] sm:$0xff] %v5804_v38  ;;  %v1686_v1 = vmax.f32 %v5724_v23, 0.0  ;;  %v5812_v3 = vsub.f32 %v1666_v21, %v1674_v15  ;;  %v1691_v39 = vmin.f32 %v5752_v35, %v5540_v9  ;;  %v1692_v26 = vmin.f32 %v5759_v58, %v5543_v52  ;;  %v8594_v21 = vld [vmem:[#allocation76_spill] sm:$0xff] }
 0x114   : > { %v1687_v49 = vmax.f32 %v1679_v59, 0.0  ;;  %v1693_v17 = vmin.f32 %v5765_v0, %v5548_v31  ;;  %v1694_v53 = vmin.f32 %v5768_v45, %v5551_v57  ;;  %v1695_v11 = vmin.f32 %v5781_v12, %v5556_v54  ;;  %v8590_v59 = vld [vmem:[#allocation72_spill] sm:$0xff] }
 0x115   : > { %v1696_v15 = vmin.f32 %v5791_v33, %v5559_v56  ;;  %v1697_v23 = vmin.f32 %v5801_v2, %v5562_v6  ;;  %v1698_v9 = vmin.f32 %v5804_v38, %v5567_v61  ;;  %v1699_v52 = vmax.f32 %v5745_v41, %v8590_v59 }
 0x116   : > { %v1700_v31 = vmax.f32 %v5749_v10, %v5517_v30  ;;  %v1701_v57 = vmax.f32 %v5756_v43, %v8591_v63  ;;  %v1702_v54 = vmax.f32 %v5762_v16, %v8592_v44  ;;  %v1703_v56 = vmax.f32 %v5771_v5, %v8593_v60 }
 0x117   : > { %v1704_v6 = vmax.f32 %v5778_v4, %v5531_v19  ;;  %v1705_v61 = vmax.f32 %v5788_v37, %v8594_v21  ;;  %v1706_v14 = vmax.f32 %v5798_v34, %v5537_v47  ;;  %v1707_v51 = vsub.f32 %v1691_v39, %v1699_v52 }
 0x118   : > { %v1708_v30 = vsub.f32 %v1692_v26, %v1700_v31  ;;  %v1709_v59 = vsub.f32 %v1693_v17, %v1701_v57  ;;  %v1710_v62 = vsub.f32 %v1694_v53, %v1702_v54  ;;  %v1711_v63 = vsub.f32 %v1695_v11, %v1703_v56 }
 0x119   : > { %v1712_v29 = vsub.f32 %v1696_v15, %v1704_v6  ;;  %v1713_v50 = vsub.f32 %v1697_v23, %v1705_v61  ;;  %v1714_v44 = vsub.f32 %v1698_v9, %v1706_v14  ;;  %v1715_v38 = vmax.f32 %v1707_v51, 0.0  ;;  %v8608_v61 = vld [vmem:[#allocation84_spill] sm:$0xff]  ;;  %v8609_v51 = vld [vmem:[#allocation82_spill] sm:$0xff] }
 0x11a   : > { %v1716_v2 = vmax.f32 %v1708_v30, 0.0  ;;  %v1688_v60 = vmax.f32 %v5806_v8, 0.0  ;;  %v1717_v33 = vmax.f32 %v1709_v59, 0.0  ;;  %v1718_v19 = vmax.f32 %v1710_v62, 0.0 }
 0x11b   : > { %v1719_v4 = vmax.f32 %v1711_v63, 0.0  ;;  %v1689_v21 = vmax.f32 %v5808_v25, 0.0  ;;  %v1690_v37 = vmax.f32 %v5812_v3, 0.0  ;;  %v1720_v47 = vmax.f32 %v1712_v29, 0.0 }
 0x11c   : > { %v1721_v39 = vmax.f32 %v1713_v50, 0.0  ;;  %v1722_v26 = vmax.f32 %v1714_v44, 0.0  ;;  %v8595_v17 = vmax.f32 %v5670_v48, 0.0  ;;  %v8596_v11 = vmax.f32 %v5690_v46, 0.0  ;;  %v8611_v44 = vld [vmem:[#allocation85_spill] sm:$0xff] }
 0x11d   : > { %v5857_v23 = vmul.f32 %v1717_v33, %v1685_v40  ;;  %v5859_v8 = vmul.f32 %v1718_v19, %v1686_v1  ;;  %v5861_v62 = vmul.f32 %v1719_v4, %v1687_v49  ;;  %v1733_v3 = vsub.f32 %v5681_v42, %v5678_v20  ;;  %v8612_v19 = vld [vmem:[#allocation89_spill] sm:$0xff] }
 0x11e   : > { %v5851_v53 = vmul.f32 %v1715_v38, %v8595_v17  ;;  %v5855_v15 = vmul.f32 %v1716_v2, %v8596_v11  ;;  %v1734_v50 = vsub.f32 %v5688_v7, %v5685_v18  ;;  %v1735_v29 = vsub.f32 %v5697_v32, %v5694_v13  ;;  %v8597_v7 = vld [vmem:[#allocation42_spill] sm:$0xff]  ;;  %v8598_v32 = vld [vmem:[#allocation95_spill] sm:$0xff]  ;;  %v8613_v17 = vld [vmem:[#allocation93_spill] sm:$0xff] }
 0x11f   : > { %v1736_v48 = vsub.f32 %v5731_v36, %v5722_v22  ;;  %v1737_v40 = vsub.f32 %v5738_v28, %v5728_v55  ;;  %v1738_v46 = vsub.f32 %v5742_v24, %v5735_v27  ;;  %v1739_v4 = vsub.f32 %v5752_v35, %v5745_v41  ;;  %v8599_v55 = vld [vmem:[#allocation46_spill] sm:$0xff]  ;;  %v8600_v24 = vld [vmem:[#allocation96_spill] sm:$0xff]  ;;  %v8601_v27 = vld [vmem:[#allocation97_spill] sm:$0xff] }
 0x120   : > { %v1740_v42 = vsub.f32 %v5759_v58, %v5749_v10  ;;  %v1741_v20 = vsub.f32 %v5765_v0, %v5756_v43  ;;  %v1742_v13 = vsub.f32 %v5768_v45, %v5762_v16  ;;  %v1743_v18 = vsub.f32 %v5781_v12, %v5771_v5  ;;  %v8602_v41 = vld [vmem:[#allocation88_spill] sm:$0xff]  ;;  %v8603_v10 = vld [vmem:[#allocation87_spill] sm:$0xff] }
 0x121   : > { %v1744_v22 = vsub.f32 %v8598_v32, %v8597_v7  ;;  %v1745_v36 = vsub.f32 %v8600_v24, %v8599_v55  ;;  %v1746_v28 = vsub.f32 %v8601_v27, %v5798_v34  ;;  %v8604_v35 = vsub.f32 %v8602_v41, %v8603_v10  ;;  %v8605_v43 = vld [vmem:[#allocation92_spill] sm:$0xff]  ;;  %v8606_v0 = vld [vmem:[#allocation91_spill] sm:$0xff] }
 0x122   : > { %v8607_v33 = vsub.f32 %v8605_v43, %v8606_v0  ;;  %v1749_v45 = vmul.f32 %v1741_v20, %v1733_v3  ;;  %v1750_v2 = vmul.f32 %v1742_v13, %v1734_v50  ;;  %v1751_v12 = vmul.f32 %v1743_v18, %v1735_v29  ;;  %v8615_v3 = vld [vmem:[#allocation13_spill] sm:$0xff]  ;;  %v8618_v43 = vld [vmem:[#allocation51_spill] sm:$0xff] }
 0x123   : > { %v1747_v58 = vmul.f32 %v1739_v4, %v8604_v35  ;;  %v1752_v5 = vmul.f32 %v1744_v22, %v1736_v48  ;;  %v1753_v38 = vmul.f32 %v1745_v36, %v1737_v40  ;;  %v1754_v25 = vmul.f32 %v1746_v28, %v1738_v46  ;;  %v8616_v29 = vld [vmem:[#allocation37_spill] sm:$0xff] }
 0x124   : > { %v1748_v16 = vmul.f32 %v1740_v42, %v8607_v33  ;;  %v5897_v1 = vmul.f32 %v1720_v47, %v1688_v60  ;;  %v1757_v52 = vand.u32 2147483647, %v1749_v45  ;;  %v5899_v34 = vmul.f32 %v1721_v39, %v1689_v21  ;;  %v8614_v21 = vld [vmem:[#allocation94_spill] sm:$0xff]  ;;  %v4267_v45 = vld [vmem:[%s5039_s28] sm:$0xff] }
 0x125   : > { %v1755_v49 = vand.u32 2147483647, %v1747_v58  ;;  %v1758_v31 = vand.u32 2147483647, %v1750_v2  ;;  %v1759_v57 = vand.u32 2147483647, %v1751_v12  ;;  %v5904_v63 = vmul.f32 %v1722_v26, %v1690_v37 }
 0x126   : > { %v1756_v9 = vand.u32 2147483647, %v1748_v16  ;;  %v1760_v54 = vand.u32 2147483647, %v1752_v5  ;;  %v1761_v56 = vand.u32 2147483647, %v1753_v38 }
 0x127   : > { %v1762_v6 = vand.u32 2147483647, %v1754_v25  ;;  %v1788_v14 = vand.u32 2147483647, %v8608_v61  ;;  %v8610_v30 = vand.u32 2147483647, %v8609_v51 }
 0x128   : > { %v1789_v60 = vand.u32 2147483647, %v8611_v44  ;;  %v1790_v47 = vand.u32 2147483647, %v8612_v19  ;;  %v1791_v11 = vand.u32 2147483647, %v8613_v17 }
 0x129   : > { %v1795_v59 = vadd.f32 %v8610_v30, %v1755_v49  ;;  %v1792_v39 = vand.u32 2147483647, %v8614_v21  ;;  %v1793_v50 = vand.u32 2147483647, %v8615_v3  ;;  %v1794_v48 = vand.u32 2147483647, %v8616_v29 }
 0x12a   : > { %v1796_v40 = vadd.f32 %v1788_v14, %v1756_v9  ;;  %v1797_v46 = vadd.f32 %v1789_v60, %v1757_v52  ;;  %v1798_v4 = vadd.f32 %v1790_v47, %v1758_v31  ;;  %v1799_v42 = vadd.f32 %v1791_v11, %v1759_v57  ;;  %v8617_v58 = vld [vmem:[#allocation28_spill] sm:$0xff]  ;;  %v4268_v12 = vld [vmem:[%s5039_s28 + $0x8] sm:$0xff]  ;;  %v4269_v38 = vld [vmem:[%s5039_s28 + $0x10] sm:$0xff] }
 0x12b   : > { %v1803_v20 = vsub.f32 %v1795_v59, %v5851_v53  ;;  %v1800_v37 = vadd.f32 %v1792_v39, %v1760_v54  ;;  %v1801_v26 = vadd.f32 %v1793_v50, %v1761_v56  ;;  %v1802_v13 = vadd.f32 %v1794_v48, %v1762_v6  ;;  %v8620_v49 = vld [vmem:[#allocation45_spill] sm:$0xff]  ;;  %v4270_v31 = vld [vmem:[%s5039_s28 + $0x18] sm:$0xff]  ;;  %v8622_v56 = vld [vmem:[#allocation55_spill] sm:$0xff] }
 0x12c   : > { %v1804_v18 = vsub.f32 %v1796_v40, %v5855_v15  ;;  %v1805_v7 = vsub.f32 %v1797_v46, %v5857_v23  ;;  %v1806_v32 = vsub.f32 %v1798_v4, %v5859_v8  ;;  %v1807_v22 = vsub.f32 %v1799_v42, %v5861_v62  ;;  %v8621_v54 = vld [vmem:[#allocation29_spill] sm:$0xff]  ;;  %v8624_v30 = vld [vmem:[#allocation48_spill] sm:$0xff]  ;;  %v4272_v44 = vld [vmem:[%s5039_s28 + $0x28] sm:$0xff] }
 0x12d   : > { %v1811_v55 = vadd.f32 1e-06, %v1803_v20  ;;  %v1808_v24 = vsub.f32 %v1800_v37, %v5897_v1  ;;  %v1809_v36 = vsub.f32 %v1801_v26, %v5899_v34  ;;  %v1810_v27 = vsub.f32 %v1802_v13, %v5904_v63  ;;  %v4271_v61 = vld [vmem:[%s5039_s28 + $0x20] sm:$0xff]  ;;  %v8625_v47 = vld [vmem:[#allocation50_spill] sm:$0xff]  ;;  %v4273_v11 = vld [vmem:[%s5039_s28 + $0x30] sm:$0xff] }
 0x12e   : > { %v1812_v28 = vadd.f32 1e-06, %v1804_v18  ;;  %v1813_v41 = vadd.f32 1e-06, %v1805_v7  ;;  %v1814_v10 = vadd.f32 1e-06, %v1806_v32  ;;  %v5922_v0 = vadd.f32 %v8618_v43, %v8617_v58 }
 0x12f   : > { %v1815_v35 = vadd.f32 1e-06, %v1807_v22  ;;  %3889 = vrcp.f32 %v1811_v55  ;;  %v1816_v33 = vadd.f32 1e-06, %v1808_v24  ;;  %v1817_v16 = vadd.f32 1e-06, %v1809_v36 }
 0x130   : > { %8619 = vst [vmem:[#allocation72_spill] sm:$0xff] %v5922_v0  ;;  %3891 = vrcp.f32 %v1812_v28  ;;  %v1835_v2 = vsub.f32 0.0, %v4267_v45  ;;  %v1836_v5 = vsub.f32 0.0, %v4268_v12  ;;  %v1837_v25 = vsub.f32 0.0, %v4269_v38  ;;  %v8626_v3 = vld [vmem:[#allocation31_spill] sm:$0xff]  ;;  %v8627_v50 = vld [vmem:[#allocation57_spill] sm:$0xff] }
 0x131   : > { %3893 = vrcp.f32 %v1813_v41  ;;  %v1332_v9 = vmul.f32 0.6931472, %v8620_v49  ;;  %v1818_v52 = vadd.f32 1e-06, %v1810_v27  ;;  %v1838_v57 = vsub.f32 0.0, %v4270_v31  ;;  %v4274_v48 = vld [vmem:[%s5039_s28 + $0x38] sm:$0xff] }
 0x132   : > { %3895 = vrcp.f32 %v1814_v10  ;;  %v5931_v6 = vadd.f32 %v8622_v56, %v8621_v54  ;;  %v1839_v14 = vsub.f32 0.0, %v4271_v61  ;;  %v1843_v51 = vmul.f32 1.442695, %v1835_v2  ;;  %v8629_v4 = vld [vmem:[#allocation54_spill] sm:$0xff]  ;;  %v8630_v20 = vld [vmem:[#allocation32_spill] sm:$0xff]  ;;  %v8635_v22 = vld [vmem:[#allocation59_spill] sm:$0xff] }
 0x133   : > { %3897 = vrcp.f32 %v1815_v35  ;;  %v1334_v59 = vmul.f32 0.6931472, %v8624_v30  ;;  %v1840_v60 = vsub.f32 0.0, %v4272_v44  ;;  %v1845_v19 = vmul.f32 1.442695, %v1836_v5  ;;  %v8632_v13 = vld [vmem:[#allocation34_spill] sm:$0xff] }
 0x134   : > { %8623 = vst [vmem:[#allocation73_spill] sm:$0xff] %v5931_v6  ;;  %3899 = vrcp.f32 %v1816_v33  ;;  %v1336_v17 = vmul.f32 0.6931472, %v8625_v47  ;;  %v1841_v21 = vsub.f32 0.0, %v4273_v11  ;;  %v1847_v39 = vmul.f32 1.442695, %v1837_v25 }
 0x135   : > { %3901 = vrcp.f32 %v1817_v16  ;;  %v5940_v29 = vadd.f32 %v8627_v50, %v8626_v3  ;;  %v1842_v40 = vsub.f32 0.0, %v4274_v48  ;;  %v1849_v46 = vmul.f32 1.442695, %v1838_v57  ;;  %v8634_v32 = vld [vmem:[#allocation40_spill] sm:$0xff]  ;;  %v8636_v36 = vld [vmem:[#allocation35_spill] sm:$0xff]  ;;  %v8641_v16 = vld [vmem:[#allocation61_spill] sm:$0xff] }
 0x136   : > { %3903 = vrcp.f32 %v1818_v52  ;;  %v1338_v42 = vmul.f32 0.6931472, %v8629_v4  ;;  %v5945_v37 = vadd.f32 %v1332_v9, %v8630_v20  ;;  %v1851_v26 = vmul.f32 1.442695, %v1839_v14  ;;  %v8638_v41 = vld [vmem:[#allocation43_spill] sm:$0xff]  ;;  %v8639_v10 = vld [vmem:[#allocation60_spill] sm:$0xff] }
 0x137   : > { %8628 = vst [vmem:[#allocation74_spill] sm:$0xff] %v5940_v29  ;;  %3905 = vpow2.f32 %v1843_v51  ;;  %v5948_v18 = vadd.f32 %v1334_v59, %v8632_v13  ;;  %v1853_v7 = vmul.f32 1.442695, %v1840_v60  ;;  %v1907_v55 = vsub.f32 %v8635_v22, %v8634_v32  ;;  %v8640_v33 = vld [vmem:[#allocation44_spill] sm:$0xff]  ;;  %v8642_v2 = vld [vmem:[#allocation47_spill] sm:$0xff]  ;;  %v8644_v25 = vld [vmem:[#allocation49_spill] sm:$0xff] }
 0x138   : > { %8631 = vst [vmem:[#allocation75_spill] sm:$0xff] %v5945_v37  ;;  %3907 = vpow2.f32 %v1845_v19  ;;  %v5953_v27 = vadd.f32 %v1336_v17, %v8636_v36  ;;  %v1855_v28 = vmul.f32 1.442695, %v1841_v21  ;;  %v1908_v35 = vsub.f32 %v8639_v10, %v8638_v41  ;;  %v8643_v12 = vld [vmem:[#allocation64_spill] sm:$0xff]  ;;  %v8645_v49 = vld [vmem:[#allocation67_spill] sm:$0xff]  ;;  %v8647_v31 = vld [vmem:[#allocation77_spill] sm:$0xff] }
 0x139   : > { %8633 = vst [vmem:[#allocation76_spill] sm:$0xff] %v5948_v18  ;;  %v3890_v24 = vpop.eup %3889  ;;  %3909 = vpow2.f32 %v1847_v39  ;;  %v1857_v43 = vmul.f32 1.442695, %v1842_v40  ;;  %v1909_v45 = vsub.f32 %v8641_v16, %v8640_v33  ;;  %v1910_v5 = vsub.f32 %v8643_v12, %v8642_v2  ;;  %v8646_v52 = vld [vmem:[#allocation52_spill] sm:$0xff]  ;;  %v8648_v54 = vld [vmem:[#allocation53_spill] sm:$0xff]  ;;  %v8649_v56 = vld [vmem:[#allocation78_spill] sm:$0xff] }
 0x13a   : > { %8637 = vst [vmem:[#allocation42_spill] sm:$0xff] %v5953_v27  ;;  %v3892_v58 = vpop.eup %3891  ;;  %3911 = vpow2.f32 %v1849_v46  ;;  %v1911_v9 = vsub.f32 %v8645_v49, %v8644_v25  ;;  %v1912_v57 = vsub.f32 %v8647_v31, %v8646_v52  ;;  %v1913_v61 = vsub.f32 %v8649_v56, %v8648_v54  ;;  %v8650_v51 = vld [vmem:[#allocation36_spill] sm:$0xff]  ;;  %v8653_v44 = vld [vmem:[#allocation79_spill] sm:$0xff]  ;;  %v8657_v22 = vld [vmem:[#allocation81_spill] sm:$0xff] }
 0x13b   : > { %v3894_v38 = vpop.eup %3893  ;;  %3913 = vpow2.f32 %v1851_v26  ;;  %v5968_v30 = vadd.f32 %v1338_v42, %v8650_v51  ;;  %v8652_v59 = vld [vmem:[#allocation56_spill] sm:$0xff]  ;;  %v5972_v19 = vmul.f32 %v1907_v55, %v1907_v55  ;;  %v1827_v17 = vmul.f32 %v3890_v24, %v5851_v53  ;;  %v8654_v26 = vld [vmem:[#allocation62_spill] sm:$0xff]  ;;  %v8656_v32 = vld [vmem:[#allocation63_spill] sm:$0xff] }
 0x13c   : > { %v3896_v14 = vpop.eup %3895  ;;  %3915 = vpow2.f32 %v1853_v7  ;;  %v1914_v60 = vsub.f32 %v8653_v44, %v8652_v59  ;;  %v1828_v11 = vmul.f32 %v3892_v58, %v5855_v15  ;;  %v5976_v21 = vmul.f32 %v1908_v35, %v1908_v35  ;;  %v8655_v13 = vld [vmem:[#allocation80_spill] sm:$0xff]  ;;  %v4275_v24 = vld [vmem:[%s5022_s17] sm:$0xff]  ;;  %v8659_v35 = vld [vmem:[#allocation83_spill] sm:$0xff] }
 0x13d   : > { %8651 = vst [vmem:[#allocation95_spill] sm:$0xff] %v5968_v30  ;;  %v3898_v47 = vpop.eup %3897  ;;  %3917 = vpow2.f32 %v1855_v28  ;;  %v1829_v3 = vmul.f32 %v3894_v38, %v5857_v23  ;;  %v5979_v50 = vmul.f32 %v1909_v45, %v1909_v45  ;;  %v5981_v48 = vmul.f32 %v1910_v5, %v1910_v5  ;;  %v4276_v28 = vld [vmem:[%s5022_s17 + $0x8] sm:$0xff]  ;;  %v8658_v10 = vld [vmem:[#allocation65_spill] sm:$0xff]  ;;  %v4277_v12 = vld [vmem:[%s5022_s17 + $0x10] sm:$0xff] }
 0x13e   : > { %v3900_v39 = vpop.eup %3899  ;;  %3919 = vpow2.f32 %v1857_v43  ;;  %v1830_v46 = vmul.f32 %v3896_v14, %v5859_v8  ;;  %v5984_v4 = vmul.f32 %v1911_v9, %v1911_v9  ;;  %v5986_v53 = vmul.f32 %v1912_v57, %v1912_v57  ;;  %v8661_v43 = vld [vmem:[#allocation86_spill] sm:$0xff]  ;;  %v8662_v38 = vld [vmem:[#allocation68_spill] sm:$0xff]  ;;  %v8664_v54 = vld [vmem:[#allocation69_spill] sm:$0xff] }
 0x13f   : > { %v3902_v40 = vpop.eup %3901  ;;  %v5988_v15 = vmul.f32 %v1913_v61, %v1913_v61  ;;  %v1831_v20 = vmul.f32 %v3898_v47, %v5861_v62  ;;  %v5991_v23 = vmul.f32 %v1914_v60, %v1914_v60  ;;  %v1923_v7 = vsub.f32 %v8655_v13, %v8654_v26  ;;  %v8660_v62 = vld [vmem:[#allocation66_spill] sm:$0xff]  ;;  %v4278_v31 = vld [vmem:[%s5022_s17 + $0x18] sm:$0xff]  ;;  %v8667_v51 = vld [vmem:[#allocation39_spill] sm:$0xff] }
 0x140   : > { %v3904_v42 = vpop.eup %3903  ;;  %v1924_v55 = vsub.f32 %v8657_v22, %v8656_v32  ;;  %v5998_v36 = vmul.f32 %v4275_v24, %v1827_v17  ;;  %v6001_v41 = vmul.f32 %v4276_v28, %v1828_v11  ;;  %v1925_v58 = vsub.f32 %v8659_v35, %v8658_v10  ;;  %v8663_v25 = vld [vmem:[#allocation90_spill] sm:$0xff]  ;;  %v4279_v47 = vld [vmem:[%s5022_s17 + $0x20] sm:$0xff]  ;;  %v6158_v30 = vld [vmem:[%s5039_s28 + $0x1f8] sm:$0xff] }
 0x141   : > { %v3906_v8 = vpop.eup %3905  ;;  %v1926_v33 = vsub.f32 %v8661_v43, %v8660_v62  ;;  %v1832_v45 = vmul.f32 %v3900_v39, %v5897_v1  ;;  %v6009_v5 = vmul.f32 %v4277_v12, %v1829_v3  ;;  %v1927_v49 = vsub.f32 %v8663_v25, %v8662_v38  ;;  %v8665_v56 = vld [vmem:[#allocation38_spill] sm:$0xff]  ;;  %v8668_v3 = vld [vmem:[#allocation71_spill] sm:$0xff]  ;;  %8693 = vst [vmem:[#allocation28_spill] sm:$0xff] %v6158_v30 }
 0x142   : > { %v3908_v16 = vpop.eup %3907  ;;  %v1859_v2 = vadd.f32 1.0, %v3906_v8  ;;  %v6014_v57 = vmul.f32 %v4278_v31, %v1830_v46  ;;  %v1928_v61 = vsub.f32 %v8665_v56, %v8664_v54  ;;  %v8666_v14 = vld [vmem:[#allocation70_spill] sm:$0xff]  ;;  %v1833_v44 = vmul.f32 %v3902_v40, %v5899_v34  ;;  %v8669_v46 = vld [vmem:[#allocation41_spill] sm:$0xff]  ;;  %v8695_v29 = vld [vmem:[#allocation19_spill] sm:$0xff] }
 0x143   : > { %v3910_v9 = vpop.eup %3909  ;;  %v1860_v52 = vadd.f32 1.0, %v3908_v16  ;;  %v1929_v59 = vsub.f32 %v8667_v51, %v8666_v14  ;;  %v6022_v17 = vmul.f32 %v4279_v47, %v1831_v20  ;;  %v1930_v26 = vsub.f32 %v8669_v46, %v8668_v3  ;;  %v4280_v24 = vld [vmem:[%s5022_s17 + $0x28] sm:$0xff]  ;;  %v4285_v14 = vld [vmem:[%s5022_s17 + $0xd0] sm:$0xff]  ;;  %v8672_v51 = vld [vmem:[#allocation33_spill] sm:$0xff] }
 0x144   : > { %v3912_v1 = vpop.eup %3911  ;;  %v1861_v60 = vadd.f32 1.0, %v3910_v9  ;;  %3921 = vrcp.f32 %v1859_v2  ;;  %v1931_v13 = vmul.f32 %v1923_v7, %v1923_v7  ;;  %v1834_v22 = vmul.f32 %v3904_v42, %v5904_v63  ;;  %v4281_v7 = vld [vmem:[%s5022_s17 + $0x30] sm:$0xff]  ;;  %v4284_v25 = vld [vmem:[%s5022_s17 + $0xc8] sm:$0xff] }
 0x145   : > { %v3914_v11 = vpop.eup %3913  ;;  %v1862_v39 = vadd.f32 1.0, %v3912_v1  ;;  %3923 = vrcp.f32 %v1860_v52  ;;  %v6028_v34 = vmul.f32 %v4280_v24, %v1832_v45  ;;  %v1932_v28 = vmul.f32 %v1924_v55, %v1924_v55  ;;  %v4282_v45 = vld [vmem:[%s5022_s17 + $0xc0] sm:$0xff]  ;;  %v8670_v2 = vld [vmem:[#allocation27_spill] sm:$0xff]  ;;  %v8671_v9 = vld [vmem:[#allocation30_spill] sm:$0xff] }
 0x146   : > { %v3916_v32 = vpop.eup %3915  ;;  %v1863_v8 = vadd.f32 1.0, %v3914_v11  ;;  %3925 = vrcp.f32 %v1861_v60  ;;  %v1933_v10 = vmul.f32 %v1925_v58, %v1925_v58  ;;  %v6031_v63 = vmul.f32 %v4281_v7, %v1833_v44  ;;  %v4283_v58 = vld [vmem:[%s5022_s17 + $0x38] sm:$0xff]  ;;  %v6044_v31 = vld [vmem:[%s5039_s28 + $0x148] sm:$0xff]  ;;  %v6055_v44 = vld [vmem:[%s5039_s28 + $0x160] sm:$0xff] }
 0x147   : > { %v3918_v40 = vpop.eup %3917  ;;  %v1864_v20 = vadd.f32 1.0, %v3916_v32  ;;  %3927 = vrcp.f32 %v1862_v39  ;;  %v1934_v42 = vmul.f32 %v1926_v33, %v1926_v33  ;;  %v1935_v16 = vmul.f32 %v1927_v49, %v1927_v49  ;;  %v6041_v33 = vld [vmem:[%s5039_s28 + $0x140] sm:$0xff]  ;;  %v6047_v49 = vld [vmem:[%s5039_s28 + $0x150] sm:$0xff]  ;;  %v8674_v39 = vld [vmem:[#allocation14_spill] sm:$0xff] }
 0x148   : > { %v3920_v35 = vpop.eup %3919  ;;  %v1865_v62 = vadd.f32 1.0, %v3918_v40  ;;  %3929 = vrcp.f32 %v1863_v8  ;;  %v1948_v55 = vmul.f32 %v4282_v45, %v8670_v2  ;;  %v6036_v12 = vmul.f32 %v4283_v58, %v1834_v22  ;;  %v6058_v60 = vld [vmem:[%s5039_s28 + $0x180] sm:$0xff]  ;;  %v6071_v3 = vld [vmem:[%s5039_s28 + $0x168] sm:$0xff]  ;;  %v6074_v46 = vld [vmem:[%s5039_s28 + $0x170] sm:$0xff] }
 0x149   : > { %v1866_v43 = vadd.f32 1.0, %v3920_v35  ;;  %3931 = vrcp.f32 %v1864_v20  ;;  %v1936_v38 = vmul.f32 %v1928_v61, %v1928_v61  ;;  %v1950_v52 = vmul.f32 %v4284_v25, %v8671_v9  ;;  %v6052_v61 = vld [vmem:[%s5039_s28 + $0x158] sm:$0xff]  ;;  %8673 = vst [vmem:[#allocation46_spill] sm:$0xff] %v6058_v60  ;;  %v6080_v32 = vld [vmem:[%s5039_s28 + $0x190] sm:$0xff]  ;;  %v6096_v24 = vld [vmem:[%s5039_s28 + $0x1a0] sm:$0xff] }
 0x14a   : > { %3933 = vrcp.f32 %v1865_v62  ;;  %v1937_v54 = vmul.f32 %v1929_v59, %v1929_v59  ;;  %v1938_v56 = vmul.f32 %v1930_v26, %v1930_v26  ;;  %v1952_v1 = vmul.f32 %v4285_v14, %v8672_v51  ;;  %v6077_v26 = vld [vmem:[%s5039_s28 + $0x188] sm:$0xff]  ;;  %8676 = vst [vmem:[#allocation97_spill] sm:$0xff] %v6080_v32  ;;  %v6090_v22 = vld [vmem:[%s5039_s28 + $0x178] sm:$0xff]  ;;  %8679 = vst [vmem:[#allocation87_spill] sm:$0xff] %v6096_v24 }
 0x14b   : > { %3935 = vrcp.f32 %v1866_v43  ;;  %v6061_v47 = vadd.f32 %v1931_v13, %v5972_v19  ;;  %v6064_v11 = vadd.f32 %v1932_v28, %v5976_v21  ;;  %v6067_v59 = vadd.f32 %v1933_v10, %v5979_v50  ;;  %8675 = vst [vmem:[#allocation96_spill] sm:$0xff] %v6077_v26  ;;  %v8677_v50 = vld [vmem:[#allocation15_spill] sm:$0xff]  ;;  %v6093_v8 = vld [vmem:[%s5039_s28 + $0x198] sm:$0xff]  ;;  %v6119_v45 = vld [vmem:[%s5039_s28 + $0x1c0] sm:$0xff] }
 0x14c   : > { %3937 = vrcp.f32 %v8674_v39  ;;  %v6083_v19 = vadd.f32 %v1934_v42, %v5981_v48  ;;  %v6086_v21 = vadd.f32 %v1935_v16, %v5984_v4  ;;  %v1963_v13 = vadd.f32 1e-06, %v1948_v55  ;;  %8678 = vst [vmem:[#allocation88_spill] sm:$0xff] %v6093_v8  ;;  %v8680_v28 = vld [vmem:[#allocation16_spill] sm:$0xff]  ;;  %v6103_v4 = vld [vmem:[%s5039_s28 + $0x1a8] sm:$0xff]  ;;  %v6106_v10 = vld [vmem:[%s5039_s28 + $0x1b0] sm:$0xff] }
 0x14d   : > { %3939 = vrcp.f32 %v8677_v50  ;;  %v6099_v20 = vadd.f32 %v1936_v38, %v5986_v53  ;;  %v1964_v48 = vadd.f32 1e-06, %v1950_v52  ;;  %8681 = vst [vmem:[#allocation92_spill] sm:$0xff] %v6103_v4  ;;  %8682 = vst [vmem:[#allocation91_spill] sm:$0xff] %v6106_v10  ;;  %v6109_v35 = vld [vmem:[%s5039_s28 + $0x1b8] sm:$0xff]  ;;  %v2102_v62 = vmax.f32 %v6041_v33, %v6058_v60  ;;  %v8684_v42 = vld [vmem:[#allocation17_spill] sm:$0xff] }
 0x14e   : > { %v3922_v40 = vpop.eup %3921  ;;  %3941 = vrcp.f32 %v8680_v28  ;;  %8683 = vst [vmem:[#allocation84_spill] sm:$0xff] %v6109_v35  ;;  %v1965_v43 = vadd.f32 1e-06, %v1952_v1  ;;  %v2103_v53 = vmax.f32 %v6044_v31, %v6077_v26  ;;  %v2104_v16 = vmax.f32 %v6047_v49, %v6080_v32  ;;  %8685 = vst [vmem:[#allocation82_spill] sm:$0xff] %v6119_v45  ;;  %v8686_v58 = vld [vmem:[#allocation18_spill] sm:$0xff]  ;;  %v6133_v52 = vld [vmem:[%s5039_s28 + $0x1d0] sm:$0xff] }
 0x14f   : > { %v3924_v7 = vpop.eup %3923  ;;  %3943 = vrcp.f32 %v8684_v42  ;;  %v6122_v55 = vadd.f32 %v1937_v54, %v5988_v15  ;;  %v2105_v38 = vmax.f32 %v6052_v61, %v6093_v8  ;;  %v2106_v25 = vmax.f32 %v6055_v44, %v6096_v24  ;;  %v6130_v9 = vld [vmem:[%s5039_s28 + $0x1c8] sm:$0xff]  ;;  %8688 = vst [vmem:[#allocation89_spill] sm:$0xff] %v6133_v52  ;;  %v6142_v1 = vld [vmem:[%s5039_s28 + $0x1d8] sm:$0xff]  ;;  %v6145_v39 = vld [vmem:[%s5039_s28 + $0x1e0] sm:$0xff] }
 0x150   : > { %v3926_v2 = vpop.eup %3925  ;;  %3945 = vrcp.f32 %v8686_v58  ;;  %8687 = vst [vmem:[#allocation85_spill] sm:$0xff] %v6130_v9  ;;  %v2107_v15 = vmax.f32 %v6071_v3, %v6103_v4  ;;  %v2108_v54 = vmax.f32 %v6074_v46, %v6106_v10  ;;  %v2109_v51 = vmax.f32 %v6090_v22, %v6109_v35  ;;  %8689 = vst [vmem:[#allocation93_spill] sm:$0xff] %v6142_v1  ;;  %v6155_v58 = vld [vmem:[%s5039_s28 + $0x1f0] sm:$0xff]  ;;  %v3664_v8 = vld [vmem:[%s5039_s28 + $0x400] sm:$0xff] }
 0x151   : > { %v3928_v14 = vpop.eup %3927  ;;  %3947 = vlog2.f32 %v1963_v13  ;;  %8690 = vst [vmem:[#allocation94_spill] sm:$0xff] %v6145_v39  ;;  %v1891_v28 = vsub.f32 %v3922_v40, %v5998_v36  ;;  %v6149_v42 = vadd.f32 %v1938_v56, %v5991_v23  ;;  %v6152_v13 = vld [vmem:[%s5039_s28 + $0x1e8] sm:$0xff]  ;;  %8692 = vst [vmem:[#allocation37_spill] sm:$0xff] %v6155_v58  ;;  %v6161_v27 = vmax.f32 %v2102_v62, %v6119_v45  ;;  %v6171_v56 = vld [vmem:[%s5039_s28 + $0x200] sm:$0xff] }
 0x152   : > { %v3930_v50 = vpop.eup %3929  ;;  %3949 = vlog2.f32 %v1964_v48  ;;  %8691 = vst [vmem:[#allocation13_spill] sm:$0xff] %v6152_v13  ;;  %v1892_v37 = vsub.f32 %v3924_v7, %v6001_v41  ;;  %v6165_v36 = vmax.f32 %v2103_v53, %v6130_v9  ;;  %v6168_v23 = vmax.f32 %v2104_v16, %v6133_v52  ;;  %8694 = vst [vmem:[#allocation51_spill] sm:$0xff] %v6171_v56  ;;  %v6182_v7 = vld [vmem:[%s5039_s28 + $0x208] sm:$0xff]  ;;  %v8696_v53 = vld [vmem:[#allocation20_spill] sm:$0xff] }
 0x153   : > { %v3932_v18 = vpop.eup %3931  ;;  %3951 = vlog2.f32 %v1965_v43  ;;  %v1893_v48 = vsub.f32 %v3926_v2, %v6009_v5  ;;  %v6176_v62 = vmax.f32 %v2105_v38, %v6142_v1  ;;  %v6179_v41 = vmax.f32 %v2106_v25, %v6145_v39  ;;  %v8698_v25 = vld [vmem:[#allocation21_spill] sm:$0xff]  ;;  %v6199_v0 = vld [vmem:[%s5039_s28 + $0x210] sm:$0xff]  ;;  %v6230_v52 = vld [vmem:[%s5039_s28 + $0x228] sm:$0xff] }
 0x154   : > { %v3934_v40 = vpop.eup %3933  ;;  %3953 = vrcp.f32 %v8695_v29  ;;  %v6186_v16 = vmax.f32 %v2107_v15, %v6152_v13  ;;  %v6189_v6 = vmax.f32 %v2108_v54, %v6155_v58  ;;  %v6192_v29 = vmax.f32 %v2109_v51, %v6158_v30  ;;  %8699 = vst [vmem:[#allocation29_spill] sm:$0xff] %v6199_v0  ;;  %v4286_v51 = vld [vmem:[%s5022_s17 + $0xd8] sm:$0xff]  ;;  %v8701_v58 = vld [vmem:[#allocation22_spill] sm:$0xff]  ;;  %v8703_v15 = vld [vmem:[#allocation23_spill] sm:$0xff] }
 0x155   : > { %v3936_v43 = vpop.eup %3935  ;;  %3955 = vrcp.f32 %v8696_v53  ;;  %v1894_v2 = vsub.f32 %v3928_v14, %v6014_v57  ;;  %v6195_v38 = vmul.f32 %v1891_v28, %v1891_v28  ;;  %v6203_v54 = vmul.f32 %v1892_v37, %v1892_v37  ;;  %v8706_v57 = vld [vmem:[#allocation25_spill] sm:$0xff]  ;;  %8708 = vst [vmem:[#allocation57_spill] sm:$0xff] %v6230_v52  ;;  %v3677_v60 = vld [vmem:[%s5039_s28 + $0x468] sm:$0xff] }
 0x156   : > { %v3938_v5 = vpop.eup %3937  ;;  %3957 = vrcp.f32 %v8698_v25  ;;  %v1895_v28 = vsub.f32 %v3930_v50, %v6022_v17  ;;  %v6210_v25 = vmul.f32 %v1893_v48, %v1893_v48  ;;  %v1896_v48 = vsub.f32 %v3932_v18, %v6028_v34  ;;  %v6227_v1 = vld [vmem:[%s5039_s28 + $0x220] sm:$0xff] }
 0x157   : > { %8697 = vst [vmem:[#allocation45_spill] sm:$0xff] %v6195_v38  ;;  %v3940_v53 = vpop.eup %3939  ;;  %8700 = vst [vmem:[#allocation55_spill] sm:$0xff] %v6203_v54  ;;  %v1954_v30 = vmul.f32 %v4286_v51, %v3938_v5  ;;  %3959 = vrcp.f32 %v8701_v58  ;;  %v4287_v38 = vld [vmem:[%s5022_s17 + $0xe0] sm:$0xff]  ;;  %v4288_v54 = vld [vmem:[%s5022_s17 + $0xe8] sm:$0xff]  ;;  %v6232_v9 = vmul.f32 %v1894_v2, %v1894_v2 }
 0x158   : > { %v3942_v14 = vpop.eup %3941  ;;  %8702 = vst [vmem:[#allocation48_spill] sm:$0xff] %v6210_v25  ;;  %v1956_v13 = vmul.f32 %v4287_v38, %v3940_v53  ;;  %3961 = vrcp.f32 %v8703_v15  ;;  %v8704_v51 = vld [vmem:[#allocation24_spill] sm:$0xff]  ;;  %v4289_v38 = vld [vmem:[%s5022_s17 + $0xf0] sm:$0xff]  ;;  %8707 = vst [vmem:[#allocation31_spill] sm:$0xff] %v6227_v1 }
 0x159   : > { %v3944_v37 = vpop.eup %3943  ;;  %v1958_v39 = vmul.f32 %v4288_v54, %v3942_v14  ;;  %v1966_v5 = vadd.f32 1e-06, %v1954_v30  ;;  %3963 = vrcp.f32 %v8704_v51  ;;  %v6217_v58 = vld [vmem:[%s5039_s28 + $0x218] sm:$0xff]  ;;  %v1897_v30 = vsub.f32 %v3934_v40, %v6031_v63  ;;  %8709 = vst [vmem:[#allocation54_spill] sm:$0xff] %v6232_v9  ;;  %v3672_v26 = vld [vmem:[%s5039_s28 + $0x440] sm:$0xff] }
 0x15a   : > { %8705 = vst [vmem:[#allocation50_spill] sm:$0xff] %v6217_v58  ;;  %v3946_v50 = vpop.eup %3945  ;;  %v1960_v53 = vmul.f32 %v4289_v38, %v3944_v37  ;;  %v1967_v15 = vadd.f32 1e-06, %v1956_v13  ;;  %3965 = vrcp.f32 %v8706_v57  ;;  %v4290_v54 = vld [vmem:[%s5022_s17 + $0xf8] sm:$0xff]  ;;  %v1898_v63 = vsub.f32 %v3936_v43, %v6036_v12  ;;  %v6240_v57 = vld [vmem:[%s5039_s28 + $0x230] sm:$0xff]  ;;  %v4291_v38 = vld [vmem:[%s5022_s17 + $0x100] sm:$0xff] }
 0x15b   : > { %v3948_v25 = vpop.eup %3947  ;;  %v1962_v14 = vmul.f32 %v4290_v54, %v3946_v50  ;;  %v1968_v51 = vadd.f32 1e-06, %v1958_v39  ;;  %3967 = vlog2.f32 %v1966_v5  ;;  %v6237_v40 = vmul.f32 %v1895_v28, %v1895_v28  ;;  %8711 = vst [vmem:[#allocation34_spill] sm:$0xff] %v6240_v57  ;;  %v8715_v5 = vld [vmem:[#allocation26_spill] sm:$0xff]  ;;  %v6281_v9 = vld [vmem:[%s5039_s28 + $0x258] sm:$0xff] }
 0x15c   : > { %v3950_v17 = vpop.eup %3949  ;;  %v1969_v18 = vadd.f32 1e-06, %v1960_v53  ;;  %3969 = vlog2.f32 %v1967_v15  ;;  %v6242_v37 = vmul.f32 %v1896_v48, %v1896_v48  ;;  %v6248_v43 = vmul.f32 %v1897_v30, %v1897_v30  ;;  %v6252_v15 = vld [vmem:[%s5039_s28 + $0x238] sm:$0xff]  ;;  %v3608_v48 = vld [vmem:[%s5039_s28 + $0x240] sm:$0xff]  ;;  %8720 = vst [vmem:[#allocation61_spill] sm:$0xff] %v6281_v9 }
 0x15d   : > { %v3952_v13 = vpop.eup %3951  ;;  %8710 = vst [vmem:[#allocation32_spill] sm:$0xff] %v6237_v40  ;;  %v1970_v39 = vadd.f32 1e-06, %v1962_v14  ;;  %3971 = vlog2.f32 %v1968_v51  ;;  %v1972_v28 = vmul.f32 0.6931472, %v3948_v25  ;;  %8714 = vst [vmem:[#allocation35_spill] sm:$0xff] %v6252_v15  ;;  %v6259_v25 = vmul.f32 %v1898_v63, %v1898_v63 }
 0x15e   : > { %v3954_v2 = vpop.eup %3953  ;;  %8712 = vst [vmem:[#allocation40_spill] sm:$0xff] %v6242_v37  ;;  %3973 = vlog2.f32 %v1969_v18  ;;  %8713 = vst [vmem:[#allocation59_spill] sm:$0xff] %v6248_v43  ;;  %v1974_v14 = vmul.f32 0.6931472, %v3950_v17  ;;  %v4292_v51 = vld [vmem:[%s5022_s17 + $0x108] sm:$0xff]  ;;  %v4294_v17 = vld [vmem:[%s5022_s17 + $0x118] sm:$0xff]  ;;  %v8717_v30 = vmax.f32 %v6161_v27, %v6171_v56 }
 0x15f   : > { %v3956_v12 = vpop.eup %3955  ;;  %3975 = vlog2.f32 %v1970_v39  ;;  %v2012_v53 = vmul.f32 %v4291_v38, %v3954_v2  ;;  %8716 = vst [vmem:[#allocation43_spill] sm:$0xff] %v6259_v25  ;;  %v1976_v39 = vmul.f32 0.6931472, %v3952_v13  ;;  %v4293_v2 = vld [vmem:[%s5022_s17 + $0x110] sm:$0xff]  ;;  %v4295_v25 = vld [vmem:[%s5039_s28 + $0xc0] sm:$0xff]  ;;  %v4298_v27 = vld [vmem:[%s5022_s17 + $0x128] sm:$0xff] }
 0x160   : > { %v3958_v54 = vpop.eup %3957  ;;  %v2014_v18 = vmul.f32 %v4292_v51, %v3956_v12  ;;  %3977 = vrcp.f32 %v8715_v5  ;;  %v6268_v63 = vmax.f32 %v8717_v30, %v3608_v48  ;;  %v4297_v5 = vld [vmem:[%s5039_s28 + $0xc8] sm:$0xff] }
 0x161   : > { %v3960_v50 = vpop.eup %3959  ;;  %v2016_v38 = vmul.f32 %v4293_v2, %v3958_v54  ;;  %v2027_v34 = vadd.f32 1e-06, %v2012_v53  ;;  %v1987_v54 = vsub.f32 %v4295_v25, %v1972_v28  ;;  %v4296_v53 = vld [vmem:[%s5022_s17 + $0x120] sm:$0xff]  ;;  %v1988_v40 = vsub.f32 %v4297_v5, %v1974_v14  ;;  %v4299_v25 = vld [vmem:[%s5039_s28 + $0xd0] sm:$0xff] }
 0x162   : > { %v3962_v43 = vpop.eup %3961  ;;  %v2018_v12 = vmul.f32 %v4294_v17, %v3960_v50  ;;  %v2028_v51 = vadd.f32 1e-06, %v2014_v18  ;;  %v6273_v50 = vld [vmem:[%s5039_s28 + $0x248] sm:$0xff]  ;;  %v6276_v18 = vld [vmem:[%s5039_s28 + $0x250] sm:$0xff]  ;;  %v8721_v14 = vmax.f32 %v6165_v36, %v6182_v7  ;;  %v8725_v36 = vmax.f32 %v6176_v62, %v6217_v58 }
 0x163   : > { %v3964_v13 = vpop.eup %3963  ;;  %v2020_v2 = vmul.f32 %v4296_v53, %v3962_v43  ;;  %v2029_v37 = vadd.f32 1e-06, %v2016_v38  ;;  %3979 = vlog2.f32 %v2027_v34  ;;  %8718 = vst [vmem:[#allocation60_spill] sm:$0xff] %v6273_v50  ;;  %8719 = vst [vmem:[#allocation44_spill] sm:$0xff] %v6276_v18  ;;  %v1989_v43 = vsub.f32 %v4299_v25, %v1976_v39  ;;  %v4300_v38 = vld [vmem:[%s5022_s17 + $0x130] sm:$0xff] }
 0x164   : > { %v3966_v17 = vpop.eup %3965  ;;  %v2022_v48 = vmul.f32 %v4298_v27, %v3964_v13  ;;  %v2030_v30 = vadd.f32 1e-06, %v2018_v12  ;;  %3981 = vlog2.f32 %v2028_v51  ;;  %v6289_v12 = vmax.f32 %v8721_v14, %v6273_v50  ;;  %v3654_v58 = vld [vmem:[%s5039_s28 + $0x3b0] sm:$0xff] }
 0x165   : > { %v3968_v28 = vpop.eup %3967  ;;  %v2024_v34 = vmul.f32 %v4300_v38, %v3966_v17  ;;  %v2031_v53 = vadd.f32 1e-06, %v2020_v2  ;;  %3983 = vlog2.f32 %v2029_v37  ;;  %v8722_v51 = vmax.f32 %v6168_v23, %v6199_v0  ;;  %v6298_v2 = vld [vmem:[%s5039_s28 + $0x260] sm:$0xff]  ;;  %v6301_v17 = vld [vmem:[%s5039_s28 + $0x268] sm:$0xff]  ;;  %v3655_v0 = vld [vmem:[%s5039_s28 + $0x3b8] sm:$0xff] }
 0x166   : > { %v3970_v56 = vpop.eup %3969  ;;  %v1978_v45 = vmul.f32 0.6931472, %v3968_v28  ;;  %v2032_v35 = vadd.f32 1e-06, %v2022_v48  ;;  %v1995_v37 = vmul.f32 %v1987_v54, %v1987_v54  ;;  %3985 = vlog2.f32 %v2030_v30  ;;  %8723 = vst [vmem:[#allocation47_spill] sm:$0xff] %v6298_v2  ;;  %8724 = vst [vmem:[#allocation64_spill] sm:$0xff] %v6301_v17 }
 0x167   : > { %v6295_v39 = vmax.f32 %v8722_v51, %v6276_v18  ;;  %v3972_v5 = vpop.eup %3971  ;;  %v1980_v13 = vmul.f32 0.6931472, %v3970_v56  ;;  %v6307_v7 = vmax.f32 %v8725_v36, %v6281_v9  ;;  %v4301_v48 = vld [vmem:[%s5039_s28 + $0xd8] sm:$0xff]  ;;  %v1996_v25 = vmul.f32 %v1988_v40, %v1988_v40  ;;  %v6311_v54 = vld [vmem:[%s5039_s28 + $0x270] sm:$0xff]  ;;  %v4302_v51 = vld [vmem:[%s5039_s28 + $0xe0] sm:$0xff] }
 0x168   : > { %v3974_v27 = vpop.eup %3973  ;;  %v1982_v23 = vmul.f32 0.6931472, %v3972_v5  ;;  %v1990_v28 = vsub.f32 %v4301_v48, %v1978_v45  ;;  %v2033_v56 = vadd.f32 1e-06, %v2024_v34  ;;  %8726 = vst [vmem:[#allocation49_spill] sm:$0xff] %v6311_v54  ;;  %v6314_v30 = vld [vmem:[%s5039_s28 + $0x278] sm:$0xff]  ;;  %v1997_v36 = vmul.f32 %v1989_v43, %v1989_v43 }
 0x169   : > { %8727 = vst [vmem:[#allocation67_spill] sm:$0xff] %v6314_v30  ;;  %v3976_v38 = vpop.eup %3975  ;;  %v1984_v14 = vmul.f32 0.6931472, %v3974_v27  ;;  %v1991_v62 = vsub.f32 %v4302_v51, %v1980_v13  ;;  %3987 = vlog2.f32 %v2031_v53  ;;  %v4303_v18 = vld [vmem:[%s5039_s28 + $0xe8] sm:$0xff]  ;;  %v8728_v40 = vmax.f32 %v6179_v41, %v6227_v1  ;;  %v3616_v27 = vld [vmem:[%s5039_s28 + $0x280] sm:$0xff]  ;;  %v4304_v48 = vld [vmem:[%s5022_s17 + $0x138] sm:$0xff] }
 0x16a   : > { %v3978_v9 = vpop.eup %3977  ;;  %v1986_v5 = vmul.f32 0.6931472, %v3976_v38  ;;  %v1992_v45 = vsub.f32 %v4303_v18, %v1982_v23  ;;  %3989 = vlog2.f32 %v2032_v35  ;;  %v8729_v43 = vmax.f32 %v6186_v16, %v6230_v52  ;;  %v3618_v38 = vld [vmem:[%s5039_s28 + $0x290] sm:$0xff] }
 0x16b   : > { %v6322_v34 = vmax.f32 %v8728_v40, %v6298_v2  ;;  %v2026_v13 = vmul.f32 %v4304_v48, %v3978_v9  ;;  %v8730_v35 = vmax.f32 %v6189_v6, %v6240_v57  ;;  %v8731_v41 = vmax.f32 %v6192_v29, %v6252_v15  ;;  %v3617_v9 = vld [vmem:[%s5039_s28 + $0x288] sm:$0xff]  ;;  %v3619_v6 = vld [vmem:[%s5039_s28 + $0x298] sm:$0xff]  ;;  %v3620_v48 = vld [vmem:[%s5039_s28 + $0x2a0] sm:$0xff] }
 0x16c   : > { %v6330_v53 = vmax.f32 %v8729_v43, %v6301_v17  ;;  %v1998_v16 = vmul.f32 %v1990_v28, %v1990_v28  ;;  %v6347_v51 = vadd.f32 %v1995_v37, %v6061_v47  ;;  %v6350_v40 = vadd.f32 %v1996_v25, %v6064_v11  ;;  %v4305_v29 = vld [vmem:[%s5039_s28 + $0xf0] sm:$0xff]  ;;  %v4306_v11 = vld [vmem:[%s5039_s28 + $0xf8] sm:$0xff] }
 0x16d   : > { %v6336_v18 = vmax.f32 %v8730_v35, %v6311_v54  ;;  %v6342_v23 = vmax.f32 %v8731_v41, %v6314_v30  ;;  %3991 = vlog2.f32 %v2033_v56  ;;  %v3980_v43 = vpop.eup %3979  ;;  %v1993_v35 = vsub.f32 %v4305_v29, %v1984_v14  ;;  %v3621_v54 = vld [vmem:[%s5039_s28 + $0x2a8] sm:$0xff]  ;;  %v3622_v28 = vld [vmem:[%s5039_s28 + $0x2b0] sm:$0xff]  ;;  %v3623_v17 = vld [vmem:[%s5039_s28 + $0x2b8] sm:$0xff] }
 0x16e   : > { %v1999_v41 = vmul.f32 %v1991_v62, %v1991_v62  ;;  %v6356_v30 = vadd.f32 %v1997_v36, %v6067_v59  ;;  %v2170_v47 = vmax.f32 %v6268_v63, %v3616_v27  ;;  %v3982_v37 = vpop.eup %3981  ;;  %v1994_v25 = vsub.f32 %v4306_v11, %v1986_v5  ;;  %v3624_v62 = vld [vmem:[%s5039_s28 + $0x2c0] sm:$0xff]  ;;  %v3625_v27 = vld [vmem:[%s5039_s28 + $0x2c8] sm:$0xff]  ;;  %v3634_v11 = vld [vmem:[%s5039_s28 + $0x310] sm:$0xff] }
 0x16f   : > { %v2000_v56 = vmul.f32 %v1992_v45, %v1992_v45  ;;  %v2171_v2 = vmax.f32 %v6289_v12, %v3617_v9  ;;  %v2172_v14 = vmax.f32 %v6295_v39, %v3618_v38  ;;  %v3984_v29 = vpop.eup %3983  ;;  %v2034_v59 = vadd.f32 1e-06, %v2026_v13  ;;  %v3626_v9 = vld [vmem:[%s5039_s28 + $0x2d0] sm:$0xff]  ;;  %v3627_v13 = vld [vmem:[%s5039_s28 + $0x2d8] sm:$0xff] }
 0x170   : > { %v2036_v36 = vmul.f32 0.6931472, %v3980_v43  ;;  %v2173_v50 = vmax.f32 %v6307_v7, %v3619_v6  ;;  %v2174_v63 = vmax.f32 %v6322_v34, %v3620_v48  ;;  %v6370_v5 = vadd.f32 %v1998_v16, %v6083_v19  ;;  %v3986_v38 = vpop.eup %3985  ;;  %v3628_v19 = vld [vmem:[%s5039_s28 + $0x2e0] sm:$0xff]  ;;  %v3629_v16 = vld [vmem:[%s5039_s28 + $0x2e8] sm:$0xff]  ;;  %v3635_v15 = vld [vmem:[%s5039_s28 + $0x318] sm:$0xff] }
 0x171   : > { %v2038_v45 = vmul.f32 0.6931472, %v3982_v37  ;;  %v2175_v12 = vmax.f32 %v6330_v53, %v3621_v54  ;;  %v2176_v39 = vmax.f32 %v6336_v18, %v3622_v28  ;;  %v2001_v43 = vmul.f32 %v1993_v35, %v1993_v35  ;;  %v3630_v18 = vld [vmem:[%s5039_s28 + $0x2f0] sm:$0xff]  ;;  %v3631_v28 = vld [vmem:[%s5039_s28 + $0x2f8] sm:$0xff] }
 0x172   : > { %v6377_v7 = vadd.f32 %v1999_v41, %v6086_v21  ;;  %v2177_v34 = vmax.f32 %v6342_v23, %v3623_v17  ;;  %v2187_v6 = vmax.f32 %v2170_v47, %v3624_v62  ;;  %v2002_v48 = vmul.f32 %v1994_v25, %v1994_v25  ;;  %v3632_v21 = vld [vmem:[%s5039_s28 + $0x300] sm:$0xff] }
 0x173   : > { %v6383_v54 = vadd.f32 %v2000_v56, %v6099_v20  ;;  %v2040_v53 = vmul.f32 0.6931472, %v3984_v29  ;;  %v6387_v37 = vmax.f32 %v2171_v2, %v3625_v27  ;;  %v3988_v35 = vpop.eup %3987  ;;  %3993 = vlog2.f32 %v2034_v59  ;;  %v4307_v17 = vld [vmem:[%s5039_s28 + $0x100] sm:$0xff]  ;;  %v3633_v20 = vld [vmem:[%s5039_s28 + $0x308] sm:$0xff] }
 0x174   : > { %v2051_v23 = vsub.f32 %v4307_v17, %v2036_v36  ;;  %v2189_v41 = vmax.f32 %v2172_v14, %v3626_v9  ;;  %v6391_v47 = vmax.f32 %v2173_v50, %v3627_v13  ;;  %v3990_v25 = vpop.eup %3989  ;;  %v2042_v56 = vmul.f32 0.6931472, %v3986_v38  ;;  %v4308_v2 = vld [vmem:[%s5039_s28 + $0x108] sm:$0xff]  ;;  %v3636_v59 = vld [vmem:[%s5039_s28 + $0x320] sm:$0xff]  ;;  %v3638_v13 = vld [vmem:[%s5039_s28 + $0x330] sm:$0xff] }
 0x175   : > { %v2052_v62 = vsub.f32 %v4308_v2, %v2038_v45  ;;  %v2191_v29 = vmax.f32 %v2174_v63, %v3628_v19  ;;  %v2192_v27 = vmax.f32 %v2175_v12, %v3629_v16  ;;  %v3637_v36 = vld [vmem:[%s5039_s28 + $0x328] sm:$0xff]  ;;  %v6400_v50 = vadd.f32 %v2001_v43, %v6122_v55  ;;  %v3640_v38 = vld [vmem:[%s5039_s28 + $0x340] sm:$0xff]  ;;  %v4309_v16 = vld [vmem:[%s5039_s28 + $0x110] sm:$0xff] }
 0x176   : > { %v2193_v14 = vmax.f32 %v2176_v39, %v3630_v18  ;;  %v2194_v9 = vmax.f32 %v2177_v34, %v3631_v28  ;;  %v2204_v17 = vmax.f32 %v2187_v6, %v3632_v21  ;;  %v3641_v45 = vld [vmem:[%s5039_s28 + $0x348] sm:$0xff]  ;;  %v6406_v12 = vadd.f32 %v2002_v48, %v6149_v42  ;;  %v3639_v55 = vld [vmem:[%s5039_s28 + $0x338] sm:$0xff]  ;;  %v3642_v43 = vld [vmem:[%s5039_s28 + $0x350] sm:$0xff] }
 0x177   : > { %v3992_v63 = vpop.eup %3991  ;;  %v2044_v19 = vmul.f32 0.6931472, %v3988_v35  ;;  %v2053_v2 = vsub.f32 %v4309_v16, %v2040_v53  ;;  %v2205_v39 = vmax.f32 %v6387_v37, %v3633_v20  ;;  %v3643_v34 = vld [vmem:[%s5039_s28 + $0x358] sm:$0xff]  ;;  %v2046_v6 = vmul.f32 0.6931472, %v3990_v25  ;;  %v3644_v48 = vld [vmem:[%s5039_s28 + $0x360] sm:$0xff] }
 0x178   : > { %8732 = vst [vmem:[#allocation52_spill] sm:$0xff] %v6406_v12  ;;  %v6413_v18 = vmul.f32 %v2051_v23, %v2051_v23  ;;  %v2206_v28 = vmax.f32 %v2189_v41, %v3634_v11  ;;  %v2207_v42 = vmax.f32 %v6391_v47, %v3635_v15  ;;  %v3645_v21 = vld [vmem:[%s5039_s28 + $0x368] sm:$0xff]  ;;  %v3648_v35 = vld [vmem:[%s5039_s28 + $0x380] sm:$0xff]  ;;  %v4310_v37 = vld [vmem:[%s5039_s28 + $0x118] sm:$0xff]  ;;  %v6425_v25 = vmul.f32 %v2052_v62, %v2052_v62 }
 0x179   : > { %v6420_v53 = vld [vmem:[%s5039_s28 + $0x388] sm:$0xff]  ;;  %v6423_v20 = vsub.f32 %v4310_v37, %v2042_v56  ;;  %v2208_v23 = vmax.f32 %v2191_v29, %v3636_v59  ;;  %v2209_v16 = vmax.f32 %v2192_v27, %v3637_v36  ;;  %v3646_v41 = vld [vmem:[%s5039_s28 + $0x370] sm:$0xff]  ;;  %v3647_v11 = vld [vmem:[%s5039_s28 + $0x378] sm:$0xff]  ;;  %v2048_v12 = vmul.f32 0.6931472, %v3992_v63 }
 0x17a   : > { %v3650_v15 = vld [vmem:[%s5039_s28 + $0x390] sm:$0xff]  ;;  %v3651_v47 = vld [vmem:[%s5039_s28 + $0x398] sm:$0xff]  ;;  %v2210_v57 = vmax.f32 %v2193_v14, %v3638_v13  ;;  %v2211_v52 = vmax.f32 %v2194_v9, %v3639_v55  ;;  %v2221_v1 = vmax.f32 %v2204_v17, %v3640_v38  ;;  %v3652_v56 = vld [vmem:[%s5039_s28 + $0x3a0] sm:$0xff]  ;;  %v6438_v59 = vmul.f32 %v2053_v2, %v2053_v2 }
 0x17b   : > { %v3653_v37 = vld [vmem:[%s5039_s28 + $0x3a8] sm:$0xff]  ;;  %v3656_v62 = vld [vmem:[%s5039_s28 + $0x3c0] sm:$0xff]  ;;  %v2222_v36 = vmax.f32 %v2205_v39, %v3641_v45  ;;  %v2223_v63 = vmax.f32 %v2206_v28, %v3642_v43  ;;  %v3658_v9 = vld [vmem:[%s5039_s28 + $0x3d0] sm:$0xff]  ;;  %v2224_v38 = vmax.f32 %v2207_v42, %v3643_v34  ;;  %v2225_v55 = vmax.f32 %v2208_v23, %v3644_v48 }
 0x17c   : > { %v4311_v29 = vld [vmem:[%s5039_s28 + $0x120] sm:$0xff]  ;;  %v3657_v14 = vld [vmem:[%s5039_s28 + $0x3c8] sm:$0xff]  ;;  %v3659_v13 = vld [vmem:[%s5039_s28 + $0x3d8] sm:$0xff]  ;;  %v2226_v10 = vmax.f32 %v2209_v16, %v3645_v21  ;;  %v2227_v4 = vmax.f32 %v2210_v57, %v3646_v41  ;;  %v2228_v43 = vmax.f32 %v2211_v52, %v3647_v11  ;;  %v2238_v28 = vmax.f32 %v2221_v1, %v3648_v35 }
 0x17d   : > { %v6436_v27 = vsub.f32 %v4311_v29, %v2044_v19  ;;  %v3660_v17 = vld [vmem:[%s5039_s28 + $0x3e0] sm:$0xff]  ;;  %v3661_v19 = vld [vmem:[%s5039_s28 + $0x3e8] sm:$0xff]  ;;  %v3662_v29 = vld [vmem:[%s5039_s28 + $0x3f0] sm:$0xff]  ;;  %v2239_v24 = vmax.f32 %v2222_v36, %v6420_v53  ;;  %v3994_v48 = vpop.eup %3993  ;;  %v2240_v21 = vmax.f32 %v2223_v63, %v3650_v15  ;;  %v2241_v23 = vmax.f32 %v2224_v38, %v3651_v47 }
 0x17e   : > { %v3663_v2 = vld [vmem:[%s5039_s28 + $0x3f8] sm:$0xff]  ;;  %v4312_v45 = vld [vmem:[%s5039_s28 + $0x128] sm:$0xff]  ;;  %v3666_v42 = vld [vmem:[%s5039_s28 + $0x410] sm:$0xff]  ;;  %v2242_v16 = vmax.f32 %v2225_v55, %v3652_v56  ;;  %v2244_v11 = vmax.f32 %v2227_v4, %v3654_v58  ;;  %v2245_v36 = vmax.f32 %v2228_v43, %v3655_v0  ;;  %v2255_v32 = vmax.f32 %v2238_v28, %v3656_v62 }
 0x17f   : > { %v6449_v39 = vsub.f32 %v4312_v45, %v2046_v6  ;;  %v3665_v34 = vld [vmem:[%s5039_s28 + $0x408] sm:$0xff]  ;;  %v3667_v57 = vld [vmem:[%s5039_s28 + $0x418] sm:$0xff]  ;;  %v2243_v6 = vmax.f32 %v2226_v10, %v3653_v37  ;;  %v3668_v41 = vld [vmem:[%s5039_s28 + $0x420] sm:$0xff]  ;;  %v2256_v56 = vmax.f32 %v2239_v24, %v3657_v14  ;;  %v2257_v37 = vmax.f32 %v2240_v21, %v3658_v9 }
 0x180   : > { %v3669_v45 = vld [vmem:[%s5039_s28 + $0x428] sm:$0xff]  ;;  %v3670_v52 = vld [vmem:[%s5039_s28 + $0x430] sm:$0xff]  ;;  %v3671_v1 = vld [vmem:[%s5039_s28 + $0x438] sm:$0xff]  ;;  %v2258_v63 = vmax.f32 %v2241_v23, %v3659_v13  ;;  %v2259_v38 = vmax.f32 %v2242_v16, %v3660_v17  ;;  %v6471_v0 = vmul.f32 0.6931472, %v3994_v48  ;;  %v2261_v62 = vmax.f32 %v2244_v11, %v3662_v29 }
 0x181   : > { %v4313_v35 = vld [vmem:[%s5039_s28 + $0x130] sm:$0xff]  ;;  %v3673_v15 = vld [vmem:[%s5039_s28 + $0x448] sm:$0xff]  ;;  %v3675_v10 = vld [vmem:[%s5039_s28 + $0x458] sm:$0xff]  ;;  %v2260_v58 = vmax.f32 %v2243_v6, %v3661_v19  ;;  %v2262_v43 = vmax.f32 %v2245_v36, %v3663_v2  ;;  %v2272_v9 = vmax.f32 %v2255_v32, %v3664_v8  ;;  %v2273_v13 = vmax.f32 %v2256_v56, %v3665_v34 }
 0x182   : > { %v6461_v53 = vsub.f32 %v4313_v35, %v2048_v12  ;;  %v3674_v47 = vld [vmem:[%s5039_s28 + $0x450] sm:$0xff]  ;;  %v3676_v55 = vld [vmem:[%s5039_s28 + $0x460] sm:$0xff]  ;;  %v3679_v4 = vld [vmem:[%s5039_s28 + $0x478] sm:$0xff]  ;;  %v2274_v17 = vmax.f32 %v2257_v37, %v3666_v42  ;;  %v2275_v21 = vmax.f32 %v2258_v63, %v3667_v57  ;;  %v2276_v35 = vmax.f32 %v2259_v38, %v3668_v41 }
 0x183   : > { %v3678_v12 = vld [vmem:[%s5039_s28 + $0x470] sm:$0xff]  ;;  %v3680_v28 = vld [vmem:[%s5039_s28 + $0x480] sm:$0xff]  ;;  %v3681_v24 = vld [vmem:[%s5039_s28 + $0x488] sm:$0xff]  ;;  %v2277_v19 = vmax.f32 %v2260_v58, %v3669_v45  ;;  %v2278_v29 = vmax.f32 %v2261_v62, %v3670_v52  ;;  %v2279_v2 = vmax.f32 %v2262_v43, %v3671_v1  ;;  %v2289_v32 = vmax.f32 %v2272_v9, %v3672_v26 }
 0x184   : > { %v3682_v14 = vld [vmem:[%s5039_s28 + $0x490] sm:$0xff]  ;;  %v3683_v23 = vld [vmem:[%s5039_s28 + $0x498] sm:$0xff]  ;;  %v3684_v16 = vld [vmem:[%s5039_s28 + $0x4a0] sm:$0xff]  ;;  %v2290_v8 = vmax.f32 %v2273_v13, %v3673_v15  ;;  %v2291_v34 = vmax.f32 %v2274_v17, %v3674_v47  ;;  %v2292_v42 = vmax.f32 %v2275_v21, %v3675_v10  ;;  %v2293_v41 = vmax.f32 %v2276_v35, %v3676_v55 }
 0x185   : > { %v3685_v48 = vld [vmem:[%s5039_s28 + $0x4a8] sm:$0xff]  ;;  %v3686_v6 = vld [vmem:[%s5039_s28 + $0x4b0] sm:$0xff]  ;;  %v3687_v11 = vld [vmem:[%s5039_s28 + $0x4b8] sm:$0xff]  ;;  %v2294_v45 = vmax.f32 %v2277_v19, %v3677_v60  ;;  %v2295_v52 = vmax.f32 %v2278_v29, %v3678_v12  ;;  %v2296_v1 = vmax.f32 %v2279_v2, %v3679_v4  ;;  %v2306_v26 = vmax.f32 %v2289_v32, %v3680_v28 }
 0x186   : > { %v3688_v36 = vld [vmem:[%s5039_s28 + $0x4c0] sm:$0xff]  ;;  %v3689_v57 = vld [vmem:[%s5039_s28 + $0x4c8] sm:$0xff]  ;;  %v3690_v56 = vld [vmem:[%s5039_s28 + $0x4d0] sm:$0xff]  ;;  %v2307_v15 = vmax.f32 %v2290_v8, %v3681_v24  ;;  %v2308_v47 = vmax.f32 %v2291_v34, %v3682_v14  ;;  %v2309_v10 = vmax.f32 %v2292_v42, %v3683_v23  ;;  %v2310_v55 = vmax.f32 %v2293_v41, %v3684_v16 }
 0x187   : > { %v3691_v37 = vld [vmem:[%s5039_s28 + $0x4d8] sm:$0xff]  ;;  %v3692_v63 = vld [vmem:[%s5039_s28 + $0x4e0] sm:$0xff]  ;;  %v3693_v38 = vld [vmem:[%s5039_s28 + $0x4e8] sm:$0xff]  ;;  %v2311_v60 = vmax.f32 %v2294_v45, %v3685_v48  ;;  %v2312_v12 = vmax.f32 %v2295_v52, %v3686_v6  ;;  %v2313_v13 = vmax.f32 %v2296_v1, %v3687_v11  ;;  %v2323_v35 = vmax.f32 %v2306_v26, %v3688_v36 }
 0x188   : > { %v3694_v58 = vld [vmem:[%s5039_s28 + $0x4f0] sm:$0xff]  ;;  %v3695_v62 = vld [vmem:[%s5039_s28 + $0x4f8] sm:$0xff]  ;;  %v3696_v43 = vld [vmem:[%s5039_s28 + $0x500] sm:$0xff]  ;;  %v2324_v19 = vmax.f32 %v2307_v15, %v3689_v57  ;;  %v2325_v29 = vmax.f32 %v2308_v47, %v3690_v56  ;;  %v2326_v28 = vmax.f32 %v2309_v10, %v3691_v37  ;;  %v2327_v23 = vmax.f32 %v2310_v55, %v3692_v63 }
 0x189   : > { %v3697_v9 = vld [vmem:[%s5039_s28 + $0x508] sm:$0xff]  ;;  %v3698_v4 = vld [vmem:[%s5039_s28 + $0x510] sm:$0xff]  ;;  %v3699_v17 = vld [vmem:[%s5039_s28 + $0x518] sm:$0xff]  ;;  %v2328_v32 = vmax.f32 %v2311_v60, %v3693_v38  ;;  %v2329_v8 = vmax.f32 %v2312_v12, %v3694_v58  ;;  %v2330_v34 = vmax.f32 %v2313_v13, %v3695_v62  ;;  %v6497_v42 = vmax.f32 %v2323_v35, %v3696_v43 }
 0x18a   : > { %v3700_v21 = vld [vmem:[%s5039_s28 + $0x520] sm:$0xff]  ;;  %v3701_v24 = vld [vmem:[%s5039_s28 + $0x528] sm:$0xff]  ;;  %v3702_v14 = vld [vmem:[%s5039_s28 + $0x530] sm:$0xff]  ;;  %v6499_v16 = vmax.f32 %v2324_v19, %v3697_v9  ;;  %v6501_v48 = vmax.f32 %v2325_v29, %v3698_v4  ;;  %v6503_v6 = vmax.f32 %v2326_v28, %v3699_v17  ;;  %v2062_v37 = vmul.f32 %v6423_v20, %v6423_v20 }
 0x18b   : > { %v3703_v2 = vld [vmem:[%s5039_s28 + $0x538] sm:$0xff]  ;;  %v6505_v11 = vmax.f32 %v2327_v23, %v3700_v21  ;;  %v6507_v36 = vmax.f32 %v2328_v32, %v3701_v24  ;;  %v6509_v57 = vmax.f32 %v2329_v8, %v3702_v14  ;;  %v2063_v41 = vmul.f32 %v6436_v27, %v6436_v27  ;;  %v6564_v43 = vld [vmem:[%s5022_s17 + $0x150] sm:$0xff]  ;;  %v6581_v60 = vld [vmem:[%s5022_s17 + $0x168] sm:$0xff] }
 0x18c   : > { %8733 = vst [vmem:[#allocation77_spill] sm:$0xff] %v6499_v16  ;;  %8734 = vst [vmem:[#allocation53_spill] sm:$0xff] %v6501_v48  ;;  %v6511_v56 = vmax.f32 %v2330_v34, %v3703_v2  ;;  %v2348_v45 = vsub.f32 %v6041_v33, %v6497_v42  ;;  %v2349_v52 = vsub.f32 %v6044_v31, %v6499_v16  ;;  %v4314_v1 = vld [vmem:[%s5039_s28 + $0x138] sm:$0xff]  ;;  %v8748_v21 = vld [vmem:[#allocation46_spill] sm:$0xff]  ;;  %vm2382_vm2 = vcmp.eq.f32.partialorder %v6564_v43, 0.0 }
 0x18d   : > { %8735 = vst [vmem:[#allocation78_spill] sm:$0xff] %v6503_v6  ;;  %8736 = vst [vmem:[#allocation36_spill] sm:$0xff] %v6505_v11  ;;  %v2058_v63 = vsub.f32 %v4314_v1, %v6471_v0  ;;  %v2064_v38 = vmul.f32 %v6449_v39, %v6449_v39  ;;  %v2065_v20 = vmul.f32 %v6461_v53, %v6461_v53  ;;  %v6586_v19 = vld [vmem:[%s5022_s17 + $0x170] sm:$0xff]  ;;  %v6591_v24 = vld [vmem:[%s5022_s17 + $0x178] sm:$0xff]  ;;  %vm2385_vm5 = vcmp.eq.f32.partialorder %v6581_v60, 0.0 }
 0x18e   : > { %8737 = vst [vmem:[#allocation56_spill] sm:$0xff] %v6507_v36  ;;  %8738 = vst [vmem:[#allocation79_spill] sm:$0xff] %v6509_v57  ;;  %v2350_v27 = vsub.f32 %v6047_v49, %v6501_v48  ;;  %v6531_v58 = vadd.f32 %v6413_v18, %v6347_v51  ;;  %v2351_v26 = vsub.f32 %v6052_v61, %v6503_v6  ;;  %v2356_v15 = vmul.f32 1.442695, %v2348_v45  ;;  %v8750_v14 = vld [vmem:[#allocation97_spill] sm:$0xff]  ;;  %v8751_v23 = vld [vmem:[#allocation88_spill] sm:$0xff] }
 0x18f   : > { %8739 = vst [vmem:[#allocation62_spill] sm:$0xff] %v6511_v56  ;;  %v2352_v0 = vsub.f32 %v6055_v44, %v6505_v11  ;;  %v2353_v39 = vsub.f32 %v6071_v3, %v6507_v36  ;;  %v6541_v53 = vadd.f32 %v6425_v25, %v6350_v40  ;;  %v2354_v51 = vsub.f32 %v6074_v46, %v6509_v57  ;;  %v6558_v40 = vld [vmem:[%s5022_s17 + $0x140] sm:$0xff]  ;;  %v6561_v25 = vld [vmem:[%s5022_s17 + $0x148] sm:$0xff]  ;;  %v8752_v34 = vld [vmem:[#allocation87_spill] sm:$0xff] }
 0x190   : > { %8740 = vst [vmem:[#allocation80_spill] sm:$0xff] %v6531_v58  ;;  %v2355_v18 = vsub.f32 %v6090_v22, %v6511_v56  ;;  %v6549_v47 = vadd.f32 %v6438_v59, %v6356_v30  ;;  %v6552_v10 = vadd.f32 %v2062_v37, %v6370_v5  ;;  %v6555_v62 = vadd.f32 %v2063_v41, %v6377_v7  ;;  %v6575_v59 = vld [vmem:[%s5022_s17 + $0x158] sm:$0xff]  ;;  %v6578_v7 = vld [vmem:[%s5022_s17 + $0x160] sm:$0xff] }
 0x191   : > { %8741 = vst [vmem:[#allocation63_spill] sm:$0xff] %v6541_v53  ;;  %v2358_v9 = vmul.f32 1.442695, %v2349_v52  ;;  %v6566_v55 = vmul.f32 %v2058_v63, %v2058_v63  ;;  %v6569_v30 = vadd.f32 %v2064_v38, %v6383_v54  ;;  %v6572_v5 = vadd.f32 %v2065_v20, %v6400_v50  ;;  %v8749_v50 = vld [vmem:[#allocation96_spill] sm:$0xff]  ;;  %v8754_v38 = vld [vmem:[#allocation91_spill] sm:$0xff] }
 0x192   : > { %8742 = vst [vmem:[#allocation81_spill] sm:$0xff] %v6549_v47  ;;  %8743 = vst [vmem:[#allocation65_spill] sm:$0xff] %v6552_v10  ;;  %v2360_v12 = vmul.f32 1.442695, %v2350_v27  ;;  %v2362_v13 = vmul.f32 1.442695, %v2351_v26  ;;  %v2404_v35 = vsub.f32 %v8748_v21, %v6497_v42  ;;  %3995 = vpow2.f32 %v2356_v15 }
 0x193   : > { %8744 = vst [vmem:[#allocation83_spill] sm:$0xff] %v6555_v62  ;;  %8745 = vst [vmem:[#allocation66_spill] sm:$0xff] %v6566_v55  ;;  %v2364_v4 = vmul.f32 1.442695, %v2352_v0  ;;  %v2366_v17 = vmul.f32 1.442695, %v2353_v39  ;;  %v2405_v28 = vsub.f32 %v8749_v50, %v6499_v16  ;;  %3997 = vpow2.f32 %v2358_v9 }
 0x194   : > { %8746 = vst [vmem:[#allocation86_spill] sm:$0xff] %v6569_v30  ;;  %8747 = vst [vmem:[#allocation68_spill] sm:$0xff] %v6572_v5  ;;  %v2368_v54 = vmul.f32 1.442695, %v2354_v51  ;;  %v2370_v29 = vmul.f32 1.442695, %v2355_v18  ;;  %3999 = vpow2.f32 %v2360_v12  ;;  %v2406_v2 = vsub.f32 %v8750_v14, %v6501_v48 }
 0x195   : > { %vm2380_vm0 = vcmp.eq.f32.partialorder %v6558_v40, 0.0  ;;  %vm2381_vm1 = vcmp.eq.f32.partialorder %v6561_v25, 0.0  ;;  %vm2383_vm3 = vcmp.eq.f32.partialorder %v6575_v59, 0.0  ;;  %vm2384_vm4 = vcmp.eq.f32.partialorder %v6578_v7, 0.0  ;;  %v8753_v41 = vld [vmem:[#allocation92_spill] sm:$0xff] }
 0x196   : > { %4001 = vpow2.f32 %v2362_v13  ;;  %vm2386_vm6 = vcmp.eq.f32.partialorder %v6586_v19, 0.0  ;;  %v2407_v32 = vsub.f32 %v8751_v23, %v6503_v6  ;;  %vm2387_vm7 = vcmp.eq.f32.partialorder %v6591_v24, 0.0  ;;  %v8755_v26 = vld [vmem:[#allocation84_spill] sm:$0xff] }
 0x197   : > { %4003 = vpow2.f32 %v2364_v4  ;;  %v2388_v8 = vsel %vm2380_vm0, %v6041_v33, 0.0  ;;  %v2408_v37 = vsub.f32 %v8752_v34, %v6505_v11  ;;  %v2409_v45 = vsub.f32 %v8753_v41, %v6507_v36 }
 0x198   : > { %4005 = vpow2.f32 %v2366_v17  ;;  %v2412_v52 = vmul.f32 1.442695, %v2404_v35  ;;  %v2414_v1 = vmul.f32 1.442695, %v2405_v28  ;;  %v2389_v63 = vsel %vm2381_vm1, %v6044_v31, 0.0 }
 0x199   : > { %4007 = vpow2.f32 %v2368_v54  ;;  %v2410_v20 = vsub.f32 %v8754_v38, %v6509_v57  ;;  %v2416_v27 = vmul.f32 1.442695, %v2406_v2  ;;  %v2390_v33 = vsel %vm2382_vm2, %v6047_v49, 0.0 }
 0x19a   : > { %4009 = vpow2.f32 %v2370_v29  ;;  %v2411_v0 = vsub.f32 %v8755_v26, %v6511_v56  ;;  %v2418_v39 = vmul.f32 1.442695, %v2407_v32  ;;  %v2391_v51 = vsel %vm2383_vm3, %v6052_v61, 0.0 }
 0x19b   : > { %v2392_v31 = vsel %vm2384_vm4, %v6055_v44, 0.0  ;;  %4011 = vpow2.f32 %v2412_v52  ;;  %v2420_v18 = vmul.f32 1.442695, %v2408_v37  ;;  %v2393_v15 = vsel %vm2385_vm5, %v6071_v3, 0.0  ;;  %v8756_v44 = vld [vmem:[#allocation82_spill] sm:$0xff]  ;;  %v8758_v52 = vld [vmem:[#allocation89_spill] sm:$0xff] }
 0x19c   : > { %v2394_v49 = vsel %vm2386_vm6, %v6074_v46, 0.0  ;;  %4013 = vpow2.f32 %v2414_v1  ;;  %v2422_v9 = vmul.f32 1.442695, %v2409_v45  ;;  %v3996_v12 = vpop.eup %3995  ;;  %v2395_v61 = vsel %vm2387_vm7, %v6090_v22, 0.0  ;;  %v8757_v46 = vld [vmem:[#allocation85_spill] sm:$0xff] }
 0x19d   : > { %4015 = vpow2.f32 %v2416_v27  ;;  %v2424_v13 = vmul.f32 1.442695, %v2410_v20  ;;  %v2460_v4 = vsub.f32 %v8756_v44, %v6497_v42  ;;  %v3998_v17 = vpop.eup %3997  ;;  %v2426_v35 = vmul.f32 1.442695, %v2411_v0 }
 0x19e   : > { %4017 = vpow2.f32 %v2418_v39  ;;  %vm2436_vm8 = vcmp.eq.f32.partialorder %v6558_v40, 1.0  ;;  %vm2437_vm9 = vcmp.eq.f32.partialorder %v6561_v25, 1.0  ;;  %v4000_v3 = vpop.eup %3999  ;;  %vm2438_vm10 = vcmp.eq.f32.partialorder %v6564_v43, 1.0 }
 0x19f   : > { %4019 = vpow2.f32 %v2420_v18  ;;  %vm2439_vm11 = vcmp.eq.f32.partialorder %v6575_v59, 1.0  ;;  %v2461_v22 = vsub.f32 %v8757_v46, %v6499_v16  ;;  %vm2440_vm12 = vcmp.eq.f32.partialorder %v6578_v7, 1.0 }
 0x1a0   : > { %v4002_v54 = vpop.eup %4001  ;;  %4021 = vpow2.f32 %v2422_v9  ;;  %vm2441_vm13 = vcmp.eq.f32.partialorder %v6581_v60, 1.0  ;;  %vm2442_vm14 = vcmp.eq.f32.partialorder %v6586_v19, 1.0  ;;  %vm2443_vm15 = vcmp.eq.f32.partialorder %v6591_v24, 1.0 }
 0x1a1   : > { %v4004_v29 = vpop.eup %4003  ;;  %4023 = vpow2.f32 %v2424_v13  ;;  %v2444_v28 = vsel %vm2436_vm8, %v8748_v21, 0.0  ;;  %v2445_v2 = vsel %vm2437_vm9, %v8749_v50, 0.0  ;;  %v2446_v37 = vsel %vm2438_vm10, %v8750_v14, 0.0  ;;  %v8759_v21 = vld [vmem:[#allocation93_spill] sm:$0xff]  ;;  %v8760_v14 = vld [vmem:[#allocation94_spill] sm:$0xff] }
 0x1a2   : > { %v4006_v32 = vpop.eup %4005  ;;  %4025 = vpow2.f32 %v2426_v35  ;;  %v2447_v45 = vsel %vm2439_vm11, %v8751_v23, 0.0  ;;  %v2462_v1 = vsub.f32 %v8758_v52, %v6501_v48  ;;  %v2448_v27 = vsel %vm2440_vm12, %v8752_v34, 0.0 }
 0x1a3   : > { %v4008_v20 = vpop.eup %4007  ;;  %v2449_v0 = vsel %vm2441_vm13, %v8753_v41, 0.0  ;;  %v2450_v39 = vsel %vm2442_vm14, %v8754_v38, 0.0  ;;  %v2463_v18 = vsub.f32 %v8759_v21, %v6503_v6  ;;  %v2451_v9 = vsel %vm2443_vm15, %v8755_v26, 0.0  ;;  %v8761_v41 = vld [vmem:[#allocation13_spill] sm:$0xff] }
 0x1a4   : > { %v4010_v50 = vpop.eup %4009  ;;  %v6659_v13 = vadd.f32 %v2444_v28, %v2388_v8  ;;  %v2464_v23 = vsub.f32 %v8760_v14, %v6505_v11  ;;  %v2468_v44 = vmul.f32 1.442695, %v2460_v4  ;;  %v6663_v46 = vadd.f32 %v2445_v2, %v2389_v63  ;;  %v8762_v26 = vld [vmem:[#allocation37_spill] sm:$0xff]  ;;  %v8763_v28 = vld [vmem:[#allocation28_spill] sm:$0xff] }
 0x1a5   : > { %v4012_v35 = vpop.eup %4011  ;;  %v6665_v34 = vadd.f32 %v2446_v37, %v2390_v33  ;;  %v2465_v38 = vsub.f32 %v8761_v41, %v6507_v36  ;;  %v2470_v52 = vmul.f32 1.442695, %v2461_v22  ;;  %v6669_v21 = vadd.f32 %v2447_v45, %v2391_v51  ;;  %v8764_v45 = vld [vmem:[#allocation51_spill] sm:$0xff] }
 0x1a6   : > { %v4014_v5 = vpop.eup %4013  ;;  %v2466_v8 = vsub.f32 %v8762_v26, %v6509_v57  ;;  %v2467_v30 = vsub.f32 %v8763_v28, %v6511_v56  ;;  %v2472_v14 = vmul.f32 1.442695, %v2462_v1  ;;  %v6675_v55 = vadd.f32 %v2448_v27, %v2392_v31 }
 0x1a7   : > { %v4016_v4 = vpop.eup %4015  ;;  %v6677_v63 = vadd.f32 %v2449_v0, %v2393_v15  ;;  %v6679_v33 = vadd.f32 %v2450_v39, %v2394_v49  ;;  %v2474_v2 = vmul.f32 1.442695, %v2463_v18  ;;  %v6681_v22 = vadd.f32 %v2451_v9, %v2395_v61  ;;  %v4317_v18 = vld [vmem:[%s5039_s28 + $0x1d0] sm:$0xff] }
 0x1a8   : > { %v4018_v37 = vpop.eup %4017  ;;  %4027 = vpow2.f32 %v2468_v44  ;;  %v2476_v51 = vmul.f32 1.442695, %v2464_v23  ;;  %v2516_v41 = vsub.f32 %v8764_v45, %v6497_v42  ;;  %v6685_v62 = vadd.f32 %v4012_v35, %v3996_v12  ;;  %v6719_v23 = vld [vmem:[%s5039_s28 + $0x208] sm:$0xff]  ;;  %v8765_v44 = vld [vmem:[#allocation29_spill] sm:$0xff] }
 0x1a9   : > { %v4020_v26 = vpop.eup %4019  ;;  %v6687_v1 = vadd.f32 %v4014_v5, %v3998_v17  ;;  %4029 = vpow2.f32 %v2470_v52  ;;  %v2478_v31 = vmul.f32 1.442695, %v2465_v38  ;;  %v6689_v27 = vadd.f32 %v4016_v4, %v4000_v3  ;;  %v8766_v38 = vld [vmem:[#allocation50_spill] sm:$0xff] }
 0x1aa   : > { %v4022_v15 = vpop.eup %4021  ;;  %4031 = vpow2.f32 %v2472_v14  ;;  %v2480_v49 = vmul.f32 1.442695, %v2466_v8  ;;  %v2482_v0 = vmul.f32 1.442695, %v2467_v30  ;;  %v6691_v39 = vadd.f32 %v4018_v37, %v4002_v54  ;;  %v4315_v54 = vld [vmem:[%s5039_s28 + $0x1c0] sm:$0xff]  ;;  %v4319_v8 = vld [vmem:[%s5039_s28 + $0x1d8] sm:$0xff] }
 0x1ab   : > { %v4024_v61 = vpop.eup %4023  ;;  %4033 = vpow2.f32 %v2474_v2  ;;  %vm2492_vm0 = vcmp.eq.f32.partialorder %v6558_v40, 2.0  ;;  %vm2493_vm1 = vcmp.eq.f32.partialorder %v6561_v25, 2.0  ;;  %v6695_v5 = vadd.f32 %v4020_v26, %v4004_v29  ;;  %v4320_v14 = vld [vmem:[%s5039_s28 + $0x1e0] sm:$0xff]  ;;  %v4321_v2 = vld [vmem:[%s5039_s28 + $0x1e8] sm:$0xff] }
 0x1ac   : > { %v4026_v12 = vpop.eup %4025  ;;  %4035 = vpow2.f32 %v2476_v51  ;;  %vm2494_vm2 = vcmp.eq.f32.partialorder %v6564_v43, 2.0  ;;  %vm2495_vm3 = vcmp.eq.f32.partialorder %v6575_v59, 2.0  ;;  %v6699_v30 = vadd.f32 %v4022_v15, %v4006_v32  ;;  %v4316_v32 = vld [vmem:[%s5039_s28 + $0x1c8] sm:$0xff]  ;;  %v8767_v51 = vld [vmem:[#allocation31_spill] sm:$0xff] }
 0x1ad   : > { %4037 = vpow2.f32 %v2478_v31  ;;  %vm2496_vm4 = vcmp.eq.f32.partialorder %v6578_v7, 2.0  ;;  %vm2497_vm5 = vcmp.eq.f32.partialorder %v6581_v60, 2.0  ;;  %v6703_v17 = vadd.f32 %v4024_v61, %v4008_v20  ;;  %v4322_v31 = vld [vmem:[%s5039_s28 + $0x1f0] sm:$0xff] }
 0x1ae   : > { %4039 = vpow2.f32 %v2480_v49  ;;  %vm2498_vm6 = vcmp.eq.f32.partialorder %v6586_v19, 2.0  ;;  %vm2499_vm7 = vcmp.eq.f32.partialorder %v6591_v24, 2.0  ;;  %v6707_v3 = vadd.f32 %v4026_v12, %v4010_v50  ;;  %v8768_v49 = vld [vmem:[#allocation57_spill] sm:$0xff] }
 0x1af   : > { %4041 = vpow2.f32 %v2482_v0  ;;  %v2500_v29 = vsel %vm2492_vm0, %v4315_v54, 0.0  ;;  %v2501_v20 = vsel %vm2493_vm1, %v4316_v32, 0.0  ;;  %v2502_v9 = vsel %vm2494_vm2, %v4317_v18, 0.0  ;;  %v4323_v32 = vld [vmem:[%s5039_s28 + $0x1f8] sm:$0xff] }
 0x1b0   : > { %v2517_v50 = vsub.f32 %v6719_v23, %v6499_v16  ;;  %v2518_v35 = vsub.f32 %v8765_v44, %v6501_v48  ;;  %v2519_v52 = vsub.f32 %v8766_v38, %v6503_v6  ;;  %v2503_v28 = vsel %vm2495_vm3, %v4319_v8, 0.0  ;;  %v8769_v38 = vld [vmem:[#allocation34_spill] sm:$0xff] }
 0x1b1   : > { %v2504_v4 = vsel %vm2496_vm4, %v4320_v14, 0.0  ;;  %v2505_v37 = vsel %vm2497_vm5, %v4321_v2, 0.0  ;;  %v2520_v45 = vsub.f32 %v8767_v51, %v6505_v11  ;;  %v2506_v15 = vsel %vm2498_vm6, %v4322_v31, 0.0 }
 0x1b2   : > { %v4028_v26 = vpop.eup %4027  ;;  %v2521_v0 = vsub.f32 %v8768_v49, %v6507_v36  ;;  %v2524_v61 = vmul.f32 1.442695, %v2516_v41  ;;  %v2526_v12 = vmul.f32 1.442695, %v2517_v50  ;;  %v2507_v18 = vsel %vm2499_vm7, %v4323_v32, 0.0  ;;  %v8770_v41 = vld [vmem:[#allocation35_spill] sm:$0xff] }
 0x1b3   : > { %v4030_v54 = vpop.eup %4029  ;;  %v6747_v44 = vadd.f32 %v2500_v29, %v6659_v13  ;;  %v2522_v8 = vsub.f32 %v8769_v38, %v6509_v57  ;;  %v2528_v14 = vmul.f32 1.442695, %v2518_v35  ;;  %v6752_v51 = vadd.f32 %v2501_v20, %v6663_v46 }
 0x1b4   : > { %v4032_v2 = vpop.eup %4031  ;;  %v6755_v31 = vadd.f32 %v2502_v9, %v6665_v34  ;;  %v2523_v50 = vsub.f32 %v8770_v41, %v6511_v56  ;;  %v2530_v49 = vmul.f32 1.442695, %v2519_v52  ;;  %v6760_v32 = vadd.f32 %v2503_v28, %v6669_v21  ;;  %v4330_v41 = vld [vmem:[%s5039_s28 + $0x230] sm:$0xff] }
 0x1b5   : > { %v4034_v10 = vpop.eup %4033  ;;  %v6763_v13 = vadd.f32 %v2504_v4, %v6675_v55  ;;  %4043 = vpow2.f32 %v2524_v61  ;;  %v2532_v29 = vmul.f32 1.442695, %v2520_v45  ;;  %v6766_v46 = vadd.f32 %v2505_v37, %v6677_v63  ;;  %v8771_v61 = vld [vmem:[#allocation60_spill] sm:$0xff] }
 0x1b6   : > { %v4036_v35 = vpop.eup %4035  ;;  %v6769_v34 = vadd.f32 %v2506_v15, %v6679_v33  ;;  %4045 = vpow2.f32 %v2526_v12  ;;  %v2534_v20 = vmul.f32 1.442695, %v2521_v0  ;;  %v6772_v52 = vadd.f32 %v4028_v26, %v6685_v62  ;;  %v4326_v26 = vld [vmem:[%s5039_s28 + $0x218] sm:$0xff]  ;;  %v6811_v15 = vld [vmem:[%s5039_s28 + $0x240] sm:$0xff] }
 0x1b7   : > { %v4038_v9 = vpop.eup %4037  ;;  %v6775_v21 = vadd.f32 %v2507_v18, %v6681_v22  ;;  %4047 = vpow2.f32 %v2528_v14  ;;  %v2536_v55 = vmul.f32 1.442695, %v2522_v8  ;;  %v6778_v4 = vadd.f32 %v4030_v54, %v6687_v1  ;;  %v8772_v54 = vld [vmem:[#allocation44_spill] sm:$0xff]  ;;  %v4328_v8 = vld [vmem:[%s5039_s28 + $0x220] sm:$0xff]  ;;  %v4329_v14 = vld [vmem:[%s5039_s28 + $0x228] sm:$0xff] }
 0x1b8   : > { %v4040_v28 = vpop.eup %4039  ;;  %v6781_v63 = vadd.f32 %v4032_v2, %v6689_v27  ;;  %4049 = vpow2.f32 %v2530_v49  ;;  %v2538_v33 = vmul.f32 1.442695, %v2523_v50  ;;  %v6784_v45 = vadd.f32 %v4034_v10, %v6691_v39  ;;  %v4324_v27 = vld [vmem:[%s5039_s28 + $0x200] sm:$0xff] }
 0x1b9   : > { %v4042_v37 = vpop.eup %4041  ;;  %v6787_v62 = vadd.f32 %v4036_v35, %v6695_v5  ;;  %4051 = vpow2.f32 %v2532_v29  ;;  %vm2548_vm8 = vcmp.eq.f32.partialorder %v6558_v40, 3.0  ;;  %v6791_v22 = vadd.f32 %v4038_v9, %v6699_v30  ;;  %v4325_v30 = vld [vmem:[%s5039_s28 + $0x210] sm:$0xff]  ;;  %v8773_v49 = vld [vmem:[#allocation61_spill] sm:$0xff] }
 0x1ba   : > { %4053 = vpow2.f32 %v2534_v20  ;;  %vm2549_vm9 = vcmp.eq.f32.partialorder %v6561_v25, 3.0  ;;  %vm2550_vm10 = vcmp.eq.f32.partialorder %v6564_v43, 3.0  ;;  %v6796_v10 = vadd.f32 %v4040_v28, %v6703_v17  ;;  %v4331_v20 = vld [vmem:[%s5039_s28 + $0x238] sm:$0xff]  ;;  %v8774_v28 = vld [vmem:[#allocation47_spill] sm:$0xff] }
 0x1bb   : > { %4055 = vpow2.f32 %v2536_v55  ;;  %vm2551_vm11 = vcmp.eq.f32.partialorder %v6575_v59, 3.0  ;;  %vm2552_vm12 = vcmp.eq.f32.partialorder %v6578_v7, 3.0  ;;  %v6801_v1 = vadd.f32 %v4042_v37, %v6707_v3 }
 0x1bc   : > { %4057 = vpow2.f32 %v2538_v33  ;;  %vm2553_vm13 = vcmp.eq.f32.partialorder %v6581_v60, 3.0  ;;  %vm2554_vm14 = vcmp.eq.f32.partialorder %v6586_v19, 3.0  ;;  %vm2555_vm15 = vcmp.eq.f32.partialorder %v6591_v24, 3.0 }
 0x1bd   : > { %v2556_v39 = vsel %vm2548_vm8, %v4324_v27, 0.0  ;;  %v2557_v5 = vsel %vm2549_vm9, %v6719_v23, 0.0  ;;  %v2558_v17 = vsel %vm2550_vm10, %v4325_v30, 0.0  ;;  %v2559_v3 = vsel %vm2551_vm11, %v4326_v26, 0.0 }
 0x1be   : > { %v2572_v0 = vsub.f32 %v6811_v15, %v6497_v42  ;;  %v2573_v12 = vsub.f32 %v8771_v61, %v6499_v16  ;;  %v2574_v18 = vsub.f32 %v8772_v54, %v6501_v48  ;;  %v2560_v23 = vsel %vm2552_vm12, %v4328_v8, 0.0  ;;  %v8775_v61 = vld [vmem:[#allocation64_spill] sm:$0xff] }
 0x1bf   : > { %v4044_v38 = vpop.eup %4043  ;;  %v2561_v2 = vsel %vm2553_vm13, %v4329_v14, 0.0  ;;  %v2562_v50 = vsel %vm2554_vm14, %v4330_v41, 0.0  ;;  %v2575_v29 = vsub.f32 %v8773_v49, %v6503_v6  ;;  %v2563_v9 = vsel %vm2555_vm15, %v4331_v20, 0.0 }
 0x1c0   : > { %v4046_v35 = vpop.eup %4045  ;;  %v6834_v55 = vadd.f32 %v2556_v39, %v6747_v44  ;;  %v2576_v33 = vsub.f32 %v8774_v28, %v6505_v11  ;;  %v2580_v37 = vmul.f32 1.442695, %v2572_v0  ;;  %v6839_v30 = vadd.f32 %v2557_v5, %v6752_v51  ;;  %v8776_v39 = vld [vmem:[#allocation49_spill] sm:$0xff] }
 0x1c1   : > { %v4048_v27 = vpop.eup %4047  ;;  %v6842_v26 = vadd.f32 %v2558_v17, %v6755_v31  ;;  %v2577_v54 = vsub.f32 %v8775_v61, %v6507_v36  ;;  %v2582_v8 = vmul.f32 1.442695, %v2573_v12  ;;  %v6847_v41 = vadd.f32 %v2559_v3, %v6760_v32  ;;  %v8777_v17 = vld [vmem:[#allocation67_spill] sm:$0xff]  ;;  %v6916_v61 = vld [vmem:[%s5039_s28 + $0x298] sm:$0xff] }
 0x1c2   : > { %v4050_v14 = vpop.eup %4049  ;;  %v6850_v44 = vadd.f32 %v2560_v23, %v6763_v13  ;;  %v2578_v0 = vsub.f32 %v8776_v39, %v6509_v57  ;;  %v2584_v49 = vmul.f32 1.442695, %v2574_v18  ;;  %v6855_v5 = vadd.f32 %v2561_v2, %v6766_v46  ;;  %v4339_v39 = vld [vmem:[%s5039_s28 + $0x260] sm:$0xff] }
 0x1c3   : > { %v4052_v51 = vpop.eup %4051  ;;  %v6858_v31 = vadd.f32 %v2562_v50, %v6769_v34  ;;  %v2579_v12 = vsub.f32 %v8777_v17, %v6511_v56  ;;  %v2586_v20 = vmul.f32 1.442695, %v2575_v29  ;;  %v6863_v3 = vadd.f32 %v4044_v38, %v6772_v52  ;;  %v6930_v17 = vld [vmem:[%s5039_s28 + $0x2a0] sm:$0xff] }
 0x1c4   : > { %v4054_v32 = vpop.eup %4053  ;;  %v6866_v13 = vadd.f32 %v2563_v9, %v6775_v21  ;;  %4059 = vpow2.f32 %v2580_v37  ;;  %v2588_v18 = vmul.f32 1.442695, %v2576_v33  ;;  %v6869_v46 = vadd.f32 %v4046_v35, %v6778_v4  ;;  %v6901_v9 = vld [vmem:[%s5039_s28 + $0x280] sm:$0xff]  ;;  %v6906_v33 = vld [vmem:[%s5039_s28 + $0x288] sm:$0xff] }
 0x1c5   : > { %v4056_v23 = vpop.eup %4055  ;;  %v6872_v34 = vadd.f32 %v4048_v27, %v6781_v63  ;;  %4061 = vpow2.f32 %v2582_v8  ;;  %v2590_v2 = vmul.f32 1.442695, %v2577_v54  ;;  %v6875_v29 = vadd.f32 %v4050_v14, %v6784_v45  ;;  %v6911_v27 = vld [vmem:[%s5039_s28 + $0x290] sm:$0xff]  ;;  %v4338_v8 = vld [vmem:[%s5039_s28 + $0x258] sm:$0xff] }
 0x1c6   : > { %v4058_v50 = vpop.eup %4057  ;;  %v6878_v52 = vadd.f32 %v4052_v51, %v6787_v62  ;;  %4063 = vpow2.f32 %v2584_v49  ;;  %v2592_v21 = vmul.f32 1.442695, %v2578_v0  ;;  %v6881_v38 = vadd.f32 %v4054_v32, %v6791_v22  ;;  %v4332_v22 = vld [vmem:[%s5039_s28 + $0x248] sm:$0xff]  ;;  %v4342_v32 = vld [vmem:[%s5039_s28 + $0x270] sm:$0xff] }
 0x1c7   : > { %4065 = vpow2.f32 %v2586_v20  ;;  %v2594_v4 = vmul.f32 1.442695, %v2579_v12  ;;  %vm2604_vm0 = vcmp.eq.f32.partialorder %v6558_v40, 4.0  ;;  %v6885_v63 = vadd.f32 %v4056_v23, %v6796_v10  ;;  %v4340_v49 = vld [vmem:[%s5039_s28 + $0x268] sm:$0xff] }
 0x1c8   : > { %4067 = vpow2.f32 %v2588_v18  ;;  %vm2605_vm1 = vcmp.eq.f32.partialorder %v6561_v25, 4.0  ;;  %vm2606_vm2 = vcmp.eq.f32.partialorder %v6564_v43, 4.0  ;;  %v6890_v45 = vadd.f32 %v4058_v50, %v6801_v1  ;;  %v4333_v1 = vld [vmem:[%s5039_s28 + $0x250] sm:$0xff]  ;;  %v6938_v23 = vld [vmem:[%s5039_s28 + $0x2a8] sm:$0xff] }
 0x1c9   : > { %4069 = vpow2.f32 %v2590_v2  ;;  %vm2607_vm3 = vcmp.eq.f32.partialorder %v6575_v59, 4.0  ;;  %vm2608_vm4 = vcmp.eq.f32.partialorder %v6578_v7, 4.0  ;;  %vm2609_vm5 = vcmp.eq.f32.partialorder %v6581_v60, 4.0 }
 0x1ca   : > { %4071 = vpow2.f32 %v2592_v21  ;;  %vm2610_vm6 = vcmp.eq.f32.partialorder %v6586_v19, 4.0  ;;  %vm2611_vm7 = vcmp.eq.f32.partialorder %v6591_v24, 4.0  ;;  %v2612_v62 = vsel %vm2604_vm0, %v6811_v15, 0.0 }
 0x1cb   : > { %4073 = vpow2.f32 %v2594_v4  ;;  %v2613_v10 = vsel %vm2605_vm1, %v4332_v22, 0.0  ;;  %v2614_v35 = vsel %vm2606_vm2, %v4333_v1, 0.0  ;;  %v2628_v28 = vsub.f32 %v6901_v9, %v6497_v42  ;;  %v4344_v22 = vld [vmem:[%s5039_s28 + $0x278] sm:$0xff] }
 0x1cc   : > { %v2629_v37 = vsub.f32 %v6906_v33, %v6499_v16  ;;  %v2630_v15 = vsub.f32 %v6911_v27, %v6501_v48  ;;  %v2631_v54 = vsub.f32 %v6916_v61, %v6503_v6  ;;  %v2615_v14 = vsel %vm2607_vm3, %v4338_v8, 0.0 }
 0x1cd   : > { %v2616_v0 = vsel %vm2608_vm4, %v4339_v39, 0.0  ;;  %v2617_v51 = vsel %vm2609_vm5, %v4340_v49, 0.0  ;;  %v2632_v12 = vsub.f32 %v6930_v17, %v6505_v11  ;;  %v2618_v18 = vsel %vm2610_vm6, %v4342_v32, 0.0  ;;  %v4345_v39 = vld [vmem:[%s5039_s28 + $0x2b0] sm:$0xff] }
 0x1ce   : > { %v4060_v20 = vpop.eup %4059  ;;  %v2633_v2 = vsub.f32 %v6938_v23, %v6507_v36  ;;  %v2636_v50 = vmul.f32 1.442695, %v2628_v28  ;;  %v2638_v21 = vmul.f32 1.442695, %v2629_v37  ;;  %v2619_v1 = vsel %vm2611_vm7, %v4344_v22, 0.0  ;;  %v4346_v28 = vld [vmem:[%s5039_s28 + $0x2b8] sm:$0xff] }
 0x1cf   : > { %v4062_v4 = vpop.eup %4061  ;;  %v6946_v8 = vadd.f32 %v2612_v62, %v6834_v55  ;;  %v2634_v49 = vsub.f32 %v4345_v39, %v6509_v57  ;;  %v2640_v47 = vmul.f32 1.442695, %v2630_v15  ;;  %v6951_v53 = vadd.f32 %v2613_v10, %v6839_v30 }
 0x1d0   : > { %v4064_v32 = vpop.eup %4063  ;;  %v6954_v58 = vadd.f32 %v2614_v35, %v6842_v26  ;;  %v2635_v37 = vsub.f32 %v4346_v28, %v6511_v56  ;;  %v2642_v36 = vmul.f32 1.442695, %v2631_v54  ;;  %v6959_v22 = vadd.f32 %v2615_v14, %v6847_v41 }
 0x1d1   : > { %v4066_v11 = vpop.eup %4065  ;;  %v6962_v55 = vadd.f32 %v2616_v0, %v6850_v44  ;;  %4075 = vpow2.f32 %v2636_v50  ;;  %v2644_v62 = vmul.f32 1.442695, %v2632_v12  ;;  %v6965_v30 = vadd.f32 %v2617_v51, %v6855_v5 }
 0x1d2   : > { %v4068_v15 = vpop.eup %4067  ;;  %v6968_v26 = vadd.f32 %v2618_v18, %v6858_v31  ;;  %4077 = vpow2.f32 %v2638_v21  ;;  %v2646_v10 = vmul.f32 1.442695, %v2633_v2  ;;  %v6971_v54 = vadd.f32 %v4060_v20, %v6863_v3  ;;  %v7020_v20 = vld [vmem:[%s5039_s28 + $0x2d0] sm:$0xff]  ;;  %v7029_v2 = vld [vmem:[%s5039_s28 + $0x2d8] sm:$0xff] }
 0x1d3   : > { %v4070_v35 = vpop.eup %4069  ;;  %v6974_v41 = vadd.f32 %v2619_v1, %v6866_v13  ;;  %4079 = vpow2.f32 %v2640_v47  ;;  %v2648_v44 = vmul.f32 1.442695, %v2634_v49  ;;  %v6977_v0 = vadd.f32 %v4062_v4, %v6869_v46  ;;  %v7039_v49 = vld [vmem:[%s5039_s28 + $0x2e0] sm:$0xff] }
 0x1d4   : > { %v4072_v14 = vpop.eup %4071  ;;  %v6980_v5 = vadd.f32 %v4064_v32, %v6872_v34  ;;  %4081 = vpow2.f32 %v2642_v36  ;;  %v2650_v31 = vmul.f32 1.442695, %v2635_v37  ;;  %v6983_v12 = vadd.f32 %v4066_v11, %v6875_v29  ;;  %v8778_v32 = vld [vmem:[#allocation36_spill] sm:$0xff] }
 0x1d5   : > { %v4074_v51 = vpop.eup %4073  ;;  %v6986_v3 = vadd.f32 %v4068_v15, %v6878_v52  ;;  %4083 = vpow2.f32 %v2644_v62  ;;  %vm2660_vm8 = vcmp.eq.f32.partialorder %v6558_v40, 5.0  ;;  %v6990_v47 = vadd.f32 %v4070_v35, %v6881_v38  ;;  %v7010_v52 = vld [vmem:[%s5039_s28 + $0x2c0] sm:$0xff]  ;;  %v4352_v15 = vld [vmem:[%s5039_s28 + $0x2e8] sm:$0xff] }
 0x1d6   : > { %4085 = vpow2.f32 %v2646_v10  ;;  %vm2661_vm9 = vcmp.eq.f32.partialorder %v6561_v25, 5.0  ;;  %vm2662_vm10 = vcmp.eq.f32.partialorder %v6564_v43, 5.0  ;;  %v6995_v36 = vadd.f32 %v4072_v14, %v6885_v63  ;;  %v7015_v63 = vld [vmem:[%s5039_s28 + $0x2c8] sm:$0xff]  ;;  %v8779_v10 = vld [vmem:[#allocation56_spill] sm:$0xff] }
 0x1d7   : > { %4087 = vpow2.f32 %v2648_v44  ;;  %vm2663_vm11 = vcmp.eq.f32.partialorder %v6575_v59, 5.0  ;;  %vm2664_vm12 = vcmp.eq.f32.partialorder %v6578_v7, 5.0  ;;  %v7000_v11 = vadd.f32 %v4074_v51, %v6890_v45 }
 0x1d8   : > { %4089 = vpow2.f32 %v2650_v31  ;;  %vm2665_vm13 = vcmp.eq.f32.partialorder %v6581_v60, 5.0  ;;  %vm2666_vm14 = vcmp.eq.f32.partialorder %v6586_v19, 5.0  ;;  %vm2667_vm15 = vcmp.eq.f32.partialorder %v6591_v24, 5.0  ;;  %v4353_v31 = vld [vmem:[%s5039_s28 + $0x2f0] sm:$0xff] }
 0x1d9   : > { %v2668_v13 = vsel %vm2660_vm8, %v6901_v9, 0.0  ;;  %v2669_v46 = vsel %vm2661_vm9, %v6906_v33, 0.0  ;;  %v2670_v34 = vsel %vm2662_vm10, %v6911_v27, 0.0  ;;  %v2671_v29 = vsel %vm2663_vm11, %v6916_v61, 0.0 }
 0x1da   : > { %v2684_v38 = vsub.f32 %v7010_v52, %v6497_v42  ;;  %v2685_v45 = vsub.f32 %v7015_v63, %v6499_v16  ;;  %v2686_v9 = vsub.f32 %v7020_v20, %v6501_v48  ;;  %v2672_v27 = vsel %vm2664_vm12, %v6930_v17, 0.0 }
 0x1db   : > { %v4076_v33 = vpop.eup %4075  ;;  %v2673_v61 = vsel %vm2665_vm13, %v6938_v23, 0.0  ;;  %v2674_v18 = vsel %vm2666_vm14, %v4345_v39, 0.0  ;;  %v2687_v50 = vsub.f32 %v7029_v2, %v6503_v6  ;;  %v2675_v4 = vsel %vm2667_vm15, %v4346_v28, 0.0 }
 0x1dc   : > { %v4078_v21 = vpop.eup %4077  ;;  %v7036_v1 = vadd.f32 %v2668_v13, %v6946_v8  ;;  %v2688_v17 = vsub.f32 %v7039_v49, %v8778_v32  ;;  %v2692_v23 = vmul.f32 1.442695, %v2684_v38  ;;  %v7044_v37 = vadd.f32 %v2669_v46, %v6951_v53 }
 0x1dd   : > { %v4080_v39 = vpop.eup %4079  ;;  %v7047_v62 = vadd.f32 %v2670_v34, %v6954_v58  ;;  %v2689_v28 = vsub.f32 %v4352_v15, %v8779_v10  ;;  %v2694_v35 = vmul.f32 1.442695, %v2685_v45  ;;  %v7052_v44 = vadd.f32 %v2671_v29, %v6959_v22  ;;  %v4354_v34 = vld [vmem:[%s5039_s28 + $0x2f8] sm:$0xff] }
 0x1de   : > { %v4082_v8 = vpop.eup %4081  ;;  %v7055_v14 = vadd.f32 %v2672_v27, %v6962_v55  ;;  %v2690_v51 = vsub.f32 %v4353_v31, %v6509_v57  ;;  %v2696_v13 = vmul.f32 1.442695, %v2686_v9  ;;  %v7060_v46 = vadd.f32 %v2673_v61, %v6965_v30 }
 0x1df   : > { %v4084_v53 = vpop.eup %4083  ;;  %v7063_v58 = vadd.f32 %v2674_v18, %v6968_v26  ;;  %v2691_v38 = vsub.f32 %v4354_v34, %v6511_v56  ;;  %v2698_v45 = vmul.f32 1.442695, %v2687_v50  ;;  %v7068_v29 = vadd.f32 %v4076_v33, %v6971_v54 }
 0x1e0   : > { %v4086_v22 = vpop.eup %4085  ;;  %v7071_v55 = vadd.f32 %v2675_v4, %v6974_v41  ;;  %4091 = vpow2.f32 %v2692_v23  ;;  %v2700_v9 = vmul.f32 1.442695, %v2688_v17  ;;  %v7074_v30 = vadd.f32 %v4078_v21, %v6977_v0  ;;  %v7111_v4 = vld [vmem:[%s5039_s28 + $0x308] sm:$0xff]  ;;  %v7116_v23 = vld [vmem:[%s5039_s28 + $0x310] sm:$0xff] }
 0x1e1   : > { %v4088_v27 = vpop.eup %4087  ;;  %v7077_v26 = vadd.f32 %v4080_v39, %v6980_v5  ;;  %4093 = vpow2.f32 %v2694_v35  ;;  %v2702_v61 = vmul.f32 1.442695, %v2689_v28  ;;  %v7080_v50 = vadd.f32 %v4082_v8, %v6983_v12  ;;  %v7121_v39 = vld [vmem:[%s5039_s28 + $0x318] sm:$0xff]  ;;  %v7134_v8 = vld [vmem:[%s5039_s28 + $0x320] sm:$0xff] }
 0x1e2   : > { %v4090_v18 = vpop.eup %4089  ;;  %v7083_v54 = vadd.f32 %v4084_v53, %v6986_v3  ;;  %4095 = vpow2.f32 %v2696_v13  ;;  %v2704_v41 = vmul.f32 1.442695, %v2690_v51  ;;  %v7086_v33 = vadd.f32 %v4086_v22, %v6990_v47 }
 0x1e3   : > { %4097 = vpow2.f32 %v2698_v45  ;;  %v2706_v0 = vmul.f32 1.442695, %v2691_v38  ;;  %vm2716_vm0 = vcmp.eq.f32.partialorder %v6558_v40, 6.0  ;;  %v7090_v5 = vadd.f32 %v4088_v27, %v6995_v36  ;;  %v7141_v38 = vld [vmem:[%s5039_s28 + $0x328] sm:$0xff]  ;;  %v4361_v27 = vld [vmem:[%s5039_s28 + $0x330] sm:$0xff] }
 0x1e4   : > { %4099 = vpow2.f32 %v2700_v9  ;;  %vm2717_vm1 = vcmp.eq.f32.partialorder %v6561_v25, 6.0  ;;  %vm2718_vm2 = vcmp.eq.f32.partialorder %v6564_v43, 6.0  ;;  %v7095_v12 = vadd.f32 %v4090_v18, %v7000_v11  ;;  %v7106_v11 = vld [vmem:[%s5039_s28 + $0x300] sm:$0xff] }
 0x1e5   : > { %4101 = vpow2.f32 %v2702_v61  ;;  %vm2719_vm3 = vcmp.eq.f32.partialorder %v6575_v59, 6.0  ;;  %vm2720_vm4 = vcmp.eq.f32.partialorder %v6578_v7, 6.0  ;;  %vm2721_vm5 = vcmp.eq.f32.partialorder %v6581_v60, 6.0 }
 0x1e6   : > { %4103 = vpow2.f32 %v2704_v41  ;;  %vm2722_vm6 = vcmp.eq.f32.partialorder %v6586_v19, 6.0  ;;  %vm2723_vm7 = vcmp.eq.f32.partialorder %v6591_v24, 6.0  ;;  %v2724_v3 = vsel %vm2716_vm0, %v7010_v52, 0.0 }
 0x1e7   : > { %4105 = vpow2.f32 %v2706_v0  ;;  %v2725_v47 = vsel %vm2717_vm1, %v7015_v63, 0.0  ;;  %v2726_v36 = vsel %vm2718_vm2, %v7020_v20, 0.0  ;;  %v2740_v21 = vsub.f32 %v7106_v11, %v6497_v42 }
 0x1e8   : > { %v2741_v17 = vsub.f32 %v7111_v4, %v6499_v16  ;;  %v2742_v52 = vsub.f32 %v7116_v23, %v6501_v48  ;;  %v2743_v63 = vsub.f32 %v7121_v39, %v6503_v6  ;;  %v2727_v20 = vsel %vm2719_vm3, %v7029_v2, 0.0 }
 0x1e9   : > { %v2728_v28 = vsel %vm2720_vm4, %v7039_v49, 0.0  ;;  %v2729_v35 = vsel %vm2721_vm5, %v4352_v15, 0.0  ;;  %v2744_v51 = vsub.f32 %v7134_v8, %v8778_v32  ;;  %v2730_v53 = vsel %vm2722_vm6, %v4353_v31, 0.0 }
 0x1ea   : > { %v4092_v13 = vpop.eup %4091  ;;  %v2745_v2 = vsub.f32 %v7141_v38, %v8779_v10  ;;  %v2748_v45 = vmul.f32 1.442695, %v2740_v21  ;;  %v2750_v49 = vmul.f32 1.442695, %v2741_v17  ;;  %v2731_v15 = vsel %vm2723_vm7, %v4354_v34, 0.0  ;;  %v4362_v21 = vld [vmem:[%s5039_s28 + $0x338] sm:$0xff] }
 0x1eb   : > { %v4094_v22 = vpop.eup %4093  ;;  %v7148_v9 = vadd.f32 %v2724_v3, %v7036_v1  ;;  %v2746_v61 = vsub.f32 %v4361_v27, %v6509_v57  ;;  %v2752_v18 = vmul.f32 1.442695, %v2742_v52  ;;  %v7153_v31 = vadd.f32 %v2725_v47, %v7044_v37 }
 0x1ec   : > { %v4096_v41 = vpop.eup %4095  ;;  %v7156_v0 = vadd.f32 %v2726_v36, %v7047_v62  ;;  %v2747_v17 = vsub.f32 %v4362_v21, %v6511_v56  ;;  %v2754_v10 = vmul.f32 1.442695, %v2743_v63  ;;  %v7161_v34 = vadd.f32 %v2727_v20, %v7052_v44 }
 0x1ed   : > { %v4098_v32 = vpop.eup %4097  ;;  %v7164_v1 = vadd.f32 %v2728_v28, %v7055_v14  ;;  %4107 = vpow2.f32 %v2748_v45  ;;  %v2756_v3 = vmul.f32 1.442695, %v2744_v51  ;;  %v7167_v37 = vadd.f32 %v2729_v35, %v7060_v46 }
 0x1ee   : > { %v4100_v52 = vpop.eup %4099  ;;  %v7170_v62 = vadd.f32 %v2730_v53, %v7063_v58  ;;  %4109 = vpow2.f32 %v2750_v49  ;;  %v2758_v47 = vmul.f32 1.442695, %v2745_v2  ;;  %v7173_v63 = vadd.f32 %v4092_v13, %v7068_v29  ;;  %v7241_v2 = vld [vmem:[%s5039_s28 + $0x360] sm:$0xff] }
 0x1ef   : > { %v4102_v36 = vpop.eup %4101  ;;  %v7176_v44 = vadd.f32 %v2731_v15, %v7071_v55  ;;  %4111 = vpow2.f32 %v2752_v18  ;;  %v2760_v14 = vmul.f32 1.442695, %v2746_v61  ;;  %v7179_v28 = vadd.f32 %v4094_v22, %v7074_v30  ;;  %v7212_v30 = vld [vmem:[%s5039_s28 + $0x340] sm:$0xff]  ;;  %v7252_v15 = vld [vmem:[%s5039_s28 + $0x368] sm:$0xff] }
 0x1f0   : > { %v4104_v20 = vpop.eup %4103  ;;  %v7182_v46 = vadd.f32 %v4096_v41, %v7077_v26  ;;  %4113 = vpow2.f32 %v2754_v10  ;;  %v2762_v58 = vmul.f32 1.442695, %v2747_v17  ;;  %v7185_v51 = vadd.f32 %v4098_v32, %v7080_v50  ;;  %v7222_v50 = vld [vmem:[%s5039_s28 + $0x350] sm:$0xff] }
 0x1f1   : > { %v4106_v35 = vpop.eup %4105  ;;  %v7188_v29 = vadd.f32 %v4100_v52, %v7083_v54  ;;  %4115 = vpow2.f32 %v2756_v3  ;;  %vm2772_vm8 = vcmp.eq.f32.partialorder %v6558_v40, 7.0  ;;  %v7192_v55 = vadd.f32 %v4102_v36, %v7086_v33  ;;  %v7263_v17 = vld [vmem:[%s5039_s28 + $0x370] sm:$0xff]  ;;  %v7274_v36 = vld [vmem:[%s5039_s28 + $0x378] sm:$0xff] }
 0x1f2   : > { %4117 = vpow2.f32 %v2758_v47  ;;  %vm2773_vm9 = vcmp.eq.f32.partialorder %v6561_v25, 7.0  ;;  %vm2774_vm10 = vcmp.eq.f32.partialorder %v6564_v43, 7.0  ;;  %v7197_v10 = vadd.f32 %v4104_v20, %v7090_v5 }
 0x1f3   : > { %4119 = vpow2.f32 %v2760_v14  ;;  %vm2775_vm11 = vcmp.eq.f32.partialorder %v6575_v59, 7.0  ;;  %vm2776_vm12 = vcmp.eq.f32.partialorder %v6578_v7, 7.0  ;;  %v7202_v40 = vadd.f32 %v4106_v35, %v7095_v12  ;;  %v8780_v7 = vld [vmem:[#allocation36_spill] sm:$0xff] }
 0x1f4   : > { %4121 = vpow2.f32 %v2762_v58  ;;  %vm2777_vm13 = vcmp.eq.f32.partialorder %v6581_v60, 7.0  ;;  %vm2778_vm14 = vcmp.eq.f32.partialorder %v6586_v19, 7.0  ;;  %vm2779_vm15 = vcmp.eq.f32.partialorder %v6591_v24, 7.0  ;;  %v7217_v60 = vld [vmem:[%s5039_s28 + $0x348] sm:$0xff] }
 0x1f5   : > { %v2780_v25 = vsel %vm2772_vm8, %v7106_v11, 0.0  ;;  %v2781_v43 = vsel %vm2773_vm9, %v7111_v4, 0.0  ;;  %v2782_v32 = vsel %vm2774_vm10, %v7116_v23, 0.0  ;;  %v2783_v59 = vsel %vm2775_vm11, %v7121_v39, 0.0  ;;  %v7231_v4 = vld [vmem:[%s5039_s28 + $0x358] sm:$0xff] }
 0x1f6   : > { %v2796_v26 = vsub.f32 %v7212_v30, %v6497_v42  ;;  %v2797_v19 = vsub.f32 %v7217_v60, %v6499_v16  ;;  %v2798_v54 = vsub.f32 %v7222_v50, %v6501_v48  ;;  %v2784_v5 = vsel %vm2776_vm12, %v7134_v8, 0.0 }
 0x1f7   : > { %v4108_v33 = vpop.eup %4107  ;;  %v2785_v12 = vsel %vm2777_vm13, %v7141_v38, 0.0  ;;  %v2786_v11 = vsel %vm2778_vm14, %v4361_v27, 0.0  ;;  %v2799_v23 = vsub.f32 %v7231_v4, %v6503_v6  ;;  %v2787_v13 = vsel %vm2779_vm15, %v4362_v21, 0.0  ;;  %v8781_v27 = vld [vmem:[#allocation56_spill] sm:$0xff] }
 0x1f8   : > { %v4110_v39 = vpop.eup %4109  ;;  %v7238_v53 = vadd.f32 %v2780_v25, %v7148_v9  ;;  %v2800_v8 = vsub.f32 %v7241_v2, %v8780_v7  ;;  %v2804_v38 = vmul.f32 1.442695, %v2796_v26  ;;  %v7246_v49 = vadd.f32 %v2781_v43, %v7153_v31  ;;  %v7300_v26 = vld [vmem:[%s5022_s17 + $0x140] sm:$0xff] }
 0x1f9   : > { %v4112_v45 = vpop.eup %4111  ;;  %v7249_v22 = vadd.f32 %v2782_v32, %v7156_v0  ;;  %v2801_v9 = vsub.f32 %v7252_v15, %v8781_v27  ;;  %v2806_v61 = vmul.f32 1.442695, %v2797_v19  ;;  %v7257_v41 = vadd.f32 %v2783_v59, %v7161_v34  ;;  %v7311_v19 = vld [vmem:[%s5022_s17 + $0x150] sm:$0xff] }
 0x1fa   : > { %v4114_v18 = vpop.eup %4113  ;;  %v7260_v21 = vadd.f32 %v2784_v5, %v7164_v1  ;;  %v2802_v31 = vsub.f32 %v7263_v17, %v6509_v57  ;;  %v2808_v0 = vmul.f32 1.442695, %v2798_v54  ;;  %v7268_v52 = vadd.f32 %v2785_v12, %v7167_v37  ;;  %v7318_v54 = vld [vmem:[%s5022_s17 + $0x158] sm:$0xff] }
 0x1fb   : > { %v4116_v3 = vpop.eup %4115  ;;  %v7271_v47 = vadd.f32 %v2786_v11, %v7170_v62  ;;  %v2803_v34 = vsub.f32 %v7274_v36, %v6511_v56  ;;  %v2810_v1 = vmul.f32 1.442695, %v2799_v23  ;;  %v7279_v20 = vadd.f32 %v4108_v33, %v7173_v63  ;;  %v7326_v33 = vld [vmem:[%s5022_s17 + $0x168] sm:$0xff]  ;;  %v7344_v23 = vld [vmem:[%s5039_s28 + $0x380] sm:$0xff] }
 0x1fc   : > { %v4118_v14 = vpop.eup %4117  ;;  %v7282_v58 = vadd.f32 %v2787_v13, %v7176_v44  ;;  %4123 = vpow2.f32 %v2804_v38  ;;  %v2812_v37 = vmul.f32 1.442695, %v2800_v8  ;;  %v7285_v62 = vadd.f32 %v4110_v39, %v7179_v28  ;;  %v7349_v13 = vld [vmem:[%s5039_s28 + $0x388] sm:$0xff]  ;;  %v7359_v38 = vld [vmem:[%s5039_s28 + $0x398] sm:$0xff] }
 0x1fd   : > { %v4120_v35 = vpop.eup %4119  ;;  %v7288_v25 = vadd.f32 %v4112_v45, %v7182_v46  ;;  %4125 = vpow2.f32 %v2806_v61  ;;  %v2814_v43 = vmul.f32 1.442695, %v2801_v9  ;;  %v7291_v63 = vadd.f32 %v4114_v18, %v7185_v51  ;;  %v7373_v18 = vld [vmem:[%s5039_s28 + $0x3a0] sm:$0xff] }
 0x1fe   : > { %v4122_v32 = vpop.eup %4121  ;;  %v7294_v44 = vadd.f32 %v4116_v3, %v7188_v29  ;;  %4127 = vpow2.f32 %v2808_v0  ;;  %v2816_v59 = vmul.f32 1.442695, %v2802_v31  ;;  %v7297_v28 = vadd.f32 %v4118_v14, %v7192_v55  ;;  %v7307_v29 = vld [vmem:[%s5022_s17 + $0x148] sm:$0xff] }
 0x1ff   : > { %4129 = vpow2.f32 %v2810_v1  ;;  %v2818_v46 = vmul.f32 1.442695, %v2803_v34  ;;  %vm2828_vm0 = vcmp.eq.f32.partialorder %v7300_v26, 8.0  ;;  %v7304_v51 = vadd.f32 %v4120_v35, %v7197_v10  ;;  %v7322_v10 = vld [vmem:[%s5022_s17 + $0x160] sm:$0xff]  ;;  %v4384_v35 = vld [vmem:[%s5039_s28 + $0x3b0] sm:$0xff] }
 0x200   : > { %4131 = vpow2.f32 %v2812_v37  ;;  %vm2829_vm1 = vcmp.eq.f32.partialorder %v7307_v29, 8.0  ;;  %vm2830_vm2 = vcmp.eq.f32.partialorder %v7311_v19, 8.0  ;;  %v7315_v55 = vadd.f32 %v4122_v32, %v7202_v40  ;;  %v7330_v40 = vld [vmem:[%s5022_s17 + $0x170] sm:$0xff] }
 0x201   : > { %4133 = vpow2.f32 %v2814_v43  ;;  %vm2831_vm3 = vcmp.eq.f32.partialorder %v7318_v54, 8.0  ;;  %vm2832_vm4 = vcmp.eq.f32.partialorder %v7322_v10, 8.0  ;;  %vm2833_vm5 = vcmp.eq.f32.partialorder %v7326_v33, 8.0 }
 0x202   : > { %4135 = vpow2.f32 %v2816_v59  ;;  %vm2834_vm6 = vcmp.eq.f32.partialorder %v7330_v40, 8.0  ;;  %vm2835_vm7 = vcmp.eq.f32.partialorder %v6591_v24, 8.0  ;;  %v2836_v5 = vsel %vm2828_vm0, %v7212_v30, 0.0  ;;  %v7354_v30 = vld [vmem:[%s5039_s28 + $0x390] sm:$0xff] }
 0x203   : > { %4137 = vpow2.f32 %v2818_v46  ;;  %v2837_v12 = vsel %vm2829_vm1, %v7217_v60, 0.0  ;;  %v2838_v11 = vsel %vm2830_vm2, %v7222_v50, 0.0  ;;  %v2852_v39 = vsub.f32 %v7344_v23, %v6497_v42 }
 0x204   : > { %v2853_v8 = vsub.f32 %v7349_v13, %v6499_v16  ;;  %v2854_v60 = vsub.f32 %v7354_v30, %v6501_v48  ;;  %v2855_v50 = vsub.f32 %v7359_v38, %v6503_v6  ;;  %v2839_v45 = vsel %vm2831_vm3, %v7231_v4, 0.0  ;;  %v7381_v4 = vld [vmem:[%s5039_s28 + $0x3a8] sm:$0xff] }
 0x205   : > { %v2840_v9 = vsel %vm2832_vm4, %v7241_v2, 0.0  ;;  %v2841_v61 = vsel %vm2833_vm5, %v7252_v15, 0.0  ;;  %v2856_v31 = vsub.f32 %v7373_v18, %v8780_v7  ;;  %v2842_v3 = vsel %vm2834_vm6, %v7263_v17, 0.0 }
 0x206   : > { %v4124_v0 = vpop.eup %4123  ;;  %v2857_v2 = vsub.f32 %v7381_v4, %v8781_v27  ;;  %v2860_v34 = vmul.f32 1.442695, %v2852_v39  ;;  %v2862_v1 = vmul.f32 1.442695, %v2853_v8  ;;  %v2843_v15 = vsel %vm2835_vm7, %v7274_v36, 0.0  ;;  %v4385_v39 = vld [vmem:[%s5039_s28 + $0x3b8] sm:$0xff] }
 0x207   : > { %v4126_v14 = vpop.eup %4125  ;;  %v7389_v37 = vadd.f32 %v2836_v5, %v7238_v53  ;;  %v2858_v43 = vsub.f32 %v4384_v35, %v6509_v57  ;;  %v2864_v32 = vmul.f32 1.442695, %v2854_v60  ;;  %v7394_v59 = vadd.f32 %v2837_v12, %v7246_v49 }
 0x208   : > { %v4128_v17 = vpop.eup %4127  ;;  %v7397_v46 = vadd.f32 %v2838_v11, %v7249_v22  ;;  %v2859_v8 = vsub.f32 %v4385_v39, %v6511_v56  ;;  %v2866_v27 = vmul.f32 1.442695, %v2855_v50  ;;  %v7402_v36 = vadd.f32 %v2839_v45, %v7257_v41 }
 0x209   : > { %v4130_v24 = vpop.eup %4129  ;;  %v7405_v53 = vadd.f32 %v2840_v9, %v7260_v21  ;;  %4139 = vpow2.f32 %v2860_v34  ;;  %v2868_v5 = vmul.f32 1.442695, %v2856_v31  ;;  %v7408_v49 = vadd.f32 %v2841_v61, %v7268_v52  ;;  %v7466_v34 = vld [vmem:[%s5039_s28 + $0x3d0] sm:$0xff] }
 0x20a   : > { %v4132_v60 = vpop.eup %4131  ;;  %v7411_v22 = vadd.f32 %v2842_v3, %v7271_v47  ;;  %4141 = vpow2.f32 %v2862_v1  ;;  %v2870_v12 = vmul.f32 1.442695, %v2857_v2  ;;  %v7414_v50 = vadd.f32 %v4124_v0, %v7279_v20  ;;  %v7461_v3 = vld [vmem:[%s5039_s28 + $0x3c8] sm:$0xff] }
 0x20b   : > { %v4134_v11 = vpop.eup %4133  ;;  %v7417_v41 = vadd.f32 %v2843_v15, %v7282_v58  ;;  %4143 = vpow2.f32 %v2864_v32  ;;  %v2872_v21 = vmul.f32 1.442695, %v2858_v43  ;;  %v7420_v9 = vadd.f32 %v4126_v14, %v7285_v62  ;;  %v7479_v14 = vld [vmem:[%s5039_s28 + $0x3d8] sm:$0xff] }
 0x20c   : > { %v4136_v45 = vpop.eup %4135  ;;  %v7423_v52 = vadd.f32 %v4128_v17, %v7288_v25  ;;  %4145 = vpow2.f32 %v2866_v27  ;;  %v2874_v47 = vmul.f32 1.442695, %v2859_v8  ;;  %v7426_v31 = vadd.f32 %v4130_v24, %v7291_v63  ;;  %v7448_v25 = vld [vmem:[%s5022_s17 + $0x178] sm:$0xff] }
 0x20d   : > { %v4138_v61 = vpop.eup %4137  ;;  %v7429_v20 = vadd.f32 %v4132_v60, %v7294_v44  ;;  %4147 = vpow2.f32 %v2868_v5  ;;  %vm2884_vm8 = vcmp.eq.f32.partialorder %v7300_v26, 9.0  ;;  %v7433_v58 = vadd.f32 %v4134_v11, %v7297_v28  ;;  %v4392_v60 = vld [vmem:[%s5039_s28 + $0x3e8] sm:$0xff] }
 0x20e   : > { %4149 = vpow2.f32 %v2870_v12  ;;  %vm2885_vm9 = vcmp.eq.f32.partialorder %v7307_v29, 9.0  ;;  %vm2886_vm10 = vcmp.eq.f32.partialorder %v7311_v19, 9.0  ;;  %v7438_v27 = vadd.f32 %v4136_v45, %v7304_v51  ;;  %v8782_v12 = vld [vmem:[#allocation56_spill] sm:$0xff] }
 0x20f   : > { %4151 = vpow2.f32 %v2872_v21  ;;  %vm2887_vm11 = vcmp.eq.f32.partialorder %v7318_v54, 9.0  ;;  %vm2888_vm12 = vcmp.eq.f32.partialorder %v7322_v10, 9.0  ;;  %v7443_v62 = vadd.f32 %v4138_v61, %v7315_v55  ;;  %v7456_v55 = vld [vmem:[%s5039_s28 + $0x3c0] sm:$0xff] }
 0x210   : > { %4153 = vpow2.f32 %v2874_v47  ;;  %vm2889_vm13 = vcmp.eq.f32.partialorder %v7326_v33, 9.0  ;;  %vm2890_vm14 = vcmp.eq.f32.partialorder %v7330_v40, 9.0  ;;  %vm2891_vm15 = vcmp.eq.f32.partialorder %v7448_v25, 9.0  ;;  %v4393_v47 = vld [vmem:[%s5039_s28 + $0x3f0] sm:$0xff] }
 0x211   : > { %v2892_v63 = vsel %vm2884_vm8, %v7344_v23, 0.0  ;;  %v2893_v44 = vsel %vm2885_vm9, %v7349_v13, 0.0  ;;  %v2894_v28 = vsel %vm2886_vm10, %v7354_v30, 0.0  ;;  %v2895_v51 = vsel %vm2887_vm11, %v7359_v38, 0.0 }
 0x212   : > { %v2908_v0 = vsub.f32 %v7456_v55, %v6497_v42  ;;  %v2909_v2 = vsub.f32 %v7461_v3, %v6499_v16  ;;  %v2910_v23 = vsub.f32 %v7466_v34, %v6501_v48  ;;  %v2896_v30 = vsel %vm2888_vm12, %v7373_v18, 0.0  ;;  %v7489_v18 = vld [vmem:[%s5039_s28 + $0x3e0] sm:$0xff] }
 0x213   : > { %v4140_v13 = vpop.eup %4139  ;;  %v2897_v38 = vsel %vm2889_vm13, %v7381_v4, 0.0  ;;  %v2898_v1 = vsel %vm2890_vm14, %v4384_v35, 0.0  ;;  %v2911_v15 = vsub.f32 %v7479_v14, %v6503_v6  ;;  %v2899_v32 = vsel %vm2891_vm15, %v4385_v39, 0.0 }
 0x214   : > { %v4142_v43 = vpop.eup %4141  ;;  %v7486_v17 = vadd.f32 %v2892_v63, %v7389_v37  ;;  %v2912_v4 = vsub.f32 %v7489_v18, %v8780_v7  ;;  %v2916_v8 = vmul.f32 1.442695, %v2908_v0  ;;  %v7494_v24 = vadd.f32 %v2893_v44, %v7394_v59 }
 0x215   : > { %v4144_v35 = vpop.eup %4143  ;;  %v7497_v5 = vadd.f32 %v2894_v28, %v7397_v46  ;;  %v2913_v39 = vsub.f32 %v4392_v60, %v8782_v12  ;;  %v2918_v11 = vmul.f32 1.442695, %v2909_v2  ;;  %v7502_v21 = vadd.f32 %v2895_v51, %v7402_v36  ;;  %v4394_v28 = vld [vmem:[%s5039_s28 + $0x3f8] sm:$0xff] }
 0x216   : > { %v4146_v37 = vpop.eup %4145  ;;  %v7505_v45 = vadd.f32 %v2896_v30, %v7405_v53  ;;  %v2914_v61 = vsub.f32 %v4393_v47, %v6509_v57  ;;  %v2920_v63 = vmul.f32 1.442695, %v2910_v23  ;;  %v7510_v44 = vadd.f32 %v2897_v38, %v7408_v49 }
 0x217   : > { %v4148_v59 = vpop.eup %4147  ;;  %v7513_v46 = vadd.f32 %v2898_v1, %v7411_v22  ;;  %v2915_v0 = vsub.f32 %v4394_v28, %v6511_v56  ;;  %v2922_v2 = vmul.f32 1.442695, %v2911_v15  ;;  %v7518_v51 = vadd.f32 %v4140_v13, %v7414_v50 }
 0x218   : > { %v4150_v36 = vpop.eup %4149  ;;  %v7521_v53 = vadd.f32 %v2899_v32, %v7417_v41  ;;  %4155 = vpow2.f32 %v2916_v8  ;;  %v2924_v23 = vmul.f32 1.442695, %v2912_v4  ;;  %v7524_v49 = vadd.f32 %v4142_v43, %v7420_v9  ;;  %v7561_v32 = vld [vmem:[%s5039_s28 + $0x408] sm:$0xff]  ;;  %v7566_v8 = vld [vmem:[%s5039_s28 + $0x410] sm:$0xff] }
 0x219   : > { %v4152_v30 = vpop.eup %4151  ;;  %v7527_v22 = vadd.f32 %v4144_v35, %v7423_v52  ;;  %4157 = vpow2.f32 %v2918_v11  ;;  %v2926_v38 = vmul.f32 1.442695, %v2913_v39  ;;  %v7530_v15 = vadd.f32 %v4146_v37, %v7426_v31  ;;  %v7571_v35 = vld [vmem:[%s5039_s28 + $0x418] sm:$0xff]  ;;  %v7584_v37 = vld [vmem:[%s5039_s28 + $0x420] sm:$0xff] }
 0x21a   : > { %v4154_v1 = vpop.eup %4153  ;;  %v7533_v50 = vadd.f32 %v4148_v59, %v7429_v20  ;;  %4159 = vpow2.f32 %v2920_v63  ;;  %v2928_v41 = vmul.f32 1.442695, %v2914_v61  ;;  %v7536_v13 = vadd.f32 %v4150_v36, %v7433_v58 }
 0x21b   : > { %4161 = vpow2.f32 %v2922_v2  ;;  %v2930_v9 = vmul.f32 1.442695, %v2915_v0  ;;  %vm2940_vm0 = vcmp.eq.f32.partialorder %v7300_v26, 10.0  ;;  %v7540_v52 = vadd.f32 %v4152_v30, %v7438_v27  ;;  %v7591_v0 = vld [vmem:[%s5039_s28 + $0x428] sm:$0xff]  ;;  %v4401_v30 = vld [vmem:[%s5039_s28 + $0x430] sm:$0xff] }
 0x21c   : > { %4163 = vpow2.f32 %v2924_v23  ;;  %vm2941_vm1 = vcmp.eq.f32.partialorder %v7307_v29, 10.0  ;;  %vm2942_vm2 = vcmp.eq.f32.partialorder %v7311_v19, 10.0  ;;  %v7545_v31 = vadd.f32 %v4154_v1, %v7443_v62  ;;  %v7556_v62 = vld [vmem:[%s5039_s28 + $0x400] sm:$0xff] }
 0x21d   : > { %4165 = vpow2.f32 %v2926_v38  ;;  %vm2943_vm3 = vcmp.eq.f32.partialorder %v7318_v54, 10.0  ;;  %vm2944_vm4 = vcmp.eq.f32.partialorder %v7322_v10, 10.0  ;;  %vm2945_vm5 = vcmp.eq.f32.partialorder %v7326_v33, 10.0 }
 0x21e   : > { %4167 = vpow2.f32 %v2928_v41  ;;  %vm2946_vm6 = vcmp.eq.f32.partialorder %v7330_v40, 10.0  ;;  %vm2947_vm7 = vcmp.eq.f32.partialorder %v7448_v25, 10.0  ;;  %v2948_v20 = vsel %vm2940_vm0, %v7456_v55, 0.0 }
 0x21f   : > { %4169 = vpow2.f32 %v2930_v9  ;;  %v2949_v58 = vsel %vm2941_vm1, %v7461_v3, 0.0  ;;  %v2950_v27 = vsel %vm2942_vm2, %v7466_v34, 0.0  ;;  %v2964_v43 = vsub.f32 %v7556_v62, %v6497_v42 }
 0x220   : > { %v2965_v4 = vsub.f32 %v7561_v32, %v6499_v16  ;;  %v2966_v55 = vsub.f32 %v7566_v8, %v6501_v48  ;;  %v2967_v3 = vsub.f32 %v7571_v35, %v6503_v6  ;;  %v2951_v34 = vsel %vm2943_vm3, %v7479_v14, 0.0 }
 0x221   : > { %v2952_v39 = vsel %vm2944_vm4, %v7489_v18, 0.0  ;;  %v2953_v11 = vsel %vm2945_vm5, %v4392_v60, 0.0  ;;  %v2968_v61 = vsub.f32 %v7584_v37, %v8780_v7  ;;  %v2954_v59 = vsel %vm2946_vm6, %v4393_v47, 0.0 }
 0x222   : > { %v4156_v63 = vpop.eup %4155  ;;  %v2969_v14 = vsub.f32 %v7591_v0, %v8782_v12  ;;  %v2972_v2 = vmul.f32 1.442695, %v2964_v43  ;;  %v2974_v18 = vmul.f32 1.442695, %v2965_v4  ;;  %v2955_v60 = vsel %vm2947_vm7, %v4394_v28, 0.0  ;;  %v4402_v43 = vld [vmem:[%s5039_s28 + $0x438] sm:$0xff] }
 0x223   : > { %v4158_v36 = vpop.eup %4157  ;;  %v7598_v23 = vadd.f32 %v2948_v20, %v7486_v17  ;;  %v2970_v38 = vsub.f32 %v4401_v30, %v6509_v57  ;;  %v2976_v1 = vmul.f32 1.442695, %v2966_v55  ;;  %v7603_v47 = vadd.f32 %v2949_v58, %v7494_v24 }
 0x224   : > { %v4160_v41 = vpop.eup %4159  ;;  %v7606_v9 = vadd.f32 %v2950_v27, %v7497_v5  ;;  %v2971_v4 = vsub.f32 %v4402_v43, %v6511_v56  ;;  %v2978_v12 = vmul.f32 1.442695, %v2967_v3  ;;  %v7611_v28 = vadd.f32 %v2951_v34, %v7502_v21 }
 0x225   : > { %v4162_v7 = vpop.eup %4161  ;;  %v7614_v17 = vadd.f32 %v2952_v39, %v7505_v45  ;;  %4171 = vpow2.f32 %v2972_v2  ;;  %v2980_v20 = vmul.f32 1.442695, %v2968_v61  ;;  %v7617_v24 = vadd.f32 %v2953_v11, %v7510_v44  ;;  %v7681_v2 = vld [vmem:[%s5039_s28 + $0x458] sm:$0xff] }
 0x226   : > { %v4164_v55 = vpop.eup %4163  ;;  %v7620_v5 = vadd.f32 %v2954_v59, %v7513_v46  ;;  %4173 = vpow2.f32 %v2974_v18  ;;  %v2982_v58 = vmul.f32 1.442695, %v2969_v14  ;;  %v7623_v3 = vadd.f32 %v4156_v63, %v7518_v51  ;;  %v7672_v59 = vld [vmem:[%s5039_s28 + $0x450] sm:$0xff] }
 0x227   : > { %v4166_v27 = vpop.eup %4165  ;;  %v7626_v21 = vadd.f32 %v2955_v60, %v7521_v53  ;;  %4175 = vpow2.f32 %v2976_v1  ;;  %v2984_v45 = vmul.f32 1.442695, %v2970_v38  ;;  %v7629_v39 = vadd.f32 %v4158_v36, %v7524_v49  ;;  %v7691_v1 = vld [vmem:[%s5039_s28 + $0x460] sm:$0xff] }
 0x228   : > { %v4168_v34 = vpop.eup %4167  ;;  %v7632_v44 = vadd.f32 %v4160_v41, %v7527_v22  ;;  %4177 = vpow2.f32 %v2978_v12  ;;  %v2986_v46 = vmul.f32 1.442695, %v2971_v4  ;;  %v7635_v61 = vadd.f32 %v4162_v7, %v7530_v15  ;;  %v8783_v41 = vld [vmem:[#allocation36_spill] sm:$0xff] }
 0x229   : > { %v4170_v11 = vpop.eup %4169  ;;  %v7638_v51 = vadd.f32 %v4164_v55, %v7533_v50  ;;  %4179 = vpow2.f32 %v2980_v20  ;;  %vm2996_vm8 = vcmp.eq.f32.partialorder %v7300_v26, 11.0  ;;  %v7642_v53 = vadd.f32 %v4166_v27, %v7536_v13  ;;  %v7662_v13 = vld [vmem:[%s5039_s28 + $0x440] sm:$0xff]  ;;  %v4408_v55 = vld [vmem:[%s5039_s28 + $0x468] sm:$0xff] }
 0x22a   : > { %4181 = vpow2.f32 %v2982_v58  ;;  %vm2997_vm9 = vcmp.eq.f32.partialorder %v7307_v29, 11.0  ;;  %vm2998_vm10 = vcmp.eq.f32.partialorder %v7311_v19, 11.0  ;;  %v7647_v12 = vadd.f32 %v4168_v34, %v7540_v52  ;;  %v8784_v58 = vld [vmem:[#allocation56_spill] sm:$0xff] }
 0x22b   : > { %4183 = vpow2.f32 %v2984_v45  ;;  %vm2999_vm11 = vcmp.eq.f32.partialorder %v7318_v54, 11.0  ;;  %vm3000_vm12 = vcmp.eq.f32.partialorder %v7322_v10, 11.0  ;;  %v7652_v7 = vadd.f32 %v4170_v11, %v7545_v31  ;;  %v7667_v31 = vld [vmem:[%s5039_s28 + $0x448] sm:$0xff] }
 0x22c   : > { %4185 = vpow2.f32 %v2986_v46  ;;  %vm3001_vm13 = vcmp.eq.f32.partialorder %v7326_v33, 11.0  ;;  %vm3002_vm14 = vcmp.eq.f32.partialorder %v7330_v40, 11.0  ;;  %vm3003_vm15 = vcmp.eq.f32.partialorder %v7448_v25, 11.0  ;;  %v4409_v46 = vld [vmem:[%s5039_s28 + $0x470] sm:$0xff] }
 0x22d   : > { %v3004_v49 = vsel %vm2996_vm8, %v7556_v62, 0.0  ;;  %v3005_v22 = vsel %vm2997_vm9, %v7561_v32, 0.0  ;;  %v3006_v15 = vsel %vm2998_vm10, %v7566_v8, 0.0  ;;  %v3007_v50 = vsel %vm2999_vm11, %v7571_v35, 0.0 }
 0x22e   : > { %v3020_v52 = vsub.f32 %v7662_v13, %v6497_v42  ;;  %v3021_v63 = vsub.f32 %v7667_v31, %v6499_v16  ;;  %v3022_v62 = vsub.f32 %v7672_v59, %v6501_v48  ;;  %v3008_v8 = vsel %vm3000_vm12, %v7584_v37, 0.0 }
 0x22f   : > { %v4172_v32 = vpop.eup %4171  ;;  %v3009_v35 = vsel %vm3001_vm13, %v7591_v0, 0.0  ;;  %v3010_v14 = vsel %vm3002_vm14, %v4401_v30, 0.0  ;;  %v3023_v18 = vsub.f32 %v7681_v2, %v6503_v6  ;;  %v3011_v60 = vsel %vm3003_vm15, %v4402_v43, 0.0 }
 0x230   : > { %v4174_v36 = vpop.eup %4173  ;;  %v7688_v38 = vadd.f32 %v3004_v49, %v7598_v23  ;;  %v3024_v37 = vsub.f32 %v7691_v1, %v8783_v41  ;;  %v3028_v0 = vmul.f32 1.442695, %v3020_v52  ;;  %v7696_v4 = vadd.f32 %v3005_v22, %v7603_v47 }
 0x231   : > { %v4176_v30 = vpop.eup %4175  ;;  %v7699_v20 = vadd.f32 %v3006_v15, %v7606_v9  ;;  %v3025_v43 = vsub.f32 %v4408_v55, %v8784_v58  ;;  %v3030_v27 = vmul.f32 1.442695, %v3021_v63  ;;  %v7704_v45 = vadd.f32 %v3007_v50, %v7611_v28  ;;  %v4410_v15 = vld [vmem:[%s5039_s28 + $0x478] sm:$0xff] }
 0x232   : > { %v4178_v23 = vpop.eup %4177  ;;  %v7707_v34 = vadd.f32 %v3008_v8, %v7614_v17  ;;  %v3026_v11 = vsub.f32 %v4409_v46, %v6509_v57  ;;  %v3032_v49 = vmul.f32 1.442695, %v3022_v62  ;;  %v7712_v22 = vadd.f32 %v3009_v35, %v7617_v24 }
 0x233   : > { %v4180_v47 = vpop.eup %4179  ;;  %v7715_v9 = vadd.f32 %v3010_v14, %v7620_v5  ;;  %v3027_v52 = vsub.f32 %v4410_v15, %v6511_v56  ;;  %v3034_v63 = vmul.f32 1.442695, %v3023_v18  ;;  %v7720_v50 = vadd.f32 %v4172_v32, %v7623_v3 }
 0x234   : > { %v4182_v28 = vpop.eup %4181  ;;  %v7723_v17 = vadd.f32 %v3011_v60, %v7626_v21  ;;  %4187 = vpow2.f32 %v3028_v0  ;;  %v3036_v62 = vmul.f32 1.442695, %v3024_v37  ;;  %v7726_v24 = vadd.f32 %v4174_v36, %v7629_v39  ;;  %v7763_v60 = vld [vmem:[%s5039_s28 + $0x488] sm:$0xff]  ;;  %v7768_v0 = vld [vmem:[%s5039_s28 + $0x490] sm:$0xff] }
 0x235   : > { %v4184_v8 = vpop.eup %4183  ;;  %v7729_v5 = vadd.f32 %v4176_v30, %v7632_v44  ;;  %4189 = vpow2.f32 %v3030_v27  ;;  %v3038_v35 = vmul.f32 1.442695, %v3025_v43  ;;  %v7732_v18 = vadd.f32 %v4178_v23, %v7635_v61  ;;  %v7773_v30 = vld [vmem:[%s5039_s28 + $0x498] sm:$0xff]  ;;  %v7786_v23 = vld [vmem:[%s5039_s28 + $0x4a0] sm:$0xff] }
 0x236   : > { %v4186_v14 = vpop.eup %4185  ;;  %v7735_v3 = vadd.f32 %v4180_v47, %v7638_v51  ;;  %4191 = vpow2.f32 %v3032_v49  ;;  %v3040_v21 = vmul.f32 1.442695, %v3026_v11  ;;  %v7738_v32 = vadd.f32 %v4182_v28, %v7642_v53 }
 0x237   : > { %4193 = vpow2.f32 %v3034_v63  ;;  %v3042_v39 = vmul.f32 1.442695, %v3027_v52  ;;  %vm3052_vm0 = vcmp.eq.f32.partialorder %v7300_v26, 12.0  ;;  %v7742_v44 = vadd.f32 %v4184_v8, %v7647_v12  ;;  %v7793_v52 = vld [vmem:[%s5039_s28 + $0x4a8] sm:$0xff]  ;;  %v4417_v8 = vld [vmem:[%s5039_s28 + $0x4b0] sm:$0xff] }
 0x238   : > { %4195 = vpow2.f32 %v3036_v62  ;;  %vm3053_vm1 = vcmp.eq.f32.partialorder %v7307_v29, 12.0  ;;  %vm3054_vm2 = vcmp.eq.f32.partialorder %v7311_v19, 12.0  ;;  %v7747_v61 = vadd.f32 %v4186_v14, %v7652_v7  ;;  %v7758_v7 = vld [vmem:[%s5039_s28 + $0x480] sm:$0xff] }
 0x239   : > { %4197 = vpow2.f32 %v3038_v35  ;;  %vm3055_vm3 = vcmp.eq.f32.partialorder %v7318_v54, 12.0  ;;  %vm3056_vm4 = vcmp.eq.f32.partialorder %v7322_v10, 12.0  ;;  %vm3057_vm5 = vcmp.eq.f32.partialorder %v7326_v33, 12.0 }
 0x23a   : > { %4199 = vpow2.f32 %v3040_v21  ;;  %vm3058_vm6 = vcmp.eq.f32.partialorder %v7330_v40, 12.0  ;;  %vm3059_vm7 = vcmp.eq.f32.partialorder %v7448_v25, 12.0  ;;  %v3060_v51 = vsel %vm3052_vm0, %v7662_v13, 0.0 }
 0x23b   : > { %4201 = vpow2.f32 %v3042_v39  ;;  %v3061_v53 = vsel %vm3053_vm1, %v7667_v31, 0.0  ;;  %v3062_v12 = vsel %vm3054_vm2, %v7672_v59, 0.0  ;;  %v3076_v36 = vsub.f32 %v7758_v7, %v6497_v42 }
 0x23c   : > { %v3077_v37 = vsub.f32 %v7763_v60, %v6499_v16  ;;  %v3078_v13 = vsub.f32 %v7768_v0, %v6501_v48  ;;  %v3079_v31 = vsub.f32 %v7773_v30, %v6503_v6  ;;  %v3063_v59 = vsel %vm3055_vm3, %v7681_v2, 0.0 }
 0x23d   : > { %v3064_v43 = vsel %vm3056_vm4, %v7691_v1, 0.0  ;;  %v3065_v27 = vsel %vm3057_vm5, %v4408_v55, 0.0  ;;  %v3080_v11 = vsub.f32 %v7786_v23, %v8783_v41  ;;  %v3066_v47 = vsel %vm3058_vm6, %v4409_v46, 0.0 }
 0x23e   : > { %v4188_v49 = vpop.eup %4187  ;;  %v3081_v2 = vsub.f32 %v7793_v52, %v8784_v58  ;;  %v3084_v63 = vmul.f32 1.442695, %v3076_v36  ;;  %v3086_v1 = vmul.f32 1.442695, %v3077_v37  ;;  %v3067_v55 = vsel %vm3059_vm7, %v4410_v15, 0.0  ;;  %v4418_v36 = vld [vmem:[%s5039_s28 + $0x4b8] sm:$0xff] }
 0x23f   : > { %v4190_v28 = vpop.eup %4189  ;;  %v7800_v62 = vadd.f32 %v3060_v51, %v7688_v38  ;;  %v3082_v35 = vsub.f32 %v4417_v8, %v6509_v57  ;;  %v3088_v14 = vmul.f32 1.442695, %v3078_v13  ;;  %v7805_v46 = vadd.f32 %v3061_v53, %v7696_v4 }
 0x240   : > { %v4192_v21 = vpop.eup %4191  ;;  %v7808_v39 = vadd.f32 %v3062_v12, %v7699_v20  ;;  %v3083_v37 = vsub.f32 %v4418_v36, %v6511_v56  ;;  %v3090_v58 = vmul.f32 1.442695, %v3079_v31  ;;  %v7813_v15 = vadd.f32 %v3063_v59, %v7704_v45 }
 0x241   : > { %v4194_v41 = vpop.eup %4193  ;;  %v7816_v38 = vadd.f32 %v3064_v43, %v7707_v34  ;;  %4203 = vpow2.f32 %v3084_v63  ;;  %v3092_v51 = vmul.f32 1.442695, %v3080_v11  ;;  %v7819_v4 = vadd.f32 %v3065_v27, %v7712_v22  ;;  %v7883_v63 = vld [vmem:[%s5039_s28 + $0x4d8] sm:$0xff] }
 0x242   : > { %v4196_v13 = vpop.eup %4195  ;;  %v7822_v20 = vadd.f32 %v3066_v47, %v7715_v9  ;;  %4205 = vpow2.f32 %v3086_v1  ;;  %v3094_v53 = vmul.f32 1.442695, %v3081_v2  ;;  %v7825_v31 = vadd.f32 %v4188_v49, %v7720_v50  ;;  %v7874_v47 = vld [vmem:[%s5039_s28 + $0x4d0] sm:$0xff] }
 0x243   : > { %v4198_v12 = vpop.eup %4197  ;;  %v7828_v45 = vadd.f32 %v3067_v55, %v7723_v17  ;;  %4207 = vpow2.f32 %v3088_v14  ;;  %v3096_v34 = vmul.f32 1.442695, %v3082_v35  ;;  %v7831_v43 = vadd.f32 %v4190_v28, %v7726_v24  ;;  %v7893_v14 = vld [vmem:[%s5039_s28 + $0x4e0] sm:$0xff] }
 0x244   : > { %v4200_v59 = vpop.eup %4199  ;;  %v7834_v22 = vadd.f32 %v4192_v21, %v7729_v5  ;;  %4209 = vpow2.f32 %v3090_v58  ;;  %v3098_v9 = vmul.f32 1.442695, %v3083_v37  ;;  %v7837_v11 = vadd.f32 %v4194_v41, %v7732_v18  ;;  %v8785_v21 = vld [vmem:[#allocation36_spill] sm:$0xff] }
 0x245   : > { %v4202_v27 = vpop.eup %4201  ;;  %v7840_v50 = vadd.f32 %v4196_v13, %v7735_v3  ;;  %4211 = vpow2.f32 %v3092_v51  ;;  %vm3108_vm8 = vcmp.eq.f32.partialorder %v7300_v26, 13.0  ;;  %v7844_v17 = vadd.f32 %v4198_v12, %v7738_v32  ;;  %v7864_v32 = vld [vmem:[%s5039_s28 + $0x4c0] sm:$0xff]  ;;  %v7904_v13 = vld [vmem:[%s5039_s28 + $0x4e8] sm:$0xff] }
 0x246   : > { %4213 = vpow2.f32 %v3094_v53  ;;  %vm3109_vm9 = vcmp.eq.f32.partialorder %v7307_v29, 13.0  ;;  %vm3110_vm10 = vcmp.eq.f32.partialorder %v7311_v19, 13.0  ;;  %v7849_v58 = vadd.f32 %v4200_v59, %v7742_v44 }
 0x247   : > { %4215 = vpow2.f32 %v3096_v34  ;;  %vm3111_vm11 = vcmp.eq.f32.partialorder %v7318_v54, 13.0  ;;  %vm3112_vm12 = vcmp.eq.f32.partialorder %v7322_v10, 13.0  ;;  %v7854_v41 = vadd.f32 %v4202_v27, %v7747_v61  ;;  %v7869_v61 = vld [vmem:[%s5039_s28 + $0x4c8] sm:$0xff] }
 0x248   : > { %4217 = vpow2.f32 %v3098_v9  ;;  %vm3113_vm13 = vcmp.eq.f32.partialorder %v7326_v33, 13.0  ;;  %vm3114_vm14 = vcmp.eq.f32.partialorder %v7330_v40, 13.0  ;;  %vm3115_vm15 = vcmp.eq.f32.partialorder %v7448_v25, 13.0  ;;  %v7915_v9 = vld [vmem:[%s5039_s28 + $0x4f0] sm:$0xff] }
 0x249   : > { %v3116_v24 = vsel %vm3108_vm8, %v7758_v7, 0.0  ;;  %v3117_v5 = vsel %vm3109_vm9, %v7763_v60, 0.0  ;;  %v3118_v18 = vsel %vm3110_vm10, %v7768_v0, 0.0  ;;  %v3119_v3 = vsel %vm3111_vm11, %v7773_v30, 0.0 }
 0x24a   : > { %v3132_v44 = vsub.f32 %v7864_v32, %v6497_v42  ;;  %v3133_v49 = vsub.f32 %v7869_v61, %v6499_v16  ;;  %v3134_v7 = vsub.f32 %v7874_v47, %v6501_v48  ;;  %v3120_v0 = vsel %vm3112_vm12, %v7786_v23, 0.0 }
 0x24b   : > { %v4204_v60 = vpop.eup %4203  ;;  %v3121_v30 = vsel %vm3113_vm13, %v7793_v52, 0.0  ;;  %v3122_v2 = vsel %vm3114_vm14, %v4417_v8, 0.0  ;;  %v3135_v1 = vsub.f32 %v7883_v63, %v6503_v6  ;;  %v3123_v55 = vsel %vm3115_vm15, %v4418_v36, 0.0  ;;  %v8786_v36 = vld [vmem:[#allocation56_spill] sm:$0xff] }
 0x24c   : > { %v4206_v28 = vpop.eup %4205  ;;  %v7890_v35 = vadd.f32 %v3116_v24, %v7800_v62  ;;  %v3136_v23 = vsub.f32 %v7893_v14, %v8785_v21  ;;  %v3140_v52 = vmul.f32 1.442695, %v3132_v44  ;;  %v7898_v37 = vadd.f32 %v3117_v5, %v7805_v46 }
 0x24d   : > { %v4208_v8 = vpop.eup %4207  ;;  %v7901_v51 = vadd.f32 %v3118_v18, %v7808_v39  ;;  %v3137_v62 = vsub.f32 %v7904_v13, %v8786_v36  ;;  %v3142_v53 = vmul.f32 1.442695, %v3133_v49  ;;  %v7909_v34 = vadd.f32 %v3119_v3, %v7813_v15  ;;  %v7926_v18 = vld [vmem:[%s5039_s28 + $0x4f8] sm:$0xff] }
 0x24e   : > { %v4210_v12 = vpop.eup %4209  ;;  %v7912_v59 = vadd.f32 %v3120_v0, %v7816_v38  ;;  %v3138_v46 = vsub.f32 %v7915_v9, %v6509_v57  ;;  %v3144_v39 = vmul.f32 1.442695, %v3134_v7  ;;  %v7920_v24 = vadd.f32 %v3121_v30, %v7819_v4 }
 0x24f   : > { %v4212_v27 = vpop.eup %4211  ;;  %v7923_v5 = vadd.f32 %v3122_v2, %v7822_v20  ;;  %v3139_v15 = vsub.f32 %v7926_v18, %v6511_v56  ;;  %v3146_v38 = vmul.f32 1.442695, %v3135_v1  ;;  %v7931_v44 = vadd.f32 %v4204_v60, %v7825_v31 }
 0x250   : > { %v4214_v3 = vpop.eup %4213  ;;  %v7934_v49 = vadd.f32 %v3123_v55, %v7828_v45  ;;  %4219 = vpow2.f32 %v3140_v52  ;;  %v3148_v7 = vmul.f32 1.442695, %v3136_v23  ;;  %v7937_v0 = vadd.f32 %v4206_v28, %v7831_v43  ;;  %v7974_v55 = vld [vmem:[%s5039_s28 + $0x508] sm:$0xff]  ;;  %v7979_v52 = vld [vmem:[%s5039_s28 + $0x510] sm:$0xff] }
 0x251   : > { %v4216_v4 = vpop.eup %4215  ;;  %v7940_v20 = vadd.f32 %v4208_v8, %v7834_v22  ;;  %4221 = vpow2.f32 %v3142_v53  ;;  %v3150_v30 = vmul.f32 1.442695, %v3137_v62  ;;  %v7943_v1 = vadd.f32 %v4210_v12, %v7837_v11  ;;  %v7995_v53 = vld [vmem:[%s5039_s28 + $0x520] sm:$0xff] }
 0x252   : > { %v4218_v2 = vpop.eup %4217  ;;  %v7946_v31 = vadd.f32 %v4212_v27, %v7840_v50  ;;  %4223 = vpow2.f32 %v3144_v39  ;;  %v3152_v45 = vmul.f32 1.442695, %v3138_v46  ;;  %v7949_v60 = vadd.f32 %v4214_v3, %v7844_v17  ;;  %v8000_v46 = vld [vmem:[%s5039_s28 + $0x528] sm:$0xff] }
 0x253   : > { %4225 = vpow2.f32 %v3146_v38  ;;  %v3154_v43 = vmul.f32 1.442695, %v3139_v15  ;;  %vm3164_vm0 = vcmp.eq.f32.partialorder %v7300_v26, 14.0  ;;  %v7953_v22 = vadd.f32 %v4216_v4, %v7849_v58  ;;  %v8008_v15 = vld [vmem:[%s5039_s28 + $0x530] sm:$0xff]  ;;  %v8013_v4 = vld [vmem:[%s5022_s17] sm:$0xff] }
 0x254   : > { %4227 = vpow2.f32 %v3148_v7  ;;  %vm3165_vm1 = vcmp.eq.f32.partialorder %v7307_v29, 14.0  ;;  %vm3166_vm2 = vcmp.eq.f32.partialorder %v7311_v19, 14.0  ;;  %v7958_v11 = vadd.f32 %v4218_v2, %v7854_v41  ;;  %v7969_v41 = vld [vmem:[%s5039_s28 + $0x500] sm:$0xff]  ;;  %v8024_v2 = vld [vmem:[%s5039_s28 + $0x538] sm:$0xff] }
 0x255   : > { %4229 = vpow2.f32 %v3150_v30  ;;  %vm3167_vm3 = vcmp.eq.f32.partialorder %v7318_v54, 14.0  ;;  %vm3168_vm4 = vcmp.eq.f32.partialorder %v7322_v10, 14.0  ;;  %vm3169_vm5 = vcmp.eq.f32.partialorder %v7326_v33, 14.0  ;;  %v8017_v30 = vld [vmem:[%s5022_s17 + $0x8] sm:$0xff] }
 0x256   : > { %4231 = vpow2.f32 %v3152_v45  ;;  %vm3170_vm6 = vcmp.eq.f32.partialorder %v7330_v40, 14.0  ;;  %vm3171_vm7 = vcmp.eq.f32.partialorder %v7448_v25, 14.0  ;;  %v3172_v50 = vsel %vm3164_vm0, %v7864_v32, 0.0 }
 0x257   : > { %4233 = vpow2.f32 %v3154_v43  ;;  %v3173_v17 = vsel %vm3165_vm1, %v7869_v61, 0.0  ;;  %v3174_v58 = vsel %vm3166_vm2, %v7874_v47, 0.0  ;;  %v3188_v28 = vsub.f32 %v7969_v41, %v6497_v42  ;;  %v7984_v61 = vld [vmem:[%s5039_s28 + $0x518] sm:$0xff] }
 0x258   : > { %v3189_v23 = vsub.f32 %v7974_v55, %v6499_v16  ;;  %v3190_v32 = vsub.f32 %v7979_v52, %v6501_v48  ;;  %v3191_v47 = vsub.f32 %v7984_v61, %v6503_v6  ;;  %v3175_v8 = vsel %vm3167_vm3, %v7883_v63, 0.0  ;;  %v8045_v16 = vld [vmem:[%s5022_s17 + $0x18] sm:$0xff] }
 0x259   : > { %v3176_v62 = vsel %vm3168_vm4, %v7893_v14, 0.0  ;;  %v3192_v12 = vsub.f32 %v7995_v53, %v8785_v21  ;;  %v3193_v39 = vsub.f32 %v8000_v46, %v8786_v36  ;;  %v3177_v63 = vsel %vm3169_vm5, %v7904_v13, 0.0 }
 0x25a   : > { %v4220_v27 = vpop.eup %4219  ;;  %v3194_v14 = vsub.f32 %v8008_v15, %v6509_v57  ;;  %v3196_v38 = vmul.f32 1.442695, %v3188_v28  ;;  %v3198_v3 = vmul.f32 1.442695, %v3189_v23  ;;  %vm1145_vm8 = vcmp.eq.f32.partialorder %v8013_v4, 0.0  ;;  %v8029_v57 = vld [vmem:[%s5022_s17 + $0x10] sm:$0xff] }
 0x25b   : > { %v4222_v7 = vpop.eup %4221  ;;  %vm1146_vm9 = vcmp.eq.f32.partialorder %v8017_v30, 0.0  ;;  %v3178_v13 = vsel %vm3170_vm6, %v7915_v9, 0.0  ;;  %v3195_v45 = vsub.f32 %v8024_v2, %v6511_v56  ;;  %v3200_v43 = vmul.f32 1.442695, %v3190_v32 }
 0x25c   : > { %v3202_v28 = vmul.f32 1.442695, %v3191_v47  ;;  %v4224_v23 = vpop.eup %4223  ;;  %vm1147_vm10 = vcmp.eq.f32.partialorder %v8029_v57, 0.0  ;;  %v3179_v36 = vsel %vm3171_vm7, %v7926_v18, 0.0  ;;  %v8036_v21 = vadd.f32 %v3172_v50, %v7890_v35 }
 0x25d   : > { %4235 = vpow2.f32 %v3196_v38  ;;  %v3204_v9 = vmul.f32 1.442695, %v3192_v12  ;;  %v4226_v6 = vpop.eup %4225  ;;  %v8039_v56 = vadd.f32 %v3173_v17, %v7898_v37  ;;  %v8042_v32 = vadd.f32 %v3174_v58, %v7901_v51  ;;  %v8055_v17 = vld [vmem:[%s5022_s17 + $0x20] sm:$0xff] }
 0x25e   : > { %4237 = vpow2.f32 %v3198_v3  ;;  %v3206_v47 = vmul.f32 1.442695, %v3193_v39  ;;  %v4228_v48 = vpop.eup %4227  ;;  %vm1148_vm11 = vcmp.eq.f32.partialorder %v8045_v16, 0.0  ;;  %v8049_v35 = vadd.f32 %v3175_v8, %v7909_v34  ;;  %v8790_v3 = vld [vmem:[#allocation74_spill] sm:$0xff] }
 0x25f   : > { %v8052_v18 = vadd.f32 %v3176_v62, %v7912_v59  ;;  %4239 = vpow2.f32 %v3200_v43  ;;  %v3208_v50 = vmul.f32 1.442695, %v3194_v14  ;;  %v4230_v37 = vpop.eup %4229  ;;  %vm1149_vm12 = vcmp.eq.f32.partialorder %v8055_v17, 0.0  ;;  %v8791_v43 = vld [vmem:[#allocation75_spill] sm:$0xff] }
 0x260   : > { %v8059_v51 = vadd.f32 %v3177_v63, %v7920_v24  ;;  %v8062_v58 = vadd.f32 %v3178_v13, %v7923_v5  ;;  %4241 = vpow2.f32 %v3202_v28  ;;  %v3210_v34 = vmul.f32 1.442695, %v3195_v45  ;;  %v4232_v8 = vpop.eup %4231  ;;  %v8073_v63 = vld [vmem:[%s5022_s17 + $0x28] sm:$0xff] }
 0x261   : > { %v3156_v59 = vadd.f32 %v4220_v27, %v7931_v44  ;;  %v3157_v62 = vadd.f32 %v4222_v7, %v7937_v0  ;;  %v8067_v12 = vadd.f32 %v3179_v36, %v7934_v49  ;;  %4243 = vpow2.f32 %v3204_v9  ;;  %v4234_v39 = vpop.eup %4233 }
 0x262   : > { %v3158_v14 = vadd.f32 %v4224_v23, %v7940_v20  ;;  %v3159_v24 = vadd.f32 %v4226_v6, %v7943_v1  ;;  %v3160_v5 = vadd.f32 %v4228_v48, %v7946_v31  ;;  %4245 = vpow2.f32 %v3206_v47  ;;  %v8085_v48 = vld [vmem:[%s5022_s17 + $0x30] sm:$0xff]  ;;  %v8104_v31 = vld [vmem:[%s5022_s17 + $0x38] sm:$0xff] }
 0x263   : > { %4247 = vpow2.f32 %v3208_v50  ;;  %vm3220_vm14 = vcmp.eq.f32.partialorder %v7300_v26, 15.0  ;;  %vm3221_vm15 = vcmp.eq.f32.partialorder %v7307_v29, 15.0  ;;  %vm3222_vm0 = vcmp.eq.f32.partialorder %v7311_v19, 15.0 }
 0x264   : > { %v3161_v36 = vadd.f32 %v4230_v37, %v7949_v60  ;;  %4249 = vpow2.f32 %v3210_v34  ;;  %vm3223_vm1 = vcmp.eq.f32.partialorder %v7318_v54, 15.0  ;;  %vm3224_vm2 = vcmp.eq.f32.partialorder %v7322_v10, 15.0  ;;  %v8787_v60 = vld [vmem:[#allocation58_spill] sm:$0xff] }
 0x265   : > { %vm1151_vm5 = vcmp.eq.f32.partialorder %v8085_v48, 0.0  ;;  %v3162_v6 = vadd.f32 %v4232_v8, %v7953_v22  ;;  %v3163_v44 = vadd.f32 %v4234_v39, %v7958_v11  ;;  %vm3225_vm6 = vcmp.eq.f32.partialorder %v7326_v33, 15.0  ;;  %v8788_v22 = vld [vmem:[#allocation72_spill] sm:$0xff] }
 0x266   : > { %vm3226_vm7 = vcmp.eq.f32.partialorder %v7330_v40, 15.0  ;;  %vm3227_vm13 = vcmp.eq.f32.partialorder %v7448_v25, 15.0  ;;  %v3228_v49 = vsel %vm3220_vm14, %v7969_v41, 0.0  ;;  %v3229_v0 = vsel %vm3221_vm15, %v7974_v55, 0.0  ;;  %v8792_v39 = vld [vmem:[#allocation76_spill] sm:$0xff] }
 0x267   : > { %v3230_v20 = vsel %vm3222_vm0, %v7979_v52, 0.0  ;;  %v4236_v1 = vpop.eup %4235  ;;  %vm1139_vm4 = vcmp.eq.f32.partialorder %v8029_v57, 1.0  ;;  %vm1152_vm3 = vcmp.eq.f32.partialorder %v8104_v31, 0.0  ;;  %v3231_v26 = vsel %vm3223_vm1, %v7984_v61, 0.0  ;;  %v8789_v52 = vld [vmem:[#allocation73_spill] sm:$0xff] }
 0x268   : > { %v8113_v29 = vsel %vm3224_vm2, %v7995_v53, 0.0  ;;  %v3277_v19 = vsel %vm1145_vm8, %v8787_v60, 0.0  ;;  %v3278_v11 = vsel %vm1146_vm9, %v8788_v22, 0.0  ;;  %v4238_v41 = vpop.eup %4237  ;;  %v3212_v55 = vadd.f32 %v4236_v1, %v3156_v59  ;;  %v8795_v1 = vld [vmem:[#allocation45_spill] sm:$0xff] }
 0x269   : > { %v8125_v54 = vsel %vm3225_vm6, %v8000_v46, 0.0  ;;  %v8130_v10 = vsel %vm3226_vm7, %v8008_v15, 0.0  ;;  %v3279_v61 = vsel %vm1147_vm10, %v8789_v52, 0.0  ;;  %v4240_v53 = vpop.eup %4239  ;;  %vm1140_vm14 = vcmp.eq.f32.partialorder %v8045_v16, 1.0  ;;  %v8799_v52 = vld [vmem:[#allocation95_spill] sm:$0xff] }
 0x26a   : > { %v3213_v27 = vadd.f32 %v4238_v41, %v3157_v62  ;;  %v8139_v33 = vsel %vm3227_vm13, %v8024_v2, 0.0  ;;  %v3285_v46 = vadd.f32 %v3278_v11, %v3277_v19  ;;  %v4242_v38 = vpop.eup %4241  ;;  %v3214_v40 = vadd.f32 %v4240_v53, %v3158_v14  ;;  %v8797_v19 = vld [vmem:[#allocation55_spill] sm:$0xff] }
 0x26b   : > { %v8142_v15 = vadd.f32 %v3228_v49, %v8036_v21  ;;  %4251 = vlog2.f32 %v3212_v55  ;;  %v3280_v7 = vsel %vm1148_vm11, %v8790_v3, 0.0  ;;  %v4244_v13 = vpop.eup %4243  ;;  %v3215_v45 = vadd.f32 %v4242_v38, %v3159_v24  ;;  %v8794_v49 = vld [vmem:[#allocation42_spill] sm:$0xff] }
 0x26c   : > { %4253 = vlog2.f32 %v3213_v27  ;;  %v3281_v25 = vsel %vm1149_vm12, %v8791_v43, 0.0  ;;  %v3286_v2 = vadd.f32 %v3285_v46, %v3279_v61  ;;  %v4246_v28 = vpop.eup %4245  ;;  %vm1141_vm13 = vcmp.eq.f32.partialorder %v8055_v17, 1.0  ;;  %v8800_v27 = vld [vmem:[#allocation48_spill] sm:$0xff] }
 0x26d   : > { %v3216_v21 = vadd.f32 %v4244_v13, %v3160_v5  ;;  %4255 = vlog2.f32 %v3214_v40  ;;  %v4498_v23 = vmov 0.0   ;;  %v4248_v50 = vpop.eup %4247  ;;  %vm1142_vm15 = vcmp.eq.f32.partialorder %v8073_v63, 1.0 }
 0x26e   : > { %v3295_v9 = vsel %vm1145_vm8, 1.0, %v4498_v23  ;;  %v3296_v47 = vsel %vm1146_vm9, 1.0, %v4498_v23  ;;  %v3217_v37 = vadd.f32 %v4246_v28, %v3161_v36  ;;  %v8164_v34 = vadd.f32 %v3229_v0, %v8039_v56  ;;  %v4250_v59 = vpop.eup %4249 }
 0x26f   : > { %4257 = vlog2.f32 %v3215_v45  ;;  %v3287_v8 = vadd.f32 %v3286_v2, %v3280_v7  ;;  %v3218_v62 = vadd.f32 %v4248_v50, %v3162_v6  ;;  %vm8793_vm8 = vcmp.eq.f32.partialorder %v8073_v63, 0.0  ;;  %v8802_v7 = vld [vmem:[#allocation54_spill] sm:$0xff] }
 0x270   : > { %4259 = vlog2.f32 %v3216_v21  ;;  %v3282_v14 = vsel %vm8793_vm8, %v8792_v39, 0.0  ;;  %v3297_v24 = vsel %vm1147_vm10, 1.0, %v4498_v23  ;;  %vm1143_vm9 = vcmp.eq.f32.partialorder %v8085_v48, 1.0 }
 0x271   : > { %v3219_v5 = vadd.f32 %v4250_v59, %v3163_v44  ;;  %4261 = vlog2.f32 %v3217_v37  ;;  %v3288_v36 = vadd.f32 %v3287_v8, %v3281_v25  ;;  %v3303_v56 = vadd.f32 %v3296_v47, %v3295_v9  ;;  %v8805_v37 = vld [vmem:[#allocation32_spill] sm:$0xff] }
 0x272   : > { %vm1144_vm0 = vcmp.eq.f32.partialorder %v8104_v31, 1.0  ;;  %v3283_v6 = vsel %vm1151_vm5, %v8794_v49, 0.0  ;;  %v3298_v0 = vsel %vm1148_vm11, 1.0, %v4498_v23  ;;  %vm8796_vm10 = vcmp.eq.f32.partialorder %v8013_v4, 1.0  ;;  %vm8801_vm11 = vmmov %vm8793_vm8 }
 0x273   : > { %v3313_v60 = vsel %vm8796_vm10, %v8795_v1, 0.0  ;;  %vm8798_vm1 = vcmp.eq.f32.partialorder %v8017_v30, 1.0  ;;  %v8188_v22 = vadd.f32 %v3230_v20, %v8042_v32  ;;  %4263 = vlog2.f32 %v3218_v62 }
 0x274   : > { %v3314_v44 = vsel %vm8798_vm1, %v8797_v19, 0.0  ;;  %v3289_v11 = vadd.f32 %v3288_v36, %v3282_v14  ;;  %v3304_v41 = vadd.f32 %v3303_v56, %v3297_v24  ;;  %v8191_v55 = vadd.f32 %v3231_v26, %v8049_v35  ;;  %vm8804_vm2 = vmmov %vm8798_vm1 }
 0x275   : > { %v3284_v61 = vsel %vm1152_vm3, %v8799_v52, 0.0  ;;  %v3299_v53 = vsel %vm1149_vm12, 1.0, %v4498_v23  ;;  %v3315_v46 = vsel %vm1139_vm4, %v8800_v27, 0.0  ;;  %4265 = vlog2.f32 %v3219_v5  ;;  %v4252_v40 = vpop.eup %4251  ;;  %vm8803_vm12 = vmmov %vm8796_vm10  ;;  %v8806_v5 = vld [vmem:[#allocation40_spill] sm:$0xff] }
 0x276   : > { %v3290_v32 = vadd.f32 %v3289_v11, %v3283_v6  ;;  %v3305_v20 = vadd.f32 %v3304_v41, %v3298_v0  ;;  %v3321_v38 = vadd.f32 %v3314_v44, %v3313_v60  ;;  %v8209_v35 = vadd.f32 %v8113_v29, %v8052_v18  ;;  %v4254_v45 = vpop.eup %4253  ;;  %v8808_v60 = vld [vmem:[#allocation59_spill] sm:$0xff]  ;;  %v8809_v41 = vld [vmem:[#allocation53_spill] sm:$0xff]  ;;  %vm8822_vm7 = vmmov %vm8798_vm1 }
 0x277   : > { %v8213_v26 = vadd.f32 %v8125_v54, %v8059_v51  ;;  %v3300_v3 = vsel %vm8801_vm11, 1.0, %v4498_v23  ;;  %v3316_v13 = vsel %vm1140_vm14, %v8802_v7, 0.0  ;;  %v3245_v43 = vmul.f32 0.6931472, %v4252_v40  ;;  %v4256_v18 = vpop.eup %4255  ;;  %v8811_v40 = vld [vmem:[#allocation78_spill] sm:$0xff] }
 0x278   : > { %v3291_v25 = vadd.f32 %v3290_v32, %v3284_v61  ;;  %v3306_v2 = vadd.f32 %v3305_v20, %v3299_v53  ;;  %v3322_v28 = vadd.f32 %v3321_v38, %v3315_v46  ;;  %v3247_v29 = vmul.f32 0.6931472, %v4254_v45  ;;  %v8812_v45 = vld [vmem:[#allocation80_spill] sm:$0xff] }
 0x279   : > { %v3301_v51 = vsel %vm1151_vm5, 1.0, %v4498_v23  ;;  %v3331_v54 = vsel %vm8803_vm12, 1.0, %v4498_v23  ;;  %v3332_v21 = vsel %vm8804_vm2, 1.0, %v4498_v23  ;;  %v4258_v9 = vpop.eup %4257  ;;  %v3249_v47 = vmul.f32 0.6931472, %v4256_v18  ;;  %v8814_v18 = vld [vmem:[#allocation63_spill] sm:$0xff]  ;;  %vm8815_vm5 = vmmov %vm8798_vm1 }
 0x27a   : > { %v3307_v50 = vadd.f32 %v3306_v2, %v3300_v3  ;;  %v3317_v8 = vsel %vm1141_vm13, %v8805_v37, 0.0  ;;  %v3323_v59 = vadd.f32 %v3322_v28, %v3316_v13  ;;  %3388 = vst [vmem:[%s8205_s5] sm:$0xff] %v3291_v25  ;;  %v4260_v62 = vpop.eup %4259  ;;  %v8236_v39 = vadd.f32 %v8130_v10, %v8062_v58  ;;  %v8807_v58 = vld [vmem:[#allocation77_spill] sm:$0xff] }
 0x27b   : > { %v8240_v14 = vadd.f32 %v8139_v33, %v8067_v12  ;;  %v3302_v24 = vsel %vm1152_vm3, 1.0, %v4498_v23  ;;  %v3318_v36 = vsel %vm1142_vm15, %v8806_v5, 0.0  ;;  %v4262_v56 = vpop.eup %4261  ;;  %v3251_v49 = vmul.f32 0.6931472, %v4258_v9  ;;  %vm8813_vm3 = vmmov %vm8796_vm10 }
 0x27c   : > { %v3260_v6 = vadd.f32 %v3245_v43, %v6497_v42  ;;  %v3308_v0 = vadd.f32 %v3307_v50, %v3301_v51  ;;  %v3339_v1 = vadd.f32 %v3332_v21, %v3331_v54  ;;  %v3261_v10 = vadd.f32 %v3247_v29, %v8807_v58  ;;  %v8810_v42 = vld [vmem:[#allocation43_spill] sm:$0xff]  ;;  %v8816_v51 = vld [vmem:[#allocation36_spill] sm:$0xff]  ;;  %vm8819_vm6 = vmmov %vm8813_vm3 }
 0x27d   : > { %v3319_v12 = vsel %vm1143_vm9, %v8808_v60, 0.0  ;;  %v3324_v33 = vadd.f32 %v3323_v59, %v3317_v8  ;;  %v3333_v19 = vsel %vm1139_vm4, 1.0, %v4498_v23  ;;  %v4264_v44 = vpop.eup %4263  ;;  %v3253_v11 = vmul.f32 0.6931472, %v4260_v62  ;;  %v8817_v50 = vld [vmem:[#allocation56_spill] sm:$0xff]  ;;  %v8823_v60 = vld [vmem:[#allocation62_spill] sm:$0xff] }
 0x27e   : > { %v3262_v52 = vadd.f32 %v3249_v47, %v8809_v41  ;;  %v3309_v61 = vadd.f32 %v3308_v0, %v3302_v24  ;;  %v3320_v53 = vsel %vm1144_vm0, %v8810_v42, 0.0  ;;  %v3255_v27 = vmul.f32 0.6931472, %v4262_v56 }
 0x27f   : > { %v3325_v46 = vadd.f32 %v3324_v33, %v3318_v36  ;;  %v3334_v32 = vsel %vm1140_vm14, 1.0, %v4498_v23  ;;  %v3335_v20 = vsel %vm1141_vm13, 1.0, %v4498_v23  ;;  %v4266_v38 = vpop.eup %4265  ;;  %v3263_v3 = vadd.f32 %v3251_v49, %v8811_v40  ;;  %v8820_v36 = vld [vmem:[#allocation79_spill] sm:$0xff] }
 0x280   : > { %v3268_v7 = vsub.f32 %v3260_v6, %v8142_v15  ;;  %v3340_v13 = vadd.f32 %v3339_v1, %v3333_v19  ;;  %v3349_v43 = vsel %vm8813_vm3, %v8812_v45, 0.0  ;;  %3390 = vst [vmem:[%s8205_s5 + $0x8] sm:$0xff] %v3309_v61  ;;  %v3257_v25 = vmul.f32 0.6931472, %v4264_v44  ;;  %v8821_v6 = vld [vmem:[#allocation65_spill] sm:$0xff]  ;;  %v8824_v19 = vld [vmem:[#allocation83_spill] sm:$0xff] }
 0x281   : > { %v3269_v2 = vsub.f32 %v3261_v10, %v8164_v34  ;;  %v3326_v28 = vadd.f32 %v3325_v46, %v3319_v12  ;;  %v3350_v29 = vsel %vm8815_vm5, %v8814_v18, 0.0  ;;  %v3264_v54 = vadd.f32 %v3253_v11, %v8816_v51  ;;  %v8818_v34 = vld [vmem:[#allocation81_spill] sm:$0xff]  ;;  %v8826_v61 = vld [vmem:[#allocation66_spill] sm:$0xff] }
 0x282   : > { %v3270_v21 = vsub.f32 %v3262_v52, %v8188_v22  ;;  %v3336_v15 = vsel %vm1142_vm15, 1.0, %v4498_v23  ;;  %v3341_v9 = vadd.f32 %v3340_v13, %v3334_v32  ;;  %v3259_v47 = vmul.f32 0.6931472, %v4266_v38  ;;  %v8825_v52 = vld [vmem:[#allocation52_spill] sm:$0xff] }
 0x283   : > { %v3265_v37 = vadd.f32 %v3255_v27, %v8817_v50  ;;  %v3327_v8 = vadd.f32 %v3326_v28, %v3320_v53  ;;  %v3351_v59 = vsel %vm1139_vm4, %v8818_v34, 0.0  ;;  %v3271_v62 = vsub.f32 %v3263_v3, %v8191_v55  ;;  %v8827_v53 = vld [vmem:[#allocation86_spill] sm:$0xff]  ;;  %v8828_v38 = vld [vmem:[#allocation68_spill] sm:$0xff] }
 0x284   : > { %v3342_v24 = vadd.f32 %v3341_v9, %v3335_v20  ;;  %v3357_v5 = vadd.f32 %v3350_v29, %v3349_v43  ;;  %v3367_v22 = vsel %vm8819_vm6, %v3268_v7, 0.0  ;;  %v3266_v56 = vadd.f32 %v3257_v25, %v8820_v36 }
 0x285   : > { %v3337_v49 = vsel %vm1143_vm9, 1.0, %v4498_v23  ;;  %v3352_v0 = vsel %vm1140_vm14, %v8821_v6, 0.0  ;;  %v3368_v1 = vsel %vm8822_vm7, %v3269_v2, 0.0  ;;  %3392 = vst [vmem:[%s8205_s5 + $0x10] sm:$0xff] %v3327_v8  ;;  %v3272_v55 = vsub.f32 %v3264_v54, %v8209_v35 }
 0x286   : > { %v3343_v58 = vadd.f32 %v3342_v24, %v3336_v15  ;;  %v3358_v10 = vadd.f32 %v3357_v5, %v3351_v59  ;;  %v3369_v4 = vsel %vm1139_vm4, %v3270_v21, 0.0  ;;  %v3267_v12 = vadd.f32 %v3259_v47, %v8823_v60 }
 0x287   : > { %v3338_v33 = vsel %vm1144_vm0, 1.0, %v4498_v23  ;;  %v3353_v44 = vsel %vm1141_vm13, %v8824_v19, 0.0  ;;  %v3375_v30 = vadd.f32 %v3368_v1, %v3367_v22  ;;  %v3273_v11 = vsub.f32 %v3265_v37, %v8213_v26 }
 0x288   : > { %v3344_v35 = vadd.f32 %v3343_v58, %v3337_v49  ;;  %v3359_v41 = vadd.f32 %v3358_v10, %v3352_v0  ;;  %v3370_v57 = vsel %vm1140_vm14, %v3271_v62, 0.0  ;;  %v2074_v42 = vadd.f32 %v8826_v61, %v8825_v52 }
 0x289   : > { %v3354_v23 = vsel %vm1142_vm15, %v8827_v53, 0.0  ;;  %v3376_v27 = vadd.f32 %v3375_v30, %v3369_v4  ;;  %v3274_v46 = vsub.f32 %v3266_v56, %v8236_v39  ;;  %v3371_v26 = vsel %vm1141_vm13, %v3272_v55, 0.0 }
 0x28a   : > { %v3345_v32 = vadd.f32 %v3344_v35, %v3338_v33  ;;  %v3360_v20 = vadd.f32 %v3359_v41, %v3353_v44  ;;  %v3355_v16 = vsel %vm1143_vm9, %v8828_v38, 0.0  ;;  %v3275_v3 = vsub.f32 %v3267_v12, %v8240_v14 }
 0x28b   : > { %v3377_v40 = vadd.f32 %v3376_v27, %v3370_v57  ;;  %v3372_v13 = vsel %vm1142_vm15, %v3273_v11, 0.0  ;;  %v3356_v39 = vsel %vm1144_vm0, %v2074_v42, 0.0  ;;  %v3373_v43 = vsel %vm1143_vm9, %v3274_v46, 0.0 }
 0x28c   : > { %v3361_v7 = vadd.f32 %v3360_v20, %v3354_v23  ;;  %3394 = vst [vmem:[%s8205_s5 + $0x18] sm:$0xff] %v3345_v32  ;;  %v3374_v28 = vsel %vm1144_vm0, %v3275_v3, 0.0 }
 0x28d   : > { %v3378_v45 = vadd.f32 %v3377_v40, %v3371_v26 }
 0x28e   : > { %v3362_v17 = vadd.f32 %v3361_v7, %v3355_v16 }
 0x28f   : > { %v3379_v25 = vadd.f32 %v3378_v45, %v3372_v13 }
 0x290   : > { %v3363_v2 = vadd.f32 %v3362_v17, %v3356_v39 }
 0x291   : > { %v3380_v18 = vadd.f32 %v3379_v25, %v3373_v43 }
 0x292   : > { %3396 = vst [vmem:[%s8205_s5 + $0x20] sm:$0xff] %v3363_v2 }
 0x293   : > { %v3381_v14 = vadd.f32 %v3380_v18, %v3374_v28 }
 0x295   : > { %3398 = vst [vmem:[%s8205_s5 + $0x28] sm:$0xff] %v3381_v14 }
 0x296 PF: > { %s19_s20 = sadd.s32 1, %s4495_s20   ;;  %s8829_s17 = smov %s4483_s18 }
 0x297   : > { %p16_p1 = scmp.ge.s32.totalorder %s19_s20, 4   ;;  %s8830_s18 = smov %s4561_s25 }
 0x298   : > { %s8831_s19 = smov %s4491_s0  ;;  %s8832_s0 = smov %s8834_s21 }
 0x299   :  { %18 = sbr.rel (!%p16_p1) target bundleno = 18 (0x12), region = 180 }

</bundles_post_ra>
